<compile_context>
chip_gen: v7x
topology: tpu7x:2x2x1
jax: 0.10.0
libtpu: 0.0.40
codegen_flags: <defaults>
</compile_context>

<pallas_src>
import functools

import jax
import jax.numpy as jnp
from jax.experimental import pallas as pl
from jax.experimental.pallas import tpu as pltpu


def _round_up(x, m):
    return ((x + m - 1) // m) * m


# ----------------------------------------------------------------------------
# Fused Pallas kernel: ALL encoder layers over one tile of rows
# ----------------------------------------------------------------------------
def _backbone_fused_kernel(*refs, num_layers, has_aux):
    if has_aux:
        (x_ref, aux_ref, w1_ref, b1_ref, w2_ref, b2_ref,
         g_ref, bt_ref, tag_ref, o_ref) = refs
    else:
        (x_ref, w1_ref, b1_ref, w2_ref, b2_ref,
         g_ref, bt_ref, o_ref) = refs

    x = x_ref[...]                                   # (tm, H) f32
    tm, hidden = x.shape
    inv_h = 1.0 / hidden

    if has_aux:
        # One-hot gather expressed as ONE bf16 MXU matmul against the tag
        # table for ALL layers at once: (tm,t_pad) @ (t_pad, L*H) -> (tm,L*H).
        # bf16 0/1 one-hot is exact, full-rate MXU (f32xf32 would be ~3x
        # slower multi-pass), and reads the one-hot vregs only once.
        ids = aux_ref[...]                           # (tm, 1) int32
        t_pad = tag_ref.shape[0]
        lanes = jax.lax.broadcasted_iota(jnp.int32, (tm, t_pad), 1)
        one_hot = (lanes == ids).astype(jnp.bfloat16)
        tag_rows = jnp.dot(one_hot, tag_ref[...],
                           preferred_element_type=jnp.float32)   # (tm, L*H)

    # num_layers is small & static here -> unrolled, LLO scheduler sees it all.
    # TODO(synk): for large num_layers use lax.fori_loop (dynamic w1_ref[l]
    # leading-axis indexing) or a layer grid axis so the weight stack is not
    # all-resident and code size / vreg pressure stay bounded.
    for l in range(num_layers):
        if has_aux:
            x = x + tag_rows[:, l * hidden:(l + 1) * hidden]

        # FFN up-projection + ReLU (bf16 MXU, f32 accumulate)
        h = jnp.dot(x.astype(jnp.bfloat16), w1_ref[l],
                    preferred_element_type=jnp.float32)
        h = jnp.maximum(h + b1_ref[l], 0.0)          # (tm, F) f32

        # FFN down-projection + residual
        y = jnp.dot(h.astype(jnp.bfloat16), w2_ref[l],
                    preferred_element_type=jnp.float32)
        y = y + b2_ref[l] + x                        # (tm, H) f32

        # LayerNorm: single reduction pass (sum & sum-of-squares), EUP rsqrt
        mu = jnp.sum(y, axis=-1, keepdims=True) * inv_h
        ms = jnp.sum(y * y, axis=-1, keepdims=True) * inv_h
        var = ms - mu * mu
        x = (y - mu) * jax.lax.rsqrt(var + 1e-5) * g_ref[l] + bt_ref[l]

    o_ref[...] = x


# ----------------------------------------------------------------------------
# Parameter init (stacked across layers)
# ----------------------------------------------------------------------------
def init_backbone_params(key, num_layers, hidden, ffn, num_tags):
    t_pad = _round_up(max(num_tags, 1), 128)         # lane-align the tag table
    k = jax.random.split(key, 7)
    tag = jnp.zeros((num_layers, t_pad, hidden), jnp.float32)
    tag = tag.at[:, :num_tags, :].set(
        jax.random.normal(k[6], (num_layers, num_tags, hidden), jnp.float32)
        * 0.02)
    return {
        "w1": (jax.random.normal(k[0], (num_layers, hidden, ffn), jnp.float32)
               * (1.0 / jnp.sqrt(hidden))).astype(jnp.bfloat16),
        "b1": jax.random.normal(k[1], (num_layers, 1, ffn), jnp.float32) * 0.1,
        "w2": (jax.random.normal(k[2], (num_layers, ffn, hidden), jnp.float32)
               * (1.0 / jnp.sqrt(ffn))).astype(jnp.bfloat16),
        "b2": jax.random.normal(k[3], (num_layers, 1, hidden), jnp.float32) * 0.1,
        "gamma": 1.0 + jax.random.normal(k[4], (num_layers, 1, hidden),
                                         jnp.float32) * 0.1,
        "beta": jax.random.normal(k[5], (num_layers, 1, hidden),
                                  jnp.float32) * 0.1,
        # bf16 tag table: halves resident VMEM and enables full-rate MXU; the
        # one-hot "gather" of a single bf16 row is exact in f32 accumulation.
        "tag_emb": tag.astype(jnp.bfloat16),
    }


# ----------------------------------------------------------------------------
# Forward wrapper
# ----------------------------------------------------------------------------
def backbone_forward(params, x, aux=None, *, tm=256):
    """x: [B, S, H] float32, aux: optional [B, S] int32 tag ids -> [B, S, H]."""
    B, S, H = x.shape
    L, _, F = params["w1"].shape
    M = B * S

    # Row-tile selection: large tiles amortize per-step overhead, but keep
    # >=4 grid steps when possible so each TensorCore (megacore) gets >=2
    # steps and x/out DMAs can double-buffer under compute.
    tm = min(tm, _round_up(M, 128))
    if tm > 128 and (_round_up(M, tm) // tm) < 4:
        tm = 128
    M_pad = _round_up(M, tm)

    x2d = x.reshape(M, H).astype(jnp.float32)
    if M_pad != M:
        x2d = jnp.pad(x2d, ((0, M_pad - M), (0, 0)))

    has_aux = aux is not None
    kernel = functools.partial(_backbone_fused_kernel,
                               num_layers=L, has_aux=has_aux)

    inputs = [x2d]
    if has_aux:
        ids = aux.reshape(M, 1).astype(jnp.int32)
        if M_pad != M:
            ids = jnp.pad(ids, ((0, M_pad - M), (0, 0)))
        inputs.append(ids)

    # Stacked per-layer weights, constant block index -> fetched once, resident.
    weight_arrays = [params["w1"], params["b1"], params["w2"], params["b2"],
                     params["gamma"], params["beta"]]
    weight_shapes = [(L, H, F), (L, 1, F), (L, F, H),
                     (L, 1, H), (L, 1, H), (L, 1, H)]
    t_pad = params["tag_emb"].shape[1]
    if has_aux:
        # Tag table for ALL layers laid out (t_pad, L*H): one matmul per tile
        # gathers every layer's tag rows (per-layer slices are lane-aligned).
        tag_all = jnp.transpose(params["tag_emb"], (1, 0, 2)).reshape(t_pad, L * H)
        weight_arrays.append(tag_all)
        weight_shapes.append((t_pad, L * H))
    inputs += weight_arrays
    weight_bytes = sum(int(a.size) * a.dtype.itemsize for a in weight_arrays)

    # Advisory cost estimate for the XLA scheduler.
    flops = 2 * M_pad * L * (H * F + F * H)
    if has_aux:
        flops += 2 * M_pad * t_pad * L * H
    bytes_accessed = int(2 * M_pad * H * 4 + weight_bytes
                         + (M_pad * 4 if has_aux else 0))
    cost = pl.CostEstimate(flops=int(flops),
                           transcendentals=int(M_pad * L),
                           bytes_accessed=bytes_accessed)

    # TODO(synk): when L*(H*F+F*H)*2B outgrows ~16 MiB (v7x VMEM budget),
    # switch to a (row, layer) grid with per-layer weight blocks and the
    # activation resident as the carry instead of the all-resident stack.

    def make_call(single_buffer_weights):
        weight_mode = {}
        if single_buffer_weights and hasattr(pl, "Buffered"):
            # Constant-index resident weights never change: no benefit from
            # double-buffering, so single-buffer to halve their VMEM cost.
            weight_mode = dict(pipeline_mode=pl.Buffered(1))

        in_specs = [pl.BlockSpec((tm, H), lambda i: (i, 0))]
        if has_aux:
            in_specs.append(pl.BlockSpec((tm, 1), lambda i: (i, 0)))
        for shp in weight_shapes:
            in_specs.append(pl.BlockSpec(
                shp, lambda i, _nd=len(shp): (0,) * _nd, **weight_mode))

        # VMEM budget from the actual footprint (+ headroom), within limits.
        weight_buf = weight_bytes * (1 if single_buffer_weights else 2)
        act_bytes = 2 * (2 * tm * H * 4) + (2 * tm * 4 if has_aux else 0)
        work_bytes = tm * F * 4 + 4 * tm * H * 4
        if has_aux:
            work_bytes += tm * L * H * 4 + tm * t_pad * 2
        vmem_limit = int(weight_buf + act_bytes + 2 * work_bytes) + (4 << 20)
        vmem_limit = max(32 << 20, min(vmem_limit, 64 << 20))

        return pl.pallas_call(
            kernel,
            out_shape=jax.ShapeDtypeStruct((M_pad, H), jnp.float32),
            grid=(M_pad // tm,),
            in_specs=in_specs,
            out_specs=pl.BlockSpec((tm, H), lambda i: (i, 0)),
            # Output reuses the padded-input activation buffer (same shape &
            # dtype); XLA copies only if the input is still live elsewhere.
            input_output_aliases={0: 0},
            compiler_params=pltpu.CompilerParams(
                dimension_semantics=("parallel",),
                vmem_limit_bytes=vmem_limit),
            cost_estimate=cost,
        )

    try:
        out = make_call(single_buffer_weights=True)(*inputs)
    except Exception:
        # Robust fallback if this Pallas build rejects Buffered(1) blocks.
        out = make_call(single_buffer_weights=False)(*inputs)

    return out[:M].reshape(B, S, H)


# ----------------------------------------------------------------------------
# Pure-JAX reference (same math: bf16 dots / bf16 tag table, f32 accum & LN)
# ----------------------------------------------------------------------------
def backbone_reference(params, x, aux=None):
    B, S, H = x.shape
    L = params["w1"].shape[0]
    h = x.reshape(-1, H).astype(jnp.float32)
    for l in range(L):
        if aux is not None:
            h = h + params["tag_emb"][l][aux.reshape(-1)].astype(jnp.float32)
        a = jnp.dot(h.astype(jnp.bfloat16), params["w1"][l],
                    preferred_element_type=jnp.float32) + params["b1"][l]
        a = jnp.maximum(a, 0.0)
        y = jnp.dot(a.astype(jnp.bfloat16), params["w2"][l],
                    preferred_element_type=jnp.float32) + params["b2"][l] + h
        mu = jnp.mean(y, axis=-1, keepdims=True)
        var = jnp.mean(y * y, axis=-1, keepdims=True) - mu * mu
        h = (y - mu) * jax.lax.rsqrt(var + 1e-5) * params["gamma"][l] \
            + params["beta"][l]
    return h.reshape(B, S, H)


# ----------------------------------------------------------------------------
if __name__ == "__main__":
    # TODO(synk): reference's `return self.layers(x)` is a bug (ModuleList is
    # not callable); we return the sequentially-processed activations instead.
    NUM_LAYERS = 2
    BATCH, SEQ, HIDDEN, FFN, NUM_TAGS = 2, 64, 128, 256, 8

    key = jax.random.PRNGKey(0)
    key, kx, ka = jax.random.split(key, 3)
    x = jax.random.normal(kx, (BATCH, SEQ, HIDDEN), jnp.float32)
    aux = jax.random.randint(ka, (BATCH, SEQ), 0, NUM_TAGS, jnp.int32)

    params = init_backbone_params(key, NUM_LAYERS, HIDDEN, FFN, NUM_TAGS)

    # no-aux path
    out = jax.block_until_ready(backbone_forward(params, x))
    ref = jax.block_until_ready(backbone_reference(params, x))
    assert out.shape == (BATCH, SEQ, HIDDEN)
    assert jnp.all(jnp.isfinite(out))
    assert jnp.allclose(out, ref, rtol=5e-2, atol=5e-2)

    # aux (tag-embedding) path, fused in-kernel
    out_aux = jax.block_until_ready(backbone_forward(params, x, aux=aux))
    ref_aux = jax.block_until_ready(backbone_reference(params, x, aux=aux))
    assert jnp.all(jnp.isfinite(out_aux))
    assert jnp.allclose(out_aux, ref_aux, rtol=5e-2, atol=5e-2)

    print("KERNEL_OK")
</pallas_src>

<mosaic_0001>
module attributes {stable_mosaic.version = 11 : i64} {
  func.func @_backbone_fused_kernel(%arg0: i32, %arg1: memref<128x128xf32, #tpu.memory_space<vmem>>, %arg2: memref<2x128x256xbf16, #tpu.memory_space<vmem>>, %arg3: memref<2x1x256xf32, #tpu.memory_space<vmem>>, %arg4: memref<2x256x128xbf16, #tpu.memory_space<vmem>>, %arg5: memref<2x1x128xf32, #tpu.memory_space<vmem>>, %arg6: memref<2x1x128xf32, #tpu.memory_space<vmem>>, %arg7: memref<2x1x128xf32, #tpu.memory_space<vmem>>, %arg8: memref<128x128xf32, #tpu.memory_space<vmem>>) attributes {dimension_semantics = [#tpu.dimension_semantics<parallel>], iteration_bounds = array<i64: 1>, scalar_prefetch = 0 : i64, scratch_operands = 0 : i64, tpu.core_type = #tpu.core_type<tc>, window_params = [{transform_indices = @transform_0, window_bounds = array<i64: 128, 128>}, {pipeline_mode = #tpu.pipeline_mode<synchronous>, transform_indices = @transform_1, window_bounds = array<i64: 2, 128, 256>}, {pipeline_mode = #tpu.pipeline_mode<synchronous>, transform_indices = @transform_2, window_bounds = array<i64: 2, 1, 256>}, {pipeline_mode = #tpu.pipeline_mode<synchronous>, transform_indices = @transform_3, window_bounds = array<i64: 2, 256, 128>}, {pipeline_mode = #tpu.pipeline_mode<synchronous>, transform_indices = @transform_4, window_bounds = array<i64: 2, 1, 128>}, {pipeline_mode = #tpu.pipeline_mode<synchronous>, transform_indices = @transform_5, window_bounds = array<i64: 2, 1, 128>}, {pipeline_mode = #tpu.pipeline_mode<synchronous>, transform_indices = @transform_6, window_bounds = array<i64: 2, 1, 128>}, {transform_indices = @transform_7, window_bounds = array<i64: 128, 128>}]} {
    %c0 = arith.constant 0 : index
    %c0_0 = arith.constant 0 : index
    %0 = vector.load %arg1[%c0, %c0_0] : memref<128x128xf32, #tpu.memory_space<vmem>>, vector<128x128xf32>
    %1 = arith.truncf %0 : vector<128x128xf32> to vector<128x128xbf16>
    %c0_1 = arith.constant 0 : index
    %c0_2 = arith.constant 0 : index
    %c0_3 = arith.constant 0 : index
    %2 = vector.load %arg2[%c0_1, %c0_2, %c0_3] : memref<2x128x256xbf16, #tpu.memory_space<vmem>>, vector<1x128x256xbf16>
    %3 = vector.shape_cast %2 : vector<1x128x256xbf16> to vector<128x256xbf16>
    %cst = arith.constant dense<0.000000e+00> : vector<128x256xf32>
    %4 = tpu.matmul %1, %3, %cst {dimension_numbers = #tpu.dot_dimension_numbers<[1], [0], [0], [1], [0, 0, 1, 1], [], []>} : vector<128x128xbf16>, vector<128x256xbf16>, vector<128x256xf32> -> vector<128x256xf32>
    %c0_4 = arith.constant 0 : index
    %c0_5 = arith.constant 0 : index
    %c0_6 = arith.constant 0 : index
    %5 = vector.load %arg3[%c0_4, %c0_5, %c0_6] : memref<2x1x256xf32, #tpu.memory_space<vmem>>, vector<1x1x256xf32>
    %6 = vector.shape_cast %5 : vector<1x1x256xf32> to vector<1x256xf32>
    %7 = vector.broadcast %6 : vector<1x256xf32> to vector<128x256xf32>
    %8 = arith.addf %4, %7 : vector<128x256xf32>
    %cst_7 = arith.constant 0.000000e+00 : f32
    %9 = vector.broadcast %cst_7 : f32 to vector<128x256xf32>
    %10 = arith.maximumf %8, %9 : vector<128x256xf32>
    %11 = arith.truncf %10 : vector<128x256xf32> to vector<128x256xbf16>
    %c0_8 = arith.constant 0 : index
    %c0_9 = arith.constant 0 : index
    %c0_10 = arith.constant 0 : index
    %12 = vector.load %arg4[%c0_8, %c0_9, %c0_10] : memref<2x256x128xbf16, #tpu.memory_space<vmem>>, vector<1x256x128xbf16>
    %13 = vector.shape_cast %12 : vector<1x256x128xbf16> to vector<256x128xbf16>
    %cst_11 = arith.constant dense<0.000000e+00> : vector<128x128xf32>
    %14 = tpu.matmul %11, %13, %cst_11 {dimension_numbers = #tpu.dot_dimension_numbers<[1], [0], [0], [1], [0, 0, 1, 1], [], []>} : vector<128x256xbf16>, vector<256x128xbf16>, vector<128x128xf32> -> vector<128x128xf32>
    %c0_12 = arith.constant 0 : index
    %c0_13 = arith.constant 0 : index
    %c0_14 = arith.constant 0 : index
    %15 = vector.load %arg5[%c0_12, %c0_13, %c0_14] : memref<2x1x128xf32, #tpu.memory_space<vmem>>, vector<1x1x128xf32>
    %16 = vector.shape_cast %15 : vector<1x1x128xf32> to vector<1x128xf32>
    %17 = vector.broadcast %16 : vector<1x128xf32> to vector<128x128xf32>
    %18 = arith.addf %14, %17 : vector<128x128xf32>
    %19 = arith.addf %18, %0 : vector<128x128xf32>
    %cst_15 = arith.constant dense<0.000000e+00> : vector<128xf32>
    %20 = vector.multi_reduction <add>, %19, %cst_15 [1] : vector<128x128xf32> to vector<128xf32>
    %21 = vector.shape_cast %20 : vector<128xf32> to vector<128x1xf32>
    %cst_16 = arith.constant 7.812500e-03 : f32
    %22 = vector.broadcast %cst_16 : f32 to vector<128x1xf32>
    %23 = arith.mulf %21, %22 : vector<128x1xf32>
    %24 = arith.mulf %19, %19 : vector<128x128xf32>
    %cst_17 = arith.constant dense<0.000000e+00> : vector<128xf32>
    %25 = vector.multi_reduction <add>, %24, %cst_17 [1] : vector<128x128xf32> to vector<128xf32>
    %26 = vector.shape_cast %25 : vector<128xf32> to vector<128x1xf32>
    %cst_18 = arith.constant 7.812500e-03 : f32
    %27 = vector.broadcast %cst_18 : f32 to vector<128x1xf32>
    %28 = arith.mulf %26, %27 : vector<128x1xf32>
    %29 = arith.mulf %23, %23 : vector<128x1xf32>
    %30 = arith.subf %28, %29 : vector<128x1xf32>
    %31 = vector.broadcast %23 : vector<128x1xf32> to vector<128x128xf32>
    %32 = arith.subf %19, %31 : vector<128x128xf32>
    %cst_19 = arith.constant 9.99999974E-6 : f32
    %33 = vector.broadcast %cst_19 : f32 to vector<128x1xf32>
    %34 = arith.addf %30, %33 : vector<128x1xf32>
    %35 = math.rsqrt %34 : vector<128x1xf32>
    %36 = vector.broadcast %35 : vector<128x1xf32> to vector<128x128xf32>
    %37 = arith.mulf %32, %36 : vector<128x128xf32>
    %c0_20 = arith.constant 0 : index
    %c0_21 = arith.constant 0 : index
    %c0_22 = arith.constant 0 : index
    %38 = vector.load %arg6[%c0_20, %c0_21, %c0_22] : memref<2x1x128xf32, #tpu.memory_space<vmem>>, vector<1x1x128xf32>
    %39 = vector.shape_cast %38 : vector<1x1x128xf32> to vector<1x128xf32>
    %40 = vector.broadcast %39 : vector<1x128xf32> to vector<128x128xf32>
    %41 = arith.mulf %37, %40 : vector<128x128xf32>
    %c0_23 = arith.constant 0 : index
    %c0_24 = arith.constant 0 : index
    %c0_25 = arith.constant 0 : index
    %42 = vector.load %arg7[%c0_23, %c0_24, %c0_25] : memref<2x1x128xf32, #tpu.memory_space<vmem>>, vector<1x1x128xf32>
    %43 = vector.shape_cast %42 : vector<1x1x128xf32> to vector<1x128xf32>
    %44 = vector.broadcast %43 : vector<1x128xf32> to vector<128x128xf32>
    %45 = arith.addf %41, %44 : vector<128x128xf32>
    %46 = arith.truncf %45 : vector<128x128xf32> to vector<128x128xbf16>
    %c1 = arith.constant 1 : index
    %c0_26 = arith.constant 0 : index
    %c0_27 = arith.constant 0 : index
    %47 = vector.load %arg2[%c1, %c0_26, %c0_27] : memref<2x128x256xbf16, #tpu.memory_space<vmem>>, vector<1x128x256xbf16>
    %48 = vector.shape_cast %47 : vector<1x128x256xbf16> to vector<128x256xbf16>
    %cst_28 = arith.constant dense<0.000000e+00> : vector<128x256xf32>
    %49 = tpu.matmul %46, %48, %cst_28 {dimension_numbers = #tpu.dot_dimension_numbers<[1], [0], [0], [1], [0, 0, 1, 1], [], []>} : vector<128x128xbf16>, vector<128x256xbf16>, vector<128x256xf32> -> vector<128x256xf32>
    %c1_29 = arith.constant 1 : index
    %c0_30 = arith.constant 0 : index
    %c0_31 = arith.constant 0 : index
    %50 = vector.load %arg3[%c1_29, %c0_30, %c0_31] : memref<2x1x256xf32, #tpu.memory_space<vmem>>, vector<1x1x256xf32>
    %51 = vector.shape_cast %50 : vector<1x1x256xf32> to vector<1x256xf32>
    %52 = vector.broadcast %51 : vector<1x256xf32> to vector<128x256xf32>
    %53 = arith.addf %49, %52 : vector<128x256xf32>
    %cst_32 = arith.constant 0.000000e+00 : f32
    %54 = vector.broadcast %cst_32 : f32 to vector<128x256xf32>
    %55 = arith.maximumf %53, %54 : vector<128x256xf32>
    %56 = arith.truncf %55 : vector<128x256xf32> to vector<128x256xbf16>
    %c1_33 = arith.constant 1 : index
    %c0_34 = arith.constant 0 : index
    %c0_35 = arith.constant 0 : index
    %57 = vector.load %arg4[%c1_33, %c0_34, %c0_35] : memref<2x256x128xbf16, #tpu.memory_space<vmem>>, vector<1x256x128xbf16>
    %58 = vector.shape_cast %57 : vector<1x256x128xbf16> to vector<256x128xbf16>
    %cst_36 = arith.constant dense<0.000000e+00> : vector<128x128xf32>
    %59 = tpu.matmul %56, %58, %cst_36 {dimension_numbers = #tpu.dot_dimension_numbers<[1], [0], [0], [1], [0, 0, 1, 1], [], []>} : vector<128x256xbf16>, vector<256x128xbf16>, vector<128x128xf32> -> vector<128x128xf32>
    %c1_37 = arith.constant 1 : index
    %c0_38 = arith.constant 0 : index
    %c0_39 = arith.constant 0 : index
    %60 = vector.load %arg5[%c1_37, %c0_38, %c0_39] : memref<2x1x128xf32, #tpu.memory_space<vmem>>, vector<1x1x128xf32>
    %61 = vector.shape_cast %60 : vector<1x1x128xf32> to vector<1x128xf32>
    %62 = vector.broadcast %61 : vector<1x128xf32> to vector<128x128xf32>
    %63 = arith.addf %59, %62 : vector<128x128xf32>
    %64 = arith.addf %63, %45 : vector<128x128xf32>
    %cst_40 = arith.constant dense<0.000000e+00> : vector<128xf32>
    %65 = vector.multi_reduction <add>, %64, %cst_40 [1] : vector<128x128xf32> to vector<128xf32>
    %66 = vector.shape_cast %65 : vector<128xf32> to vector<128x1xf32>
    %cst_41 = arith.constant 7.812500e-03 : f32
    %67 = vector.broadcast %cst_41 : f32 to vector<128x1xf32>
    %68 = arith.mulf %66, %67 : vector<128x1xf32>
    %69 = arith.mulf %64, %64 : vector<128x128xf32>
    %cst_42 = arith.constant dense<0.000000e+00> : vector<128xf32>
    %70 = vector.multi_reduction <add>, %69, %cst_42 [1] : vector<128x128xf32> to vector<128xf32>
    %71 = vector.shape_cast %70 : vector<128xf32> to vector<128x1xf32>
    %cst_43 = arith.constant 7.812500e-03 : f32
    %72 = vector.broadcast %cst_43 : f32 to vector<128x1xf32>
    %73 = arith.mulf %71, %72 : vector<128x1xf32>
    %74 = arith.mulf %68, %68 : vector<128x1xf32>
    %75 = arith.subf %73, %74 : vector<128x1xf32>
    %76 = vector.broadcast %68 : vector<128x1xf32> to vector<128x128xf32>
    %77 = arith.subf %64, %76 : vector<128x128xf32>
    %cst_44 = arith.constant 9.99999974E-6 : f32
    %78 = vector.broadcast %cst_44 : f32 to vector<128x1xf32>
    %79 = arith.addf %75, %78 : vector<128x1xf32>
    %80 = math.rsqrt %79 : vector<128x1xf32>
    %81 = vector.broadcast %80 : vector<128x1xf32> to vector<128x128xf32>
    %82 = arith.mulf %77, %81 : vector<128x128xf32>
    %c1_45 = arith.constant 1 : index
    %c0_46 = arith.constant 0 : index
    %c0_47 = arith.constant 0 : index
    %83 = vector.load %arg6[%c1_45, %c0_46, %c0_47] : memref<2x1x128xf32, #tpu.memory_space<vmem>>, vector<1x1x128xf32>
    %84 = vector.shape_cast %83 : vector<1x1x128xf32> to vector<1x128xf32>
    %85 = vector.broadcast %84 : vector<1x128xf32> to vector<128x128xf32>
    %86 = arith.mulf %82, %85 : vector<128x128xf32>
    %c1_48 = arith.constant 1 : index
    %c0_49 = arith.constant 0 : index
    %c0_50 = arith.constant 0 : index
    %87 = vector.load %arg7[%c1_48, %c0_49, %c0_50] : memref<2x1x128xf32, #tpu.memory_space<vmem>>, vector<1x1x128xf32>
    %88 = vector.shape_cast %87 : vector<1x1x128xf32> to vector<1x128xf32>
    %89 = vector.broadcast %88 : vector<1x128xf32> to vector<128x128xf32>
    %90 = arith.addf %86, %89 : vector<128x128xf32>
    %c0_51 = arith.constant 0 : index
    %c0_52 = arith.constant 0 : index
    %91 = vector.load %arg8[%c0_51, %c0_52] : memref<128x128xf32, #tpu.memory_space<vmem>>, vector<128x128xf32>
    tpu.vector_store %arg8[%c0_51, %c0_52], %90 {strides = array<i32>} : memref<128x128xf32, #tpu.memory_space<vmem>>, vector<128x128xf32>,
    return
  }
  func.func @transform_0(%arg0: i32) -> (i32, i32) {
    %c0_i32 = arith.constant 0 : i32
    %c0_i32_0 = arith.constant 0 : i32
    return %arg0, %c0_i32 : i32, i32
  }
  func.func @transform_1(%arg0: i32) -> (i32, i32, i32) {
    %c0_i32 = arith.constant 0 : i32
    %c0_i32_0 = arith.constant 0 : i32
    %c0_i32_1 = arith.constant 0 : i32
    %c0_i32_2 = arith.constant 0 : i32
    return %c0_i32, %c0_i32_0, %c0_i32_1 : i32, i32, i32
  }
  func.func @transform_2(%arg0: i32) -> (i32, i32, i32) {
    %c0_i32 = arith.constant 0 : i32
    %c0_i32_0 = arith.constant 0 : i32
    %c0_i32_1 = arith.constant 0 : i32
    %c0_i32_2 = arith.constant 0 : i32
    return %c0_i32, %c0_i32_0, %c0_i32_1 : i32, i32, i32
  }
  func.func @transform_3(%arg0: i32) -> (i32, i32, i32) {
    %c0_i32 = arith.constant 0 : i32
    %c0_i32_0 = arith.constant 0 : i32
    %c0_i32_1 = arith.constant 0 : i32
    %c0_i32_2 = arith.constant 0 : i32
    return %c0_i32, %c0_i32_0, %c0_i32_1 : i32, i32, i32
  }
  func.func @transform_4(%arg0: i32) -> (i32, i32, i32) {
    %c0_i32 = arith.constant 0 : i32
    %c0_i32_0 = arith.constant 0 : i32
    %c0_i32_1 = arith.constant 0 : i32
    %c0_i32_2 = arith.constant 0 : i32
    return %c0_i32, %c0_i32_0, %c0_i32_1 : i32, i32, i32
  }
  func.func @transform_5(%arg0: i32) -> (i32, i32, i32) {
    %c0_i32 = arith.constant 0 : i32
    %c0_i32_0 = arith.constant 0 : i32
    %c0_i32_1 = arith.constant 0 : i32
    %c0_i32_2 = arith.constant 0 : i32
    return %c0_i32, %c0_i32_0, %c0_i32_1 : i32, i32, i32
  }
  func.func @transform_6(%arg0: i32) -> (i32, i32, i32) {
    %c0_i32 = arith.constant 0 : i32
    %c0_i32_0 = arith.constant 0 : i32
    %c0_i32_1 = arith.constant 0 : i32
    %c0_i32_2 = arith.constant 0 : i32
    return %c0_i32, %c0_i32_0, %c0_i32_1 : i32, i32, i32
  }
  func.func @transform_7(%arg0: i32) -> (i32, i32) {
    %c0_i32 = arith.constant 0 : i32
    %c0_i32_0 = arith.constant 0 : i32
    return %arg0, %c0_i32 : i32, i32
  }
}

module attributes {stable_mosaic.version = 11 : i64} {
  func.func @_backbone_fused_kernel(%arg0: i32, %arg1: memref<128x128xf32, #tpu.memory_space<vmem>>, %arg2: memref<2x128x256xbf16, #tpu.memory_space<vmem>>, %arg3: memref<2x1x256xf32, #tpu.memory_space<vmem>>, %arg4: memref<2x256x128xbf16, #tpu.memory_space<vmem>>, %arg5: memref<2x1x128xf32, #tpu.memory_space<vmem>>, %arg6: memref<2x1x128xf32, #tpu.memory_space<vmem>>, %arg7: memref<2x1x128xf32, #tpu.memory_space<vmem>>, %arg8: memref<128x128xf32, #tpu.memory_space<vmem>>) attributes {dimension_semantics = [#tpu.dimension_semantics<parallel>], iteration_bounds = array<i64: 1>, scalar_prefetch = 0 : i64, scratch_operands = 0 : i64, tpu.core_type = #tpu.core_type<tc>, window_params = [{transform_indices = @transform_0, window_bounds = array<i64: 128, 128>}, {pipeline_mode = #tpu.pipeline_mode<synchronous>, transform_indices = @transform_1, window_bounds = array<i64: 2, 128, 256>}, {pipeline_mode = #tpu.pipeline_mode<synchronous>, transform_indices = @transform_2, window_bounds = array<i64: 2, 1, 256>}, {pipeline_mode = #tpu.pipeline_mode<synchronous>, transform_indices = @transform_3, window_bounds = array<i64: 2, 256, 128>}, {pipeline_mode = #tpu.pipeline_mode<synchronous>, transform_indices = @transform_4, window_bounds = array<i64: 2, 1, 128>}, {pipeline_mode = #tpu.pipeline_mode<synchronous>, transform_indices = @transform_5, window_bounds = array<i64: 2, 1, 128>}, {pipeline_mode = #tpu.pipeline_mode<synchronous>, transform_indices = @transform_6, window_bounds = array<i64: 2, 1, 128>}, {transform_indices = @transform_7, window_bounds = array<i64: 128, 128>}]} {
    %c0 = arith.constant 0 : index
    %c0_0 = arith.constant 0 : index
    %0 = vector.load %arg1[%c0, %c0_0] : memref<128x128xf32, #tpu.memory_space<vmem>>, vector<128x128xf32>
    %1 = arith.truncf %0 : vector<128x128xf32> to vector<128x128xbf16>
    %c0_1 = arith.constant 0 : index
    %c0_2 = arith.constant 0 : index
    %c0_3 = arith.constant 0 : index
    %2 = vector.load %arg2[%c0_1, %c0_2, %c0_3] : memref<2x128x256xbf16, #tpu.memory_space<vmem>>, vector<1x128x256xbf16>
    %3 = vector.shape_cast %2 : vector<1x128x256xbf16> to vector<128x256xbf16>
    %cst = arith.constant dense<0.000000e+00> : vector<128x256xf32>
    %4 = tpu.matmul %1, %3, %cst {dimension_numbers = #tpu.dot_dimension_numbers<[1], [0], [0], [1], [0, 0, 1, 1], [], []>} : vector<128x128xbf16>, vector<128x256xbf16>, vector<128x256xf32> -> vector<128x256xf32>
    %c0_4 = arith.constant 0 : index
    %c0_5 = arith.constant 0 : index
    %c0_6 = arith.constant 0 : index
    %5 = vector.load %arg3[%c0_4, %c0_5, %c0_6] : memref<2x1x256xf32, #tpu.memory_space<vmem>>, vector<1x1x256xf32>
    %6 = vector.shape_cast %5 : vector<1x1x256xf32> to vector<1x256xf32>
    %7 = vector.broadcast %6 : vector<1x256xf32> to vector<128x256xf32>
    %8 = arith.addf %4, %7 : vector<128x256xf32>
    %cst_7 = arith.constant 0.000000e+00 : f32
    %9 = vector.broadcast %cst_7 : f32 to vector<128x256xf32>
    %10 = arith.maximumf %8, %9 : vector<128x256xf32>
    %11 = arith.truncf %10 : vector<128x256xf32> to vector<128x256xbf16>
    %c0_8 = arith.constant 0 : index
    %c0_9 = arith.constant 0 : index
    %c0_10 = arith.constant 0 : index
    %12 = vector.load %arg4[%c0_8, %c0_9, %c0_10] : memref<2x256x128xbf16, #tpu.memory_space<vmem>>, vector<1x256x128xbf16>
    %13 = vector.shape_cast %12 : vector<1x256x128xbf16> to vector<256x128xbf16>
    %cst_11 = arith.constant dense<0.000000e+00> : vector<128x128xf32>
    %14 = tpu.matmul %11, %13, %cst_11 {dimension_numbers = #tpu.dot_dimension_numbers<[1], [0], [0], [1], [0, 0, 1, 1], [], []>} : vector<128x256xbf16>, vector<256x128xbf16>, vector<128x128xf32> -> vector<128x128xf32>
    %c0_12 = arith.constant 0 : index
    %c0_13 = arith.constant 0 : index
    %c0_14 = arith.constant 0 : index
    %15 = vector.load %arg5[%c0_12, %c0_13, %c0_14] : memref<2x1x128xf32, #tpu.memory_space<vmem>>, vector<1x1x128xf32>
    %16 = vector.shape_cast %15 : vector<1x1x128xf32> to vector<1x128xf32>
    %17 = vector.broadcast %16 : vector<1x128xf32> to vector<128x128xf32>
    %18 = arith.addf %14, %17 : vector<128x128xf32>
    %19 = arith.addf %18, %0 : vector<128x128xf32>
    %cst_15 = arith.constant dense<0.000000e+00> : vector<128xf32>
    %20 = vector.multi_reduction <add>, %19, %cst_15 [1] : vector<128x128xf32> to vector<128xf32>
    %21 = vector.shape_cast %20 : vector<128xf32> to vector<128x1xf32>
    %cst_16 = arith.constant 7.812500e-03 : f32
    %22 = vector.broadcast %cst_16 : f32 to vector<128x1xf32>
    %23 = arith.mulf %21, %22 : vector<128x1xf32>
    %24 = arith.mulf %19, %19 : vector<128x128xf32>
    %cst_17 = arith.constant dense<0.000000e+00> : vector<128xf32>
    %25 = vector.multi_reduction <add>, %24, %cst_17 [1] : vector<128x128xf32> to vector<128xf32>
    %26 = vector.shape_cast %25 : vector<128xf32> to vector<128x1xf32>
    %cst_18 = arith.constant 7.812500e-03 : f32
    %27 = vector.broadcast %cst_18 : f32 to vector<128x1xf32>
    %28 = arith.mulf %26, %27 : vector<128x1xf32>
    %29 = arith.mulf %23, %23 : vector<128x1xf32>
    %30 = arith.subf %28, %29 : vector<128x1xf32>
    %31 = vector.broadcast %23 : vector<128x1xf32> to vector<128x128xf32>
    %32 = arith.subf %19, %31 : vector<128x128xf32>
    %cst_19 = arith.constant 9.99999974E-6 : f32
    %33 = vector.broadcast %cst_19 : f32 to vector<128x1xf32>
    %34 = arith.addf %30, %33 : vector<128x1xf32>
    %35 = math.rsqrt %34 : vector<128x1xf32>
    %36 = vector.broadcast %35 : vector<128x1xf32> to vector<128x128xf32>
    %37 = arith.mulf %32, %36 : vector<128x128xf32>
    %c0_20 = arith.constant 0 : index
    %c0_21 = arith.constant 0 : index
    %c0_22 = arith.constant 0 : index
    %38 = vector.load %arg6[%c0_20, %c0_21, %c0_22] : memref<2x1x128xf32, #tpu.memory_space<vmem>>, vector<1x1x128xf32>
    %39 = vector.shape_cast %38 : vector<1x1x128xf32> to vector<1x128xf32>
    %40 = vector.broadcast %39 : vector<1x128xf32> to vector<128x128xf32>
    %41 = arith.mulf %37, %40 : vector<128x128xf32>
    %c0_23 = arith.constant 0 : index
    %c0_24 = arith.constant 0 : index
    %c0_25 = arith.constant 0 : index
    %42 = vector.load %arg7[%c0_23, %c0_24, %c0_25] : memref<2x1x128xf32, #tpu.memory_space<vmem>>, vector<1x1x128xf32>
    %43 = vector.shape_cast %42 : vector<1x1x128xf32> to vector<1x128xf32>
    %44 = vector.broadcast %43 : vector<1x128xf32> to vector<128x128xf32>
    %45 = arith.addf %41, %44 : vector<128x128xf32>
    %46 = arith.truncf %45 : vector<128x128xf32> to vector<128x128xbf16>
    %c1 = arith.constant 1 : index
    %c0_26 = arith.constant 0 : index
    %c0_27 = arith.constant 0 : index
    %47 = vector.load %arg2[%c1, %c0_26, %c0_27] : memref<2x128x256xbf16, #tpu.memory_space<vmem>>, vector<1x128x256xbf16>
    %48 = vector.shape_cast %47 : vector<1x128x256xbf16> to vector<128x256xbf16>
    %cst_28 = arith.constant dense<0.000000e+00> : vector<128x256xf32>
    %49 = tpu.matmul %46, %48, %cst_28 {dimension_numbers = #tpu.dot_dimension_numbers<[1], [0], [0], [1], [0, 0, 1, 1], [], []>} : vector<128x128xbf16>, vector<128x256xbf16>, vector<128x256xf32> -> vector<128x256xf32>
    %c1_29 = arith.constant 1 : index
    %c0_30 = arith.constant 0 : index
    %c0_31 = arith.constant 0 : index
    %50 = vector.load %arg3[%c1_29, %c0_30, %c0_31] : memref<2x1x256xf32, #tpu.memory_space<vmem>>, vector<1x1x256xf32>
    %51 = vector.shape_cast %50 : vector<1x1x256xf32> to vector<1x256xf32>
    %52 = vector.broadcast %51 : vector<1x256xf32> to vector<128x256xf32>
    %53 = arith.addf %49, %52 : vector<128x256xf32>
    %cst_32 = arith.constant 0.000000e+00 : f32
    %54 = vector.broadcast %cst_32 : f32 to vector<128x256xf32>
    %55 = arith.maximumf %53, %54 : vector<128x256xf32>
    %56 = arith.truncf %55 : vector<128x256xf32> to vector<128x256xbf16>
    %c1_33 = arith.constant 1 : index
    %c0_34 = arith.constant 0 : index
    %c0_35 = arith.constant 0 : index
    %57 = vector.load %arg4[%c1_33, %c0_34, %c0_35] : memref<2x256x128xbf16, #tpu.memory_space<vmem>>, vector<1x256x128xbf16>
    %58 = vector.shape_cast %57 : vector<1x256x128xbf16> to vector<256x128xbf16>
    %cst_36 = arith.constant dense<0.000000e+00> : vector<128x128xf32>
    %59 = tpu.matmul %56, %58, %cst_36 {dimension_numbers = #tpu.dot_dimension_numbers<[1], [0], [0], [1], [0, 0, 1, 1], [], []>} : vector<128x256xbf16>, vector<256x128xbf16>, vector<128x128xf32> -> vector<128x128xf32>
    %c1_37 = arith.constant 1 : index
    %c0_38 = arith.constant 0 : index
    %c0_39 = arith.constant 0 : index
    %60 = vector.load %arg5[%c1_37, %c0_38, %c0_39] : memref<2x1x128xf32, #tpu.memory_space<vmem>>, vector<1x1x128xf32>
    %61 = vector.shape_cast %60 : vector<1x1x128xf32> to vector<1x128xf32>
    %62 = vector.broadcast %61 : vector<1x128xf32> to vector<128x128xf32>
    %63 = arith.addf %59, %62 : vector<128x128xf32>
    %64 = arith.addf %63, %45 : vector<128x128xf32>
    %cst_40 = arith.constant dense<0.000000e+00> : vector<128xf32>
    %65 = vector.multi_reduction <add>, %64, %cst_40 [1] : vector<128x128xf32> to vector<128xf32>
    %66 = vector.shape_cast %65 : vector<128xf32> to vector<128x1xf32>
    %cst_41 = arith.constant 7.812500e-03 : f32
    %67 = vector.broadcast %cst_41 : f32 to vector<128x1xf32>
    %68 = arith.mulf %66, %67 : vector<128x1xf32>
    %69 = arith.mulf %64, %64 : vector<128x128xf32>
    %cst_42 = arith.constant dense<0.000000e+00> : vector<128xf32>
    %70 = vector.multi_reduction <add>, %69, %cst_42 [1] : vector<128x128xf32> to vector<128xf32>
    %71 = vector.shape_cast %70 : vector<128xf32> to vector<128x1xf32>
    %cst_43 = arith.constant 7.812500e-03 : f32
    %72 = vector.broadcast %cst_43 : f32 to vector<128x1xf32>
    %73 = arith.mulf %71, %72 : vector<128x1xf32>
    %74 = arith.mulf %68, %68 : vector<128x1xf32>
    %75 = arith.subf %73, %74 : vector<128x1xf32>
    %76 = vector.broadcast %68 : vector<128x1xf32> to vector<128x128xf32>
    %77 = arith.subf %64, %76 : vector<128x128xf32>
    %cst_44 = arith.constant 9.99999974E-6 : f32
    %78 = vector.broadcast %cst_44 : f32 to vector<128x1xf32>
    %79 = arith.addf %75, %78 : vector<128x1xf32>
    %80 = math.rsqrt %79 : vector<128x1xf32>
    %81 = vector.broadcast %80 : vector<128x1xf32> to vector<128x128xf32>
    %82 = arith.mulf %77, %81 : vector<128x128xf32>
    %c1_45 = arith.constant 1 : index
    %c0_46 = arith.constant 0 : index
    %c0_47 = arith.constant 0 : index
    %83 = vector.load %arg6[%c1_45, %c0_46, %c0_47] : memref<2x1x128xf32, #tpu.memory_space<vmem>>, vector<1x1x128xf32>
    %84 = vector.shape_cast %83 : vector<1x1x128xf32> to vector<1x128xf32>
    %85 = vector.broadcast %84 : vector<1x128xf32> to vector<128x128xf32>
    %86 = arith.mulf %82, %85 : vector<128x128xf32>
    %c1_48 = arith.constant 1 : index
    %c0_49 = arith.constant 0 : index
    %c0_50 = arith.constant 0 : index
    %87 = vector.load %arg7[%c1_48, %c0_49, %c0_50] : memref<2x1x128xf32, #tpu.memory_space<vmem>>, vector<1x1x128xf32>
    %88 = vector.shape_cast %87 : vector<1x1x128xf32> to vector<1x128xf32>
    %89 = vector.broadcast %88 : vector<1x128xf32> to vector<128x128xf32>
    %90 = arith.addf %86, %89 : vector<128x128xf32>
    %c0_51 = arith.constant 0 : index
    %c0_52 = arith.constant 0 : index
    %91 = vector.load %arg8[%c0_51, %c0_52] : memref<128x128xf32, #tpu.memory_space<vmem>>, vector<128x128xf32>
    tpu.vector_store %arg8[%c0_51, %c0_52], %90 {strides = array<i32>} : memref<128x128xf32, #tpu.memory_space<vmem>>, vector<128x128xf32>,
    return
  }
  func.func @transform_0(%arg0: i32) -> (i32, i32) {
    %c0_i32 = arith.constant 0 : i32
    %c0_i32_0 = arith.constant 0 : i32
    return %arg0, %c0_i32 : i32, i32
  }
  func.func @transform_1(%arg0: i32) -> (i32, i32, i32) {
    %c0_i32 = arith.constant 0 : i32
    %c0_i32_0 = arith.constant 0 : i32
    %c0_i32_1 = arith.constant 0 : i32
    %c0_i32_2 = arith.constant 0 : i32
    return %c0_i32, %c0_i32_0, %c0_i32_1 : i32, i32, i32
  }
  func.func @transform_2(%arg0: i32) -> (i32, i32, i32) {
    %c0_i32 = arith.constant 0 : i32
    %c0_i32_0 = arith.constant 0 : i32
    %c0_i32_1 = arith.constant 0 : i32
    %c0_i32_2 = arith.constant 0 : i32
    return %c0_i32, %c0_i32_0, %c0_i32_1 : i32, i32, i32
  }
  func.func @transform_3(%arg0: i32) -> (i32, i32, i32) {
    %c0_i32 = arith.constant 0 : i32
    %c0_i32_0 = arith.constant 0 : i32
    %c0_i32_1 = arith.constant 0 : i32
    %c0_i32_2 = arith.constant 0 : i32
    return %c0_i32, %c0_i32_0, %c0_i32_1 : i32, i32, i32
  }
  func.func @transform_4(%arg0: i32) -> (i32, i32, i32) {
    %c0_i32 = arith.constant 0 : i32
    %c0_i32_0 = arith.constant 0 : i32
    %c0_i32_1 = arith.constant 0 : i32
    %c0_i32_2 = arith.constant 0 : i32
    return %c0_i32, %c0_i32_0, %c0_i32_1 : i32, i32, i32
  }
  func.func @transform_5(%arg0: i32) -> (i32, i32, i32) {
    %c0_i32 = arith.constant 0 : i32
    %c0_i32_0 = arith.constant 0 : i32
    %c0_i32_1 = arith.constant 0 : i32
    %c0_i32_2 = arith.constant 0 : i32
    return %c0_i32, %c0_i32_0, %c0_i32_1 : i32, i32, i32
  }
  func.func @transform_6(%arg0: i32) -> (i32, i32, i32) {
    %c0_i32 = arith.constant 0 : i32
    %c0_i32_0 = arith.constant 0 : i32
    %c0_i32_1 = arith.constant 0 : i32
    %c0_i32_2 = arith.constant 0 : i32
    return %c0_i32, %c0_i32_0, %c0_i32_1 : i32, i32, i32
  }
  func.func @transform_7(%arg0: i32) -> (i32, i32) {
    %c0_i32 = arith.constant 0 : i32
    %c0_i32_0 = arith.constant 0 : i32
    return %arg0, %c0_i32 : i32, i32
  }
}

</mosaic_0001>

<bundles_post_ra>
// kernel: tpu_custom_call.1
= control target key start
LH: loop header
LB: loop body
LE: loop exit
PB: predicated region body
PF: predicated region fallthrough
CT: control target
= control target key end

     0   :  { %12 = vsyncpa [#allocation3], 0  ;;  %s2945_s0 = inlined_call_operand.hbm [shape: f32[128,128], index: 0, kind: input, shape index: {}, may-alias: {0,7}]   ;;  %s2946_s1 = inlined_call_operand.vmem [shape: bf16[2,128,256], index: 1, kind: input, shape index: {}]   ;;  %s2947_s2 = inlined_call_operand.vmem [shape: f32[2,1,256], index: 2, kind: input, shape index: {}]   ;;  %s2948_s3 = inlined_call_operand.hbm [shape: bf16[2,256,128], index: 3, kind: input, shape index: {}]   ;;  %s2949_s4 = inlined_call_operand.vmem [shape: f32[2,1,128], index: 4, kind: input, shape index: {}]   ;;  %s2950_s5 = inlined_call_operand.vmem [shape: f32[2,1,128], index: 5, kind: input, shape index: {}]   ;;  %s2951_s6 = inlined_call_operand.vmem [shape: f32[2,1,128], index: 6, kind: input, shape index: {}]   ;;  %s2952_s7 = inlined_call_operand.hbm [shape: f32[128,128], index: 7, kind: output, shape index: {}, may-alias: {0,7}]  }
   0x1   :  { %13 = vsyncpa [#allocation6], 0 }
   0x2   :  { %14 = vsyncpa [#allocation4], 0  ;;  %s2112_s24 = smov [#allocation2]   ;;  %s2040_s28 = scalar_lea.hbm %s2945_s0, 2048 }
   0x3   :  { %s20_s25 = sshll.u32 %s2112_s24, 4  ;;  %p2041_p0 = scmp.ne.s32.totalorder %s2945_s0, %s2040_s28  ;;  %s21_s25 = int_to_ptr.vmem [resolvable:$true] %s20_s25 }
   0x4   :  { %p2044_p1 = scmp.lt.u32.totalorder %s2040_s28, %s2945_s0 }
   0x6   :  { %p2046_p2 = pnand %p2044_p1, %p2041_p0 }
   0x8   :  { %2049 = shalt.err (!%p2046_p2)
}
   0x9   :  { %s2050_s10 = scalar_lea.vmem %s21_s25, 2048  ;;  %p2055_p4 = scmp.lt.s32.totalorder %s21_s25, %s21_s25 }
   0xa   :  { %p2051_p3 = scmp.ne.s32.totalorder %s21_s25, %s2050_s10  ;;  %p2056_p5 = scmp.lt.s32.totalorder %s2050_s10, %s2050_s10 }
   0xc   :  { %p2057_p6 = por %p2056_p5, %p2055_p4 }
   0xe   :  { %p2058_p7 = pnand %p2057_p6, %p2051_p3 }
  0x10   :  { %2061 = shalt.err (!%p2058_p7)
}
  0x11   :  { %s2113_s11 = smov 128   ;;  %s2114_s12 = smov 8  }
  0x12   :  { %26 = dma.hbm_to_vmem [thread:$0]  %s2945_s0, 2048, %s21_s25, [#allocation3], %s2113_s11, %s2113_s11, %s2114_s12  }
  0x13   :  { %s2115_s15 = smov [#allocation5]   ;;  %s2062_s19 = scalar_lea.hbm %s2948_s3, 4096 }
  0x14   :  { %s36_s16 = sshll.u32 %s2115_s15, 4  ;;  %p2063_p8 = scmp.ne.s32.totalorder %s2948_s3, %s2062_s19  ;;  %s37_s16 = int_to_ptr.vmem [resolvable:$true] %s36_s16 }
  0x15   :  { %p2066_p9 = scmp.lt.u32.totalorder %s2062_s19, %s2948_s3 }
  0x17   :  { %p2068_p10 = pnand %p2066_p9, %p2063_p8 }
  0x19   :  { %2071 = shalt.err (!%p2068_p10)
}
  0x1a   :  { %s2072_s24 = scalar_lea.vmem %s37_s16, 4096  ;;  %p2077_p12 = scmp.lt.s32.totalorder %s37_s16, %s37_s16 }
  0x1b   :  { %p2073_p11 = scmp.ne.s32.totalorder %s37_s16, %s2072_s24  ;;  %p2078_p13 = scmp.lt.s32.totalorder %s2072_s24, %s2072_s24 }
  0x1d   :  { %p2079_p0 = por %p2078_p13, %p2077_p12 }
  0x1f   :  { %p2080_p1 = pnand %p2079_p0, %p2073_p11 }
  0x21   :  { %2083 = shalt.err (!%p2080_p1)
}
  0x22   :  { %s2116_s0 = smov 64   ;;  %s2117_s25 = smov 4  }
  0x23   :  { %42 = dma.hbm_to_vmem [thread:$0]  %s2948_s3, 4096, %s37_s16, [#allocation6], %s2116_s0, %s2116_s0, %s2117_s25  }
  0x24   :  { %2106 = dma.done.wait [#allocation3], 2048  }
  0x25   :  { %2107 = vsyncadd [#allocation3], 4294965248 }
  0x26   :  { %2108 = dma.done.wait [#allocation6], 4096  }
  0x27   :  { %2109 = vsyncadd [#allocation6], 4294963200  ;;  %v2118_v0 = vmov 0   ;;  %v1896_v1 = vld [vmem:[%s2946_s1 + $0x4] ss:$8 sps:$4 sm:$0xff]   ;;  %v1924_v18 = vld [vmem:[#allocation5 + $0x50] sm:$0xff]   ;;  %v98_v57 = vlaneseq }
  0x28   :  { %220 = vmatprep.mubr.bf16.mxu0 %v2118_v0  ;;  %v1898_v2 = vld [vmem:[%s2946_s1] ss:$8 sps:$4 sm:$0xff]   ;;  %188 = vmatprep.subr.bf16.mxu0 %v1896_v1  ;;  %v1899_v3 = vld [vmem:[%s2946_s1 + $0x14] ss:$8 sps:$4 sm:$0xff]   ;;  %v1901_v4 = vld [vmem:[%s2946_s1 + $0x10] ss:$8 sps:$4 sm:$0xff]  }
  0x29   :  { %189 = vmatpush1.bf16.msra.mxu0 %v1898_v2  ;;  %v1902_v5 = vld [vmem:[%s2946_s1 + $0x24] ss:$8 sps:$4 sm:$0xff]   ;;  %v1904_v6 = vld [vmem:[%s2946_s1 + $0x20] ss:$8 sps:$4 sm:$0xff]   ;;  %v1905_v7 = vld [vmem:[%s2946_s1 + $0x34] ss:$8 sps:$4 sm:$0xff]  }
  0x2a   :  { %190 = vmatprep.subr.bf16.mxu0 %v1899_v3  ;;  %v1907_v8 = vld [vmem:[%s2946_s1 + $0x30] ss:$8 sps:$4 sm:$0xff]   ;;  %v1908_v9 = vld [vmem:[%s2946_s1 + $0x44] ss:$8 sps:$4 sm:$0xff]   ;;  %v1910_v10 = vld [vmem:[%s2946_s1 + $0x40] ss:$8 sps:$4 sm:$0xff]  }
  0x2b   :  { %v1911_v11 = vld [vmem:[%s2946_s1 + $0x54] ss:$8 sps:$4 sm:$0xff]   ;;  %v1920_v12 = vld [vmem:[#allocation5 + $0x40] sm:$0xff]   ;;  %v1913_v13 = vld [vmem:[%s2946_s1 + $0x50] ss:$8 sps:$4 sm:$0xff]   ;;  %v2292_v58 = vshrl.u32 %v98_v57, 7 }
  0x2c   :  { %v1921_v14 = vld [vmem:[#allocation5] sm:$0xff]   ;;  %1760 = vmatprep.subr.bf16.mxu1 %v1920_v12  ;;  %v1922_v16 = vld [vmem:[#allocation5 + $0x48] sm:$0xff]   ;;  %v1917_v20 = vld [vmem:[%s2946_s1 + $0x74] ss:$8 sps:$4 sm:$0xff]  }
  0x2d   :  { %191 = vmatpush1.bf16.msra.mxu0 %v1901_v4  ;;  %v1914_v15 = vld [vmem:[%s2946_s1 + $0x64] ss:$8 sps:$4 sm:$0xff]   ;;  %1761 = vmatpush3.bf16.msra.mxu1 %v1921_v14  ;;  %v1916_v19 = vld [vmem:[%s2946_s1 + $0x60] ss:$8 sps:$4 sm:$0xff]   ;;  %v1925_v21 = vld [vmem:[#allocation5 + $0x10] sm:$0xff]   ;;  %v100_v59 = vsub.s32 0, %v2292_v58 }
  0x2e   :  { %192 = vmatprep.subr.bf16.mxu0 %v1902_v5  ;;  %v1923_v17 = vld [vmem:[#allocation5 + $0x8] sm:$0xff]   ;;  %1762 = vmatprep.subr.bf16.mxu1 %v1922_v16  ;;  %v1926_v22 = vld [vmem:[#allocation5 + $0x58] sm:$0xff]   ;;  %v2236_v24 = vld [vmem:[#allocation2] sm:$0xff]  ;;  %v104_v61 = vsub.s32 1, %v2292_v58 }
  0x2f   :  { %v1919_v23 = vld [vmem:[%s2946_s1 + $0x70] ss:$8 sps:$4 sm:$0xff]   ;;  %v2238_v25 = vld [vmem:[#allocation2 + $0x8] sm:$0xff]  ;;  %v1928_v27 = vld [vmem:[#allocation5 + $0x60] sm:$0xff]  }
  0x30   :  { %v1927_v26 = vld [vmem:[#allocation5 + $0x18] sm:$0xff]   ;;  %v1929_v28 = vld [vmem:[#allocation5 + $0x20] sm:$0xff]   ;;  %v72_v29 = vpack.c.bf16 %v2238_v25, %v2236_v24  ;;  %v1930_v30 = vld [vmem:[#allocation5 + $0x68] sm:$0xff]  }
  0x31   :  { %193 = vmatpush1.bf16.msra.mxu0 %v1904_v6  ;;  %1763 = vmatpush3.bf16.msra.mxu1 %v1923_v17  ;;  %v2242_v31 = vld [vmem:[#allocation2 + $0x10] sm:$0xff]  ;;  %v2244_v32 = vld [vmem:[#allocation2 + $0x18] sm:$0xff]  ;;  %v2249_v34 = vld [vmem:[#allocation2 + $0x20] sm:$0xff] }
  0x32   :  { %194 = vmatprep.subr.bf16.mxu0 %v1905_v7  ;;  %1764 = vmatprep.subr.bf16.mxu1 %v1924_v18  ;;  %v73_v33 = vpack.c.bf16 %v2244_v32, %v2242_v31  ;;  %v2251_v35 = vld [vmem:[#allocation2 + $0x28] sm:$0xff]  ;;  %v2257_v37 = vld [vmem:[#allocation2 + $0x30] sm:$0xff]  ;;  %v2259_v38 = vld [vmem:[#allocation2 + $0x38] sm:$0xff] }
  0x33   :  { %v74_v36 = vpack.c.bf16 %v2251_v35, %v2249_v34  ;;  %v75_v39 = vpack.c.bf16 %v2259_v38, %v2257_v37  ;;  %v2264_v40 = vld [vmem:[#allocation2 + $0x40] sm:$0xff]  ;;  %v2266_v41 = vld [vmem:[#allocation2 + $0x48] sm:$0xff]  ;;  %v2271_v43 = vld [vmem:[#allocation2 + $0x50] sm:$0xff] }
  0x34   :  { %v76_v42 = vpack.c.bf16 %v2266_v41, %v2264_v40  ;;  %v2273_v44 = vld [vmem:[#allocation2 + $0x58] sm:$0xff]  ;;  %v2278_v46 = vld [vmem:[#allocation2 + $0x60] sm:$0xff]  ;;  %v2280_v47 = vld [vmem:[#allocation2 + $0x68] sm:$0xff] }
  0x35   :  { %195 = vmatpush1.bf16.msra.mxu0 %v1907_v8  ;;  %1765 = vmatpush3.bf16.msra.mxu1 %v1925_v21  ;;  %v77_v45 = vpack.c.bf16 %v2273_v44, %v2271_v43  ;;  %v78_v48 = vpack.c.bf16 %v2280_v47, %v2278_v46  ;;  %v2285_v49 = vld [vmem:[#allocation2 + $0x70] sm:$0xff]  ;;  %v2287_v50 = vld [vmem:[#allocation2 + $0x78] sm:$0xff]  ;;  %v1931_v52 = vld [vmem:[#allocation5 + $0x28] sm:$0xff]  }
  0x36   :  { %196 = vmatprep.subr.bf16.mxu0 %v1908_v9  ;;  %1766 = vmatprep.subr.bf16.mxu1 %v1926_v22  ;;  %v79_v51 = vpack.c.bf16 %v2287_v50, %v2285_v49  ;;  %v1932_v53 = vld [vmem:[#allocation5 + $0x70] sm:$0xff]   ;;  %v1934_v55 = vld [vmem:[#allocation5 + $0x78] sm:$0xff]   ;;  %v96_v60 = vld [vmem:[%s2947_s2] sm:$0x3] }
  0x37   :  { %v1933_v54 = vld [vmem:[#allocation5 + $0x30] sm:$0xff]   ;;  %v1935_v56 = vld [vmem:[#allocation5 + $0x38] sm:$0xff]   ;;  %v2301_v62 = vrot.slane %v96_v60, %v100_v59  ;;  %v2305_v63 = vrot.slane %v96_v60, %v104_v61 }
  0x39   :  { %197 = vmatpush1.bf16.msra.mxu0 %v1910_v10  ;;  %1767 = vmatpush3.bf16.msra.mxu1 %v1927_v26 }
  0x3a   :  { %198 = vmatprep.subr.bf16.mxu0 %v1911_v11  ;;  %1768 = vmatprep.subr.bf16.mxu1 %v1928_v27 }
  0x3d   :  { %199 = vmatpush1.bf16.msra.mxu0 %v1913_v13  ;;  %1769 = vmatpush3.bf16.msra.mxu1 %v1929_v28 }
  0x3e   :  { %200 = vmatprep.subr.bf16.mxu0 %v1914_v15  ;;  %1770 = vmatprep.subr.bf16.mxu1 %v1930_v30 }
  0x41   :  { %201 = vmatpush1.bf16.msra.mxu0 %v1916_v19  ;;  %1771 = vmatpush3.bf16.msra.mxu1 %v1931_v52 }
  0x42   :  { %202 = vmatprep.subr.bf16.mxu0 %v1917_v20  ;;  %1772 = vmatprep.subr.bf16.mxu1 %v1932_v53 }
  0x45   :  { %203 = vmatpush1.bf16.msra.mxu0 %v1919_v23  ;;  %1773 = vmatpush3.bf16.msra.mxu1 %v1933_v54 }
  0x46   :  { %1774 = vmatprep.subr.bf16.mxu1 %v1934_v55 }
  0x48   :  { %221 = vmatmul.mubr.bf16.vlgmr.msra.gmra.mrb[0].mxu0 %v72_v29 }
  0x49   :  { %230 = vmatprep.mubr.bf16.mxu0 %v2118_v0  ;;  %1775 = vmatpush3.bf16.msra.mxu1 %v1935_v56 }
  0x50   :  { %231 = vmatmul.mubr.bf16.gmra.mrb[4].mxu0 %v73_v33 }
  0x51   :  { %240 = vmatprep.mubr.bf16.mxu0 %v2118_v0 }
  0x58   :  { %241 = vmatmul.mubr.bf16.gmra.mrb[8].mxu0 %v74_v36 }
  0x59   :  { %250 = vmatprep.mubr.bf16.mxu0 %v2118_v0 }
  0x60   :  { %251 = vmatmul.mubr.bf16.gmra.mrb[12].mxu0 %v75_v39 }
  0x61   :  { %260 = vmatprep.mubr.bf16.mxu0 %v2118_v0 }
  0x68   :  { %261 = vmatmul.mubr.bf16.gmra.mrb[16].mxu0 %v76_v42 }
  0x69   :  { %270 = vmatprep.mubr.bf16.mxu0 %v2118_v0 }
  0x70   :  { %271 = vmatmul.mubr.bf16.gmra.mrb[20].mxu0 %v77_v45 }
  0x71   :  { %280 = vmatprep.mubr.bf16.mxu0 %v2118_v0 }
  0x78   :  { %281 = vmatmul.mubr.bf16.gmra.mrb[24].mxu0 %v78_v48 }
  0x79   :  { %290 = vmatprep.mubr.bf16.mxu0 %v2118_v0 }
  0x80   :  { %291 = vmatmul.mubr.bf16.gmra.mrb[28].mxu0 %v79_v51 }
  0x81   :  { %1001 = vmatprep.mubr.bf16.mxu0 %v2118_v0 }
 0x11b   :  { %v222_v1 = vpop.f32.mrb[0].mxu0 }
 0x11c   :  { %v223_v2 = vadd.f32 %v222_v1, %v2301_v62  ;;  %v224_v3 = vpop.f32.mrb[1].mxu0 }
 0x11d   :  { %v225_v4 = vadd.f32 %v224_v3, %v2305_v63  ;;  %v226_v5 = vpop.f32.mrb[2].mxu0 }
 0x11e   :  { %v227_v6 = vadd.f32 %v226_v5, %v2301_v62  ;;  %v228_v7 = vpop.f32.mrb[3].mxu0  ;;  %v301_v9 = vmax.f32 %v223_v2, 0.0 }
 0x11f   :  { %v229_v8 = vadd.f32 %v228_v7, %v2305_v63  ;;  %v302_v11 = vmax.f32 %v225_v4, 0.0 }
 0x120   :  { %v303_v10 = vmax.f32 %v227_v6, 0.0 }
 0x121   :  { %v304_v12 = vmax.f32 %v229_v8, 0.0 }
 0x122   :  { %v333_v13 = vpack.c.bf16 %v303_v10, %v301_v9 }
 0x123   :  { %v232_v14 = vpop.f32.mrb[4].mxu0  ;;  %v334_v15 = vpack.c.bf16 %v304_v12, %v302_v11 }
 0x124   :  { %v233_v16 = vadd.f32 %v232_v14, %v2301_v62  ;;  %v234_v17 = vpop.f32.mrb[5].mxu0 }
 0x125   :  { %v235_v18 = vadd.f32 %v234_v17, %v2305_v63  ;;  %v236_v19 = vpop.f32.mrb[6].mxu0  ;;  %516 = vmatprep.mubr.bf16.mxu1 %v334_v15 }
 0x126   :  { %v237_v20 = vadd.f32 %v236_v19, %v2301_v62  ;;  %v238_v21 = vpop.f32.mrb[7].mxu0  ;;  %517 = vmatmul.mubr.bf16.vlgmr.msra.gmra.mrb[0].mxu1 %v333_v13  ;;  %v305_v23 = vmax.f32 %v233_v16, 0.0 }
 0x127   :  { %v239_v22 = vadd.f32 %v238_v21, %v2305_v63  ;;  %v306_v27 = vmax.f32 %v235_v18, 0.0 }
 0x128   :  { %v307_v26 = vmax.f32 %v237_v20, 0.0 }
 0x129   :  { %v308_v28 = vmax.f32 %v239_v22, 0.0 }
 0x12a   :  { %v335_v29 = vpack.c.bf16 %v307_v26, %v305_v23 }
 0x12b   :  { %v336_v30 = vpack.c.bf16 %v308_v28, %v306_v27  ;;  %v242_v33 = vpop.f32.mrb[8].mxu0 }
 0x12c   :  { %v243_v36 = vadd.f32 %v242_v33, %v2301_v62  ;;  %v244_v39 = vpop.f32.mrb[9].mxu0 }
 0x12d   :  { %v245_v42 = vadd.f32 %v244_v39, %v2305_v63  ;;  %v246_v45 = vpop.f32.mrb[10].mxu0  ;;  %524 = vmatprep.mubr.bf16.mxu1 %v336_v30 }
 0x12e   :  { %v247_v48 = vadd.f32 %v246_v45, %v2301_v62  ;;  %v248_v51 = vpop.f32.mrb[11].mxu0  ;;  %525 = vmatmul.mubr.bf16.gmra.mrb[4].mxu1 %v335_v29  ;;  %v309_v53 = vmax.f32 %v243_v36, 0.0 }
 0x12f   :  { %v249_v52 = vadd.f32 %v248_v51, %v2305_v63  ;;  %v310_v55 = vmax.f32 %v245_v42, 0.0 }
 0x130   :  { %v311_v54 = vmax.f32 %v247_v48, 0.0 }
 0x131   :  { %v312_v56 = vmax.f32 %v249_v52, 0.0 }
 0x132   :  { %v337_v57 = vpack.c.bf16 %v311_v54, %v309_v53 }
 0x133   :  { %v338_v60 = vpack.c.bf16 %v312_v56, %v310_v55  ;;  %v252_v1 = vpop.f32.mrb[12].mxu0 }
 0x134   :  { %v253_v2 = vadd.f32 %v252_v1, %v2301_v62  ;;  %v254_v3 = vpop.f32.mrb[13].mxu0 }
 0x135   :  { %v255_v4 = vadd.f32 %v254_v3, %v2305_v63  ;;  %v256_v5 = vpop.f32.mrb[14].mxu0  ;;  %532 = vmatprep.mubr.bf16.mxu1 %v338_v60 }
 0x136   :  { %v257_v6 = vadd.f32 %v256_v5, %v2301_v62  ;;  %v258_v7 = vpop.f32.mrb[15].mxu0  ;;  %533 = vmatmul.mubr.bf16.gmra.mrb[8].mxu1 %v337_v57  ;;  %v313_v9 = vmax.f32 %v253_v2, 0.0 }
 0x137   :  { %v259_v8 = vadd.f32 %v258_v7, %v2305_v63  ;;  %v314_v11 = vmax.f32 %v255_v4, 0.0 }
 0x138   :  { %v315_v10 = vmax.f32 %v257_v6, 0.0 }
 0x139   :  { %v316_v12 = vmax.f32 %v259_v8, 0.0 }
 0x13a   :  { %v339_v13 = vpack.c.bf16 %v315_v10, %v313_v9 }
 0x13b   :  { %v340_v14 = vpack.c.bf16 %v316_v12, %v314_v11  ;;  %v262_v15 = vpop.f32.mrb[16].mxu0 }
 0x13c   :  { %v263_v16 = vadd.f32 %v262_v15, %v2301_v62  ;;  %v264_v17 = vpop.f32.mrb[17].mxu0 }
 0x13d   :  { %v265_v18 = vadd.f32 %v264_v17, %v2305_v63  ;;  %v266_v19 = vpop.f32.mrb[18].mxu0  ;;  %540 = vmatprep.mubr.bf16.mxu1 %v340_v14 }
 0x13e   :  { %v267_v20 = vadd.f32 %v266_v19, %v2301_v62  ;;  %v268_v21 = vpop.f32.mrb[19].mxu0  ;;  %541 = vmatmul.mubr.bf16.gmra.mrb[12].mxu1 %v339_v13  ;;  %v317_v23 = vmax.f32 %v263_v16, 0.0 }
 0x13f   :  { %v269_v22 = vadd.f32 %v268_v21, %v2305_v63  ;;  %v318_v27 = vmax.f32 %v265_v18, 0.0 }
 0x140   :  { %v319_v26 = vmax.f32 %v267_v20, 0.0 }
 0x141   :  { %v320_v28 = vmax.f32 %v269_v22, 0.0 }
 0x142   :  { %v341_v29 = vpack.c.bf16 %v319_v26, %v317_v23 }
 0x143   :  { %v342_v30 = vpack.c.bf16 %v320_v28, %v318_v27  ;;  %v272_v33 = vpop.f32.mrb[20].mxu0 }
 0x144   :  { %v273_v36 = vadd.f32 %v272_v33, %v2301_v62  ;;  %v274_v39 = vpop.f32.mrb[21].mxu0  ;;  %v1936_v33 = vld [vmem:[%s2946_s1 + $0x80] ss:$8 sps:$4 sm:$0xff]  }
 0x145   :  { %v275_v42 = vadd.f32 %v274_v39, %v2305_v63  ;;  %v276_v45 = vpop.f32.mrb[22].mxu0  ;;  %548 = vmatprep.mubr.bf16.mxu1 %v342_v30  ;;  %v1944_v39 = vld [vmem:[%s2946_s1 + $0xa4] ss:$8 sps:$4 sm:$0xff]  }
 0x146   :  { %v277_v48 = vadd.f32 %v276_v45, %v2301_v62  ;;  %v278_v51 = vpop.f32.mrb[23].mxu0  ;;  %549 = vmatmul.mubr.bf16.gmra.mrb[16].mxu1 %v341_v29  ;;  %v321_v53 = vmax.f32 %v273_v36, 0.0  ;;  %v1939_v36 = vld [vmem:[%s2946_s1 + $0x90] ss:$8 sps:$4 sm:$0xff]   ;;  %v1947_v45 = vld [vmem:[%s2946_s1 + $0xb4] ss:$8 sps:$4 sm:$0xff]  }
 0x147   :  { %v279_v52 = vadd.f32 %v278_v51, %v2305_v63  ;;  %v322_v55 = vmax.f32 %v275_v42, 0.0  ;;  %v1942_v42 = vld [vmem:[%s2946_s1 + $0xa0] ss:$8 sps:$4 sm:$0xff]   ;;  %v1950_v51 = vld [vmem:[%s2946_s1 + $0xc4] ss:$8 sps:$4 sm:$0xff]  }
 0x148   :  { %v323_v54 = vmax.f32 %v277_v48, 0.0  ;;  %v1945_v48 = vld [vmem:[%s2946_s1 + $0xb0] ss:$8 sps:$4 sm:$0xff]  }
 0x149   :  { %v324_v56 = vmax.f32 %v279_v52, 0.0  ;;  %v1948_v52 = vld [vmem:[%s2946_s1 + $0xc0] ss:$8 sps:$4 sm:$0xff]  }
 0x14a   :  { %v343_v57 = vpack.c.bf16 %v323_v54, %v321_v53  ;;  %v2372_v54 = vld [vmem:[%s2949_s4] ss:$0 sm:$0xff] }
 0x14b   :  { %v344_v60 = vpack.c.bf16 %v324_v56, %v322_v55  ;;  %v282_v1 = vpop.f32.mrb[24].mxu0 }
 0x14c   :  { %v283_v2 = vadd.f32 %v282_v1, %v2301_v62  ;;  %v284_v3 = vpop.f32.mrb[25].mxu0 }
 0x14d   :  { %v285_v4 = vadd.f32 %v284_v3, %v2305_v63  ;;  %v286_v5 = vpop.f32.mrb[26].mxu0  ;;  %556 = vmatprep.mubr.bf16.mxu1 %v344_v60 }
 0x14e   :  { %v287_v6 = vadd.f32 %v286_v5, %v2301_v62  ;;  %v288_v7 = vpop.f32.mrb[27].mxu0  ;;  %557 = vmatmul.mubr.bf16.gmra.mrb[20].mxu1 %v343_v57  ;;  %v325_v9 = vmax.f32 %v283_v2, 0.0 }
 0x14f   :  { %v289_v8 = vadd.f32 %v288_v7, %v2305_v63  ;;  %v326_v11 = vmax.f32 %v285_v4, 0.0 }
 0x150   :  { %v327_v10 = vmax.f32 %v287_v6, 0.0 }
 0x151   :  { %v328_v12 = vmax.f32 %v289_v8, 0.0 }
 0x152   :  { %v345_v13 = vpack.c.bf16 %v327_v10, %v325_v9 }
 0x153   :  { %v346_v14 = vpack.c.bf16 %v328_v12, %v326_v11  ;;  %v292_v15 = vpop.f32.mrb[28].mxu0 }
 0x154   :  { %v293_v16 = vadd.f32 %v292_v15, %v2301_v62  ;;  %v294_v17 = vpop.f32.mrb[29].mxu0 }
 0x155   :  { %v295_v18 = vadd.f32 %v294_v17, %v2305_v63  ;;  %v296_v19 = vpop.f32.mrb[30].mxu0  ;;  %564 = vmatprep.mubr.bf16.mxu1 %v346_v14 }
 0x156   :  { %v297_v20 = vadd.f32 %v296_v19, %v2301_v62  ;;  %v298_v21 = vpop.f32.mrb[31].mxu0  ;;  %565 = vmatmul.mubr.bf16.gmra.mrb[24].mxu1 %v345_v13  ;;  %v329_v23 = vmax.f32 %v293_v16, 0.0  ;;  %v1938_v62 = vld [vmem:[%s2946_s1 + $0x84] ss:$8 sps:$4 sm:$0xff]  }
 0x157   :  { %v299_v22 = vadd.f32 %v298_v21, %v2305_v63  ;;  %v330_v27 = vmax.f32 %v295_v18, 0.0  ;;  %v1941_v63 = vld [vmem:[%s2946_s1 + $0x94] ss:$8 sps:$4 sm:$0xff]   ;;  %969 = vmatprep.subr.bf16.mxu0 %v1938_v62 }
 0x158   :  { %v331_v26 = vmax.f32 %v297_v20, 0.0  ;;  %970 = vmatpush1.bf16.msra.mxu0 %v1936_v33 }
 0x159   :  { %v332_v28 = vmax.f32 %v299_v22, 0.0  ;;  %971 = vmatprep.subr.bf16.mxu0 %v1941_v63 }
 0x15a   :  { %v347_v29 = vpack.c.bf16 %v331_v26, %v329_v23 }
 0x15b   :  { %v348_v30 = vpack.c.bf16 %v332_v28, %v330_v27 }
 0x15c   :  { %972 = vmatpush1.bf16.msra.mxu0 %v1939_v36 }
 0x15d   :  { %572 = vmatprep.mubr.bf16.mxu1 %v348_v30  ;;  %973 = vmatprep.subr.bf16.mxu0 %v1944_v39 }
 0x15e   :  { %573 = vmatmul.mubr.bf16.gmra.mrb[28].mxu1 %v347_v29 }
 0x160   :  { %974 = vmatpush1.bf16.msra.mxu0 %v1942_v42 }
 0x161   :  { %975 = vmatprep.subr.bf16.mxu0 %v1947_v45 }
 0x164   :  { %976 = vmatpush1.bf16.msra.mxu0 %v1945_v48 }
 0x165   :  { %977 = vmatprep.subr.bf16.mxu0 %v1950_v51 }
 0x168   :  { %978 = vmatpush1.bf16.msra.mxu0 %v1948_v52 }
 0x1f9   :  { %v1776_v53 = vpop.f32.mrb[0].mxu1 }
 0x1fa   :  { %v1777_v55 = vpop.f32.mrb[1].mxu1 }
 0x1fb   :  { %v1778_v56 = vadd.f32 %v1777_v55, %v1776_v53  ;;  %v1779_v57 = vpop.f32.mrb[2].mxu1 }
 0x1fc   :  { %v1780_v60 = vpop.f32.mrb[3].mxu1 }
 0x1fd   :  { %v519_v1 = vadd.f32 %v1778_v56, %v2372_v54  ;;  %v1781_v2 = vadd.f32 %v1780_v60, %v1779_v57 }
 0x1ff   :  { %v522_v3 = vadd.f32 %v1781_v2, %v2372_v54  ;;  %v2377_v4 = vadd.f32 %v519_v1, %v2236_v24  ;;  %v1953_v2 = vld [vmem:[%s2946_s1 + $0xd4] ss:$8 sps:$4 sm:$0xff]  }
 0x200   :  { %979 = vmatprep.subr.bf16.mxu0 %v1953_v2  ;;  %v1966_v2 = vld [vmem:[#allocation5 + $0xd8] sm:$0xff]  }
 0x201   :  { %v1782_v5 = vpop.f32.mrb[4].mxu1  ;;  %597 = vadd.xlane.f32.xlu0 %v2377_v4  ;;  %v645_v6 = vmul.f32 %v2377_v4, %v2377_v4  ;;  %v2383_v7 = vadd.f32 %v522_v3, %v2238_v25 }
 0x202   :  { %v1783_v8 = vpop.f32.mrb[5].mxu1 }
 0x203   :  { %v1784_v9 = vadd.f32 %v1783_v8, %v1782_v5  ;;  %v1785_v10 = vpop.f32.mrb[6].mxu1  ;;  %661 = vadd.xlane.f32.xlu1 %v645_v6  ;;  %v646_v24 = vmul.f32 %v2383_v7, %v2383_v7  ;;  %v1951_v6 = vld [vmem:[%s2946_s1 + $0xd0] ss:$8 sps:$4 sm:$0xff]  }
 0x204   :  { %v1786_v11 = vpop.f32.mrb[7].mxu1  ;;  %980 = vmatpush1.bf16.msra.mxu0 %v1951_v6  ;;  %v1968_v6 = vld [vmem:[#allocation5 + $0xe0] sm:$0xff]  }
 0x205   :  { %v527_v12 = vadd.f32 %v1784_v9, %v2372_v54  ;;  %v1787_v13 = vadd.f32 %v1786_v11, %v1785_v10  ;;  %599 = vadd.xlane.f32.xlu0 %v2383_v7 }
 0x207   :  { %v530_v14 = vadd.f32 %v1787_v13, %v2372_v54  ;;  %663 = vadd.xlane.f32.xlu1 %v646_v24  ;;  %v2391_v15 = vadd.f32 %v527_v12, %v2242_v31 }
 0x209   :  { %v1788_v25 = vpop.f32.mrb[8].mxu1  ;;  %601 = vadd.xlane.f32.xlu0 %v2391_v15  ;;  %v2395_v16 = vadd.f32 %v530_v14, %v2244_v32  ;;  %v647_v20 = vmul.f32 %v2391_v15, %v2391_v15  ;;  %v1954_v14 = vld [vmem:[%s2946_s1 + $0xe0] ss:$8 sps:$4 sm:$0xff]  }
 0x20a   :  { %v1789_v17 = vpop.f32.mrb[9].mxu1 }
 0x20b   :  { %v1790_v18 = vadd.f32 %v1789_v17, %v1788_v25  ;;  %v1791_v19 = vpop.f32.mrb[10].mxu1  ;;  %603 = vadd.xlane.f32.xlu1 %v2395_v16  ;;  %v648_v31 = vmul.f32 %v2395_v16, %v2395_v16 }
 0x20c   :  { %v1792_v21 = vpop.f32.mrb[11].mxu1 }
 0x20d   :  { %v535_v22 = vadd.f32 %v1790_v18, %v2372_v54  ;;  %v1793_v23 = vadd.f32 %v1792_v21, %v1791_v19  ;;  %665 = vadd.xlane.f32.xlu0 %v647_v20  ;;  %v1959_v20 = vld [vmem:[%s2946_s1 + $0xf4] ss:$8 sps:$4 sm:$0xff]  }
 0x20f   :  { %v538_v26 = vadd.f32 %v1793_v23, %v2372_v54  ;;  %667 = vadd.xlane.f32.xlu1 %v648_v31  ;;  %v2405_v32 = vadd.f32 %v535_v22, %v2249_v34  ;;  %v1957_v22 = vld [vmem:[%s2946_s1 + $0xf0] ss:$8 sps:$4 sm:$0xff]  }
 0x211   :  { %v1794_v27 = vpop.f32.mrb[12].mxu1  ;;  %605 = vadd.xlane.f32.xlu0 %v2405_v32  ;;  %v2409_v28 = vadd.f32 %v538_v26, %v2251_v35  ;;  %v649_v62 = vmul.f32 %v2405_v32, %v2405_v32 }
 0x212   :  { %v1795_v29 = vpop.f32.mrb[13].mxu1 }
 0x213   :  { %v1796_v30 = vadd.f32 %v1795_v29, %v1794_v27  ;;  %v1797_v33 = vpop.f32.mrb[14].mxu1  ;;  %607 = vadd.xlane.f32.xlu1 %v2409_v28  ;;  %v650_v34 = vmul.f32 %v2409_v28, %v2409_v28 }
 0x214   :  { %v1798_v63 = vpop.f32.mrb[15].mxu1 }
 0x215   :  { %v543_v36 = vadd.f32 %v1796_v30, %v2372_v54  ;;  %v1799_v39 = vadd.f32 %v1798_v63, %v1797_v33  ;;  %669 = vadd.xlane.f32.xlu0 %v649_v62 }
 0x217   :  { %v546_v42 = vadd.f32 %v1799_v39, %v2372_v54  ;;  %671 = vadd.xlane.f32.xlu1 %v650_v34  ;;  %v2419_v35 = vadd.f32 %v543_v36, %v2257_v37 }
 0x219   :  { %v1800_v45 = vpop.f32.mrb[16].mxu1  ;;  %609 = vadd.xlane.f32.xlu0 %v2419_v35  ;;  %v2423_v48 = vadd.f32 %v546_v42, %v2259_v38  ;;  %v651_v55 = vmul.f32 %v2419_v35, %v2419_v35 }
 0x21a   :  { %v1801_v51 = vpop.f32.mrb[17].mxu1 }
 0x21b   :  { %v1802_v52 = vadd.f32 %v1801_v51, %v1800_v45  ;;  %v1803_v53 = vpop.f32.mrb[18].mxu1  ;;  %611 = vadd.xlane.f32.xlu1 %v2423_v48  ;;  %v652_v37 = vmul.f32 %v2423_v48, %v2423_v48 }
 0x21c   :  { %v1804_v56 = vpop.f32.mrb[19].mxu1 }
 0x21d   :  { %v551_v57 = vadd.f32 %v1802_v52, %v2372_v54  ;;  %v1805_v60 = vadd.f32 %v1804_v56, %v1803_v53  ;;  %673 = vadd.xlane.f32.xlu0 %v651_v55 }
 0x21f   :  { %v554_v1 = vadd.f32 %v1805_v60, %v2372_v54  ;;  %675 = vadd.xlane.f32.xlu1 %v652_v37  ;;  %v2433_v38 = vadd.f32 %v551_v57, %v2264_v40  ;;  %v1961_v60 = vld [vmem:[#allocation5 + $0x80] sm:$0xff]   ;;  %v1962_v37 = vld [vmem:[#allocation5 + $0xc8] sm:$0xff]  }
 0x221   :  { %v1806_v3 = vpop.f32.mrb[20].mxu1  ;;  %613 = vadd.xlane.f32.xlu0 %v2433_v38  ;;  %v2440_v5 = vadd.f32 %v554_v1, %v2266_v41  ;;  %v653_v40 = vmul.f32 %v2433_v38, %v2433_v38  ;;  %v1956_v41 = vld [vmem:[%s2946_s1 + $0xe4] ss:$8 sps:$4 sm:$0xff]   ;;  %v1964_v1 = vld [vmem:[#allocation5 + $0xd0] sm:$0xff]  }
 0x222   :  { %v1807_v8 = vpop.f32.mrb[21].mxu1  ;;  %981 = vmatprep.subr.bf16.mxu0 %v1956_v41 }
 0x223   :  { %v1808_v9 = vadd.f32 %v1807_v8, %v1806_v3  ;;  %v1809_v10 = vpop.f32.mrb[22].mxu1  ;;  %615 = vadd.xlane.f32.xlu1 %v2440_v5  ;;  %v654_v24 = vmul.f32 %v2440_v5, %v2440_v5  ;;  %982 = vmatpush1.bf16.msra.mxu0 %v1954_v14  ;;  %v1967_v3 = vld [vmem:[#allocation5 + $0x98] sm:$0xff]   ;;  %v1969_v8 = vld [vmem:[#allocation5 + $0xa0] sm:$0xff]  }
 0x224   :  { %v1810_v11 = vpop.f32.mrb[23].mxu1  ;;  %983 = vmatprep.subr.bf16.mxu0 %v1959_v20 }
 0x225   :  { %v559_v12 = vadd.f32 %v1808_v9, %v2372_v54  ;;  %v1811_v13 = vadd.f32 %v1810_v11, %v1809_v10  ;;  %677 = vadd.xlane.f32.xlu0 %v653_v40  ;;  %v1970_v9 = vld [vmem:[#allocation5 + $0xe8] sm:$0xff]   ;;  %v1972_v40 = vld [vmem:[#allocation5 + $0xf0] sm:$0xff]  }
 0x226   :  { %v1971_v10 = vld [vmem:[#allocation5 + $0xa8] sm:$0xff]   ;;  %v1973_v11 = vld [vmem:[#allocation5 + $0xb0] sm:$0xff]  }
 0x227   :  { %v562_v25 = vadd.f32 %v1811_v13, %v2372_v54  ;;  %679 = vadd.xlane.f32.xlu1 %v654_v24  ;;  %v2459_v17 = vadd.f32 %v559_v12, %v2271_v43  ;;  %984 = vmatpush1.bf16.msra.mxu0 %v1957_v22 }
 0x229   :  { %v1812_v18 = vpop.f32.mrb[24].mxu1  ;;  %617 = vadd.xlane.f32.xlu0 %v2459_v17  ;;  %v2463_v19 = vadd.f32 %v562_v25, %v2273_v44  ;;  %v655_v43 = vmul.f32 %v2459_v17, %v2459_v17 }
 0x22a   :  { %v1813_v21 = vpop.f32.mrb[25].mxu1 }
 0x22b   :  { %v1814_v23 = vadd.f32 %v1813_v21, %v1812_v18  ;;  %v1815_v31 = vpop.f32.mrb[26].mxu1  ;;  %619 = vadd.xlane.f32.xlu1 %v2463_v19  ;;  %v656_v29 = vmul.f32 %v2463_v19, %v2463_v19 }
 0x22c   :  { %v1816_v26 = vpop.f32.mrb[27].mxu1 }
 0x22d   :  { %v567_v44 = vadd.f32 %v1814_v23, %v2372_v54  ;;  %v1817_v27 = vadd.f32 %v1816_v26, %v1815_v31  ;;  %681 = vadd.xlane.f32.xlu0 %v655_v43 }
 0x22f   :  { %v570_v30 = vadd.f32 %v1817_v27, %v2372_v54  ;;  %683 = vadd.xlane.f32.xlu1 %v656_v29  ;;  %v2479_v33 = vadd.f32 %v567_v44, %v2278_v46 }
 0x231   :  { %v1818_v62 = vpop.f32.mrb[28].mxu1  ;;  %621 = vadd.xlane.f32.xlu0 %v2479_v33  ;;  %v2483_v63 = vadd.f32 %v570_v30, %v2280_v47  ;;  %v657_v42 = vmul.f32 %v2479_v33, %v2479_v33 }
 0x232   :  { %v1819_v36 = vpop.f32.mrb[29].mxu1 }
 0x233   :  { %v1820_v39 = vadd.f32 %v1819_v36, %v1818_v62  ;;  %v1821_v34 = vpop.f32.mrb[30].mxu1  ;;  %623 = vadd.xlane.f32.xlu1 %v2483_v63  ;;  %v658_v46 = vmul.f32 %v2483_v63, %v2483_v63 }
 0x234   :  { %v1822_v45 = vpop.f32.mrb[31].mxu1 }
 0x235   :  { %v575_v51 = vadd.f32 %v1820_v39, %v2372_v54  ;;  %v1823_v52 = vadd.f32 %v1822_v45, %v1821_v34  ;;  %685 = vadd.xlane.f32.xlu0 %v657_v42 }
 0x237   :  { %v578_v53 = vadd.f32 %v1823_v52, %v2372_v54  ;;  %687 = vadd.xlane.f32.xlu1 %v658_v46  ;;  %v2493_v47 = vadd.f32 %v575_v51, %v2285_v49  ;;  %v1960_v54 = vld [vmem:[#allocation5 + $0xc0] sm:$0xff]   ;;  %v1963_v49 = vld [vmem:[#allocation5 + $0x88] sm:$0xff]  }
 0x238   :  { %1824 = vmatprep.subr.bf16.mxu1 %v1960_v54 }
 0x239   :  { %625 = vadd.xlane.f32.xlu0 %v2493_v47  ;;  %v2497_v55 = vadd.f32 %v578_v53, %v2287_v50  ;;  %v659_v56 = vmul.f32 %v2493_v47, %v2493_v47  ;;  %1825 = vmatpush3.bf16.msra.mxu1 %v1961_v60  ;;  %v1965_v50 = vld [vmem:[#allocation5 + $0x90] sm:$0xff]  }
 0x23a   :  { %1826 = vmatprep.subr.bf16.mxu1 %v1962_v37 }
 0x23b   :  { %627 = vadd.xlane.f32.xlu1 %v2497_v55  ;;  %v660_v57 = vmul.f32 %v2497_v55, %v2497_v55 }
 0x23d   :  { %689 = vadd.xlane.f32.xlu0 %v659_v56  ;;  %1827 = vmatpush3.bf16.msra.mxu1 %v1963_v49 }
 0x23e   :  { %1828 = vmatprep.subr.bf16.mxu1 %v1964_v1 }
 0x23f   :  { %691 = vadd.xlane.f32.xlu1 %v660_v57 }
 0x241   :  { %1829 = vmatpush3.bf16.msra.mxu1 %v1965_v50 }
 0x242   :  { %1830 = vmatprep.subr.bf16.mxu1 %v1966_v2 }
 0x245   :  { %1831 = vmatpush3.bf16.msra.mxu1 %v1967_v3 }
 0x246   :  { %1832 = vmatprep.subr.bf16.mxu1 %v1968_v6  ;;  %v2514_v6 = vld [vmem:[%s2950_s5] ss:$0 sm:$0xff] }
 0x249   :  { %1833 = vmatpush3.bf16.msra.mxu1 %v1969_v8 }
 0x24a   :  { %1834 = vmatprep.subr.bf16.mxu1 %v1970_v9 }
 0x24d   :  { %1835 = vmatpush3.bf16.msra.mxu1 %v1971_v10 }
 0x24e   :  { %1836 = vmatprep.subr.bf16.mxu1 %v1972_v40 }
 0x251   :  { %1837 = vmatpush3.bf16.msra.mxu1 %v1973_v11 }
 0x28e   :  { %v598_v41 = vpop.xlane.xlu0 %597 }
 0x28f   :  { %v629_v12 = vmul.f32 0.0078125, %v598_v41 }
 0x290   :  { %v662_v13 = vpop.xlane.xlu1 %661 }
 0x291   :  { %v709_v24 = vmul.f32 %v629_v12, %v629_v12  ;;  %v693_v14 = vmul.f32 0.0078125, %v662_v13  ;;  %v741_v57 = vsub.f32 %v2377_v4, %v629_v12 }
 0x292   :  { %v600_v25 = vpop.xlane.xlu0 %599 }
 0x293   :  { %v725_v18 = vsub.f32 %v693_v14, %v709_v24  ;;  %v630_v20 = vmul.f32 0.0078125, %v600_v25 }
 0x294   :  { %v664_v21 = vpop.xlane.xlu1 %663 }
 0x295   :  { %v757_v22 = vadd.f32 1e-05, %v725_v18  ;;  %v710_v23 = vmul.f32 %v630_v20, %v630_v20  ;;  %v694_v31 = vmul.f32 0.0078125, %v664_v21  ;;  %v742_v4 = vsub.f32 %v2383_v7, %v630_v20  ;;  %v2525_v18 = vld [vmem:[%s2951_s6] ss:$0 sm:$0xff] }
 0x296   :  { %v602_v43 = vpop.xlane.xlu0 %601 }
 0x297   :  { %1976 = vrsqrt.f32 %v757_v22  ;;  %v726_v26 = vsub.f32 %v694_v31, %v710_v23  ;;  %v631_v44 = vmul.f32 0.0078125, %v602_v43 }
 0x298   :  { %v604_v27 = vpop.xlane.xlu1 %603 }
 0x299   :  { %v758_v29 = vadd.f32 1e-05, %v726_v26  ;;  %v632_v30 = vmul.f32 0.0078125, %v604_v27  ;;  %v711_v36 = vmul.f32 %v631_v44, %v631_v44  ;;  %v743_v22 = vsub.f32 %v2391_v15, %v631_v44 }
 0x29a   :  { %v666_v62 = vpop.xlane.xlu0 %665 }
 0x29b   :  { %1978 = vrsqrt.f32 %v758_v29  ;;  %v695_v39 = vmul.f32 0.0078125, %v666_v62  ;;  %v712_v42 = vmul.f32 %v632_v30, %v632_v30 }
 0x29c   :  { %v668_v34 = vpop.xlane.xlu1 %667 }
 0x29d   :  { %v727_v45 = vsub.f32 %v695_v39, %v711_v36  ;;  %v696_v51 = vmul.f32 0.0078125, %v668_v34  ;;  %v744_v36 = vsub.f32 %v2395_v16, %v632_v30 }
 0x29e   :  { %v606_v52 = vpop.xlane.xlu0 %605 }
 0x29f   :  { %v759_v46 = vadd.f32 1e-05, %v727_v45  ;;  %v728_v53 = vsub.f32 %v696_v51, %v712_v42  ;;  %v2504_v56 = vmul.f32 0.0078125, %v606_v52 }
 0x2a0   :  { %v608_v54 = vpop.xlane.xlu1 %607 }
 0x2a1   :  { %v1977_v60 = vpop.eup %1976  ;;  %1980 = vrsqrt.f32 %v759_v46  ;;  %v760_v37 = vadd.f32 1e-05, %v728_v53  ;;  %v2507_v1 = vmul.f32 0.0078125, %v608_v54  ;;  %v713_v2 = vmul.f32 %v2504_v56, %v2504_v56 }
 0x2a2   :  { %v789_v49 = vmul.f32 %v1977_v60, %v741_v57  ;;  %v670_v50 = vpop.xlane.xlu0 %669 }
 0x2a3   :  { %1982 = vrsqrt.f32 %v760_v37  ;;  %v697_v3 = vmul.f32 0.0078125, %v670_v50  ;;  %v714_v10 = vmul.f32 %v2507_v1, %v2507_v1 }
 0x2a4   :  { %v672_v8 = vpop.xlane.xlu1 %671  ;;  %v812_v13 = vmul.f32 %v2514_v6, %v789_v49  ;;  %v745_v49 = vsub.f32 %v2405_v32, %v2504_v56 }
 0x2a5   :  { %v1979_v9 = vpop.eup %1978  ;;  %v729_v40 = vsub.f32 %v697_v3, %v713_v2  ;;  %v698_v11 = vmul.f32 0.0078125, %v672_v8 }
 0x2a6   :  { %v790_v41 = vmul.f32 %v1979_v9, %v742_v4  ;;  %v610_v12 = vpop.xlane.xlu0 %609  ;;  %v2532_v43 = vadd.f32 %v2525_v18, %v812_v13 }
 0x2a7   :  { %v761_v24 = vadd.f32 1e-05, %v729_v40  ;;  %v730_v14 = vsub.f32 %v698_v11, %v714_v10  ;;  %v2520_v25 = vmul.f32 0.0078125, %v610_v12  ;;  %v746_v40 = vsub.f32 %v2409_v28, %v2507_v1 }
 0x2a8   :  { %v612_v7 = vpop.xlane.xlu1 %611  ;;  %v813_v20 = vmul.f32 %v2514_v6, %v790_v41 }
 0x2a9   :  { %1984 = vrsqrt.f32 %v761_v24  ;;  %v762_v21 = vadd.f32 1e-05, %v730_v14  ;;  %v2529_v23 = vmul.f32 0.0078125, %v612_v7  ;;  %v715_v29 = vmul.f32 %v2520_v25, %v2520_v25 }
 0x2aa   :  { %v674_v31 = vpop.xlane.xlu0 %673  ;;  %v2535_v26 = vadd.f32 %v2525_v18, %v813_v20 }
 0x2ab   :  { %v1981_v27 = vpop.eup %1980  ;;  %1986 = vrsqrt.f32 %v762_v21  ;;  %v699_v62 = vmul.f32 0.0078125, %v674_v31  ;;  %v716_v42 = vmul.f32 %v2529_v23, %v2529_v23 }
 0x2ac   :  { %v676_v39 = vpop.xlane.xlu1 %675  ;;  %v851_v15 = vpack.c.bf16 %v2535_v26, %v2532_v43  ;;  %v791_v44 = vmul.f32 %v1981_v27, %v743_v22 }
 0x2ad   :  { %v1983_v34 = vpop.eup %1982  ;;  %v731_v45 = vsub.f32 %v699_v62, %v715_v29  ;;  %v700_v51 = vmul.f32 0.0078125, %v676_v39  ;;  %v747_v29 = vsub.f32 %v2419_v35, %v2520_v25 }
 0x2ae   :  { %v614_v52 = vpop.xlane.xlu0 %613  ;;  %1002 = vmatmul.mubr.bf16.vlgmr.msra.gmra.mrb[32].mxu0 %v851_v15  ;;  %v792_v46 = vmul.f32 %v1983_v34, %v744_v36  ;;  %v814_v53 = vmul.f32 %v2514_v6, %v791_v44 }
 0x2af   :  { %v763_v57 = vadd.f32 1e-05, %v731_v45  ;;  %v732_v54 = vsub.f32 %v700_v51, %v716_v42  ;;  %v2545_v60 = vmul.f32 0.0078125, %v614_v52  ;;  %1011 = vmatprep.mubr.bf16.mxu0 %v2118_v0  ;;  %v748_v45 = vsub.f32 %v2423_v48, %v2529_v23 }
 0x2b0   :  { %v616_v16 = vpop.xlane.xlu1 %615  ;;  %v815_v30 = vmul.f32 %v2514_v6, %v792_v46  ;;  %v2554_v3 = vadd.f32 %v2525_v18, %v814_v53 }
 0x2b1   :  { %1988 = vrsqrt.f32 %v763_v57  ;;  %v764_v37 = vadd.f32 1e-05, %v732_v54  ;;  %v2551_v50 = vmul.f32 0.0078125, %v616_v16  ;;  %v717_v9 = vmul.f32 %v2545_v60, %v2545_v60 }
 0x2b2   :  { %v678_v2 = vpop.xlane.xlu0 %677  ;;  %v2557_v4 = vadd.f32 %v2525_v18, %v815_v30 }
 0x2b3   :  { %v1985_v8 = vpop.eup %1984  ;;  %1990 = vrsqrt.f32 %v764_v37  ;;  %v701_v10 = vmul.f32 0.0078125, %v678_v2  ;;  %v718_v12 = vmul.f32 %v2551_v50, %v2551_v50 }
 0x2b4   :  { %v680_v11 = vpop.xlane.xlu1 %679  ;;  %v852_v32 = vpack.c.bf16 %v2557_v4, %v2554_v3  ;;  %v793_v56 = vmul.f32 %v1985_v8, %v745_v49 }
 0x2b5   :  { %v1987_v41 = vpop.eup %1986  ;;  %v733_v13 = vsub.f32 %v701_v10, %v717_v9  ;;  %v702_v24 = vmul.f32 0.0078125, %v680_v11  ;;  %v749_v9 = vsub.f32 %v2433_v38, %v2545_v60 }
 0x2b6   :  { %v618_v14 = vpop.xlane.xlu0 %617  ;;  %1012 = vmatmul.mubr.bf16.gmra.mrb[36].mxu0 %v852_v32  ;;  %v794_v7 = vmul.f32 %v1987_v41, %v746_v40  ;;  %v816_v20 = vmul.f32 %v2514_v6, %v793_v56 }
 0x2b7   :  { %v765_v21 = vadd.f32 1e-05, %v733_v13  ;;  %v734_v22 = vsub.f32 %v702_v24, %v718_v12  ;;  %v2568_v31 = vmul.f32 0.0078125, %v618_v14  ;;  %1021 = vmatprep.mubr.bf16.mxu0 %v2118_v0  ;;  %v750_v13 = vsub.f32 %v2440_v5, %v2551_v50 }
 0x2b8   :  { %v620_v28 = vpop.xlane.xlu1 %619  ;;  %v817_v1 = vmul.f32 %v2514_v6, %v794_v7  ;;  %v2577_v39 = vadd.f32 %v2525_v18, %v816_v20 }
 0x2b9   :  { %1992 = vrsqrt.f32 %v765_v21  ;;  %v766_v27 = vadd.f32 1e-05, %v734_v22  ;;  %v2574_v62 = vmul.f32 0.0078125, %v620_v28  ;;  %v719_v34 = vmul.f32 %v2568_v31, %v2568_v31 }
 0x2ba   :  { %v682_v36 = vpop.xlane.xlu0 %681  ;;  %v2580_v15 = vadd.f32 %v2525_v18, %v817_v1 }
 0x2bb   :  { %v1989_v44 = vpop.eup %1988  ;;  %1994 = vrsqrt.f32 %v766_v27  ;;  %v703_v42 = vmul.f32 0.0078125, %v682_v36  ;;  %v720_v46 = vmul.f32 %v2574_v62, %v2574_v62 }
 0x2bc   :  { %v684_v51 = vpop.xlane.xlu1 %683  ;;  %v853_v35 = vpack.c.bf16 %v2580_v15, %v2577_v39  ;;  %v795_v25 = vmul.f32 %v1989_v44, %v747_v29 }
 0x2bd   :  { %v1991_v52 = vpop.eup %1990  ;;  %v735_v53 = vsub.f32 %v703_v42, %v719_v34  ;;  %v704_v57 = vmul.f32 0.0078125, %v684_v51  ;;  %v751_v34 = vsub.f32 %v2459_v17, %v2568_v31 }
 0x2be   :  { %v622_v54 = vpop.xlane.xlu0 %621  ;;  %1022 = vmatmul.mubr.bf16.gmra.mrb[40].mxu0 %v853_v35  ;;  %v796_v16 = vmul.f32 %v1991_v52, %v748_v45  ;;  %v818_v30 = vmul.f32 %v2514_v6, %v795_v25 }
 0x2bf   :  { %v767_v37 = vadd.f32 1e-05, %v735_v53  ;;  %v736_v49 = vsub.f32 %v704_v57, %v720_v46  ;;  %v2591_v2 = vmul.f32 0.0078125, %v622_v54  ;;  %1031 = vmatprep.mubr.bf16.mxu0 %v2118_v0  ;;  %v752_v53 = vsub.f32 %v2463_v19, %v2574_v62 }
 0x2c0   :  { %v624_v48 = vpop.xlane.xlu1 %623  ;;  %v819_v23 = vmul.f32 %v2514_v6, %v796_v16  ;;  %v2600_v11 = vadd.f32 %v2525_v18, %v818_v30 }
 0x2c1   :  { %1996 = vrsqrt.f32 %v767_v37  ;;  %v768_v8 = vadd.f32 1e-05, %v736_v49  ;;  %v2597_v10 = vmul.f32 0.0078125, %v624_v48  ;;  %v721_v41 = vmul.f32 %v2591_v2, %v2591_v2 }
 0x2c2   :  { %v686_v40 = vpop.xlane.xlu0 %685  ;;  %v2603_v32 = vadd.f32 %v2525_v18, %v819_v23  ;;  %v753_v62 = vsub.f32 %v2479_v33, %v2591_v2 }
 0x2c3   :  { %v1993_v56 = vpop.eup %1992  ;;  %1998 = vrsqrt.f32 %v768_v8  ;;  %v705_v12 = vmul.f32 0.0078125, %v686_v40  ;;  %v722_v7 = vmul.f32 %v2597_v10, %v2597_v10 }
 0x2c4   :  { %v688_v24 = vpop.xlane.xlu1 %687  ;;  %v854_v38 = vpack.c.bf16 %v2603_v32, %v2600_v11  ;;  %v797_v60 = vmul.f32 %v1993_v56, %v749_v9 }
 0x2c5   :  { %v1995_v14 = vpop.eup %1994  ;;  %v737_v20 = vsub.f32 %v705_v12, %v721_v41  ;;  %v706_v21 = vmul.f32 0.0078125, %v688_v24  ;;  %v754_v12 = vsub.f32 %v2483_v63, %v2597_v10 }
 0x2c6   :  { %v626_v22 = vpop.xlane.xlu0 %625  ;;  %1032 = vmatmul.mubr.bf16.gmra.mrb[44].mxu0 %v854_v38  ;;  %v798_v28 = vmul.f32 %v1995_v14, %v750_v13  ;;  %v820_v1 = vmul.f32 %v2514_v6, %v797_v60 }
 0x2c7   :  { %v769_v27 = vadd.f32 1e-05, %v737_v20  ;;  %v738_v29 = vsub.f32 %v706_v21, %v722_v7  ;;  %v643_v36 = vmul.f32 0.0078125, %v626_v22  ;;  %1041 = vmatprep.mubr.bf16.mxu0 %v2118_v0 }
 0x2c8   :  { %v628_v5 = vpop.xlane.xlu1 %627  ;;  %v821_v50 = vmul.f32 %v2514_v6, %v798_v28  ;;  %v2619_v51 = vadd.f32 %v2525_v18, %v820_v1 }
 0x2c9   :  { %2000 = vrsqrt.f32 %v769_v27  ;;  %v770_v44 = vadd.f32 1e-05, %v738_v29  ;;  %v644_v42 = vmul.f32 0.0078125, %v628_v5  ;;  %v723_v52 = vmul.f32 %v643_v36, %v643_v36  ;;  %v1974_v5 = vld [vmem:[#allocation5 + $0xf8] sm:$0xff]  }
 0x2ca   :  { %v690_v45 = vpop.xlane.xlu0 %689  ;;  %v2622_v35 = vadd.f32 %v2525_v18, %v821_v50  ;;  %v755_v14 = vsub.f32 %v2493_v47, %v643_v36  ;;  %v1975_v50 = vld [vmem:[#allocation5 + $0xb8] sm:$0xff]   ;;  %1838 = vmatprep.subr.bf16.mxu1 %v1974_v5 }
 0x2cb   :  { %v1997_v25 = vpop.eup %1996  ;;  %2002 = vrsqrt.f32 %v770_v44  ;;  %v707_v46 = vmul.f32 0.0078125, %v690_v45  ;;  %v724_v16 = vmul.f32 %v644_v42, %v644_v42  ;;  %v756_v20 = vsub.f32 %v2497_v55, %v644_v42  ;;  %1839 = vmatpush3.bf16.msra.mxu1 %v1975_v50 }
 0x2cc   :  { %v692_v57 = vpop.xlane.xlu1 %691  ;;  %v855_v54 = vpack.c.bf16 %v2622_v35, %v2619_v51  ;;  %v799_v17 = vmul.f32 %v1997_v25, %v751_v34 }
 0x2cd   :  { %v1999_v31 = vpop.eup %1998  ;;  %v739_v30 = vsub.f32 %v707_v46, %v723_v52  ;;  %v708_v37 = vmul.f32 0.0078125, %v692_v57 }
 0x2ce   :  { %1042 = vmatmul.mubr.bf16.gmra.mrb[48].mxu0 %v855_v54  ;;  %v800_v49 = vmul.f32 %v1999_v31, %v752_v53  ;;  %v822_v48 = vmul.f32 %v2514_v6, %v799_v17 }
 0x2cf   :  { %v771_v23 = vadd.f32 1e-05, %v739_v30  ;;  %v740_v8 = vsub.f32 %v708_v37, %v724_v16  ;;  %1051 = vmatprep.mubr.bf16.mxu0 %v2118_v0 }
 0x2d0   :  { %v823_v9 = vmul.f32 %v2514_v6, %v800_v49  ;;  %v2634_v40 = vadd.f32 %v2525_v18, %v822_v48 }
 0x2d1   :  { %2004 = vrsqrt.f32 %v771_v23  ;;  %v772_v19 = vadd.f32 1e-05, %v740_v8 }
 0x2d2   :  { %v2637_v56 = vadd.f32 %v2525_v18, %v823_v9 }
 0x2d3   :  { %v2001_v41 = vpop.eup %2000  ;;  %2006 = vrsqrt.f32 %v772_v19 }
 0x2d4   :  { %v856_v13 = vpack.c.bf16 %v2637_v56, %v2634_v40  ;;  %v801_v24 = vmul.f32 %v2001_v41, %v753_v62 }
 0x2d5   :  { %v2003_v38 = vpop.eup %2002 }
 0x2d6   :  { %1052 = vmatmul.mubr.bf16.gmra.mrb[52].mxu0 %v856_v13  ;;  %v802_v60 = vmul.f32 %v2003_v38, %v754_v12  ;;  %v824_v33 = vmul.f32 %v2514_v6, %v801_v24 }
 0x2d7   :  { %1061 = vmatprep.mubr.bf16.mxu0 %v2118_v0 }
 0x2d8   :  { %v825_v2 = vmul.f32 %v2514_v6, %v802_v60  ;;  %v2648_v7 = vadd.f32 %v2525_v18, %v824_v33 }
 0x2da   :  { %v2651_v63 = vadd.f32 %v2525_v18, %v825_v2 }
 0x2db   :  { %v2005_v10 = vpop.eup %2004 }
 0x2dc   :  { %v857_v21 = vpack.c.bf16 %v2651_v63, %v2648_v7  ;;  %v803_v22 = vmul.f32 %v2005_v10, %v755_v14 }
 0x2dd   :  { %v2007_v28 = vpop.eup %2006 }
 0x2de   :  { %1062 = vmatmul.mubr.bf16.gmra.mrb[56].mxu0 %v857_v21  ;;  %v804_v1 = vmul.f32 %v2007_v28, %v756_v20  ;;  %v826_v27 = vmul.f32 %v2514_v6, %v803_v22 }
 0x2df   :  { %1071 = vmatprep.mubr.bf16.mxu0 %v2118_v0  ;;  %v1721_v0 = vld [vmem:[%s2947_s2 + $0x2] sm:$0x3] }
 0x2e0   :  { %v827_v47 = vmul.f32 %v2514_v6, %v804_v1  ;;  %v2660_v29 = vadd.f32 %v2525_v18, %v826_v27  ;;  %v2672_v6 = vrot.slane %v1721_v0, %v100_v59 }
 0x2e2   :  { %v2663_v36 = vadd.f32 %v2525_v18, %v827_v47  ;;  %v2676_v18 = vrot.slane %v1721_v0, %v104_v61 }
 0x2e4   :  { %v858_v55 = vpack.c.bf16 %v2663_v36, %v2660_v29 }
 0x2e6   :  { %1072 = vmatmul.mubr.bf16.gmra.mrb[60].mxu0 %v858_v55 }
 0x381   :  { %v1003_v44 = vpop.f32.mrb[32].mxu0 }
 0x382   :  { %v1004_v34 = vadd.f32 %v1003_v44, %v2672_v6  ;;  %v1005_v42 = vpop.f32.mrb[33].mxu0 }
 0x383   :  { %v1006_v45 = vadd.f32 %v1005_v42, %v2676_v18  ;;  %v1007_v25 = vpop.f32.mrb[34].mxu0 }
 0x384   :  { %v1008_v52 = vadd.f32 %v1007_v25, %v2672_v6  ;;  %v1009_v46 = vpop.f32.mrb[35].mxu0  ;;  %v1082_v57 = vmax.f32 %v1004_v34, 0.0 }
 0x385   :  { %v1010_v53 = vadd.f32 %v1009_v46, %v2676_v18  ;;  %v1083_v59 = vmax.f32 %v1006_v45, 0.0 }
 0x386   :  { %v1084_v54 = vmax.f32 %v1008_v52, 0.0 }
 0x387   :  { %v1085_v17 = vmax.f32 %v1010_v53, 0.0 }
 0x388   :  { %v1114_v31 = vpack.c.bf16 %v1084_v54, %v1082_v57 }
 0x389   :  { %v1115_v58 = vpack.c.bf16 %v1085_v17, %v1083_v59  ;;  %v1013_v61 = vpop.f32.mrb[36].mxu0 }
 0x38a   :  { %v1014_v16 = vadd.f32 %v1013_v61, %v2672_v6  ;;  %v1015_v30 = vpop.f32.mrb[37].mxu0 }
 0x38b   :  { %v1016_v37 = vadd.f32 %v1015_v30, %v2676_v18  ;;  %v1017_v49 = vpop.f32.mrb[38].mxu0  ;;  %1299 = vmatprep.mubr.bf16.mxu1 %v1115_v58 }
 0x38c   :  { %v1018_v48 = vadd.f32 %v1017_v49, %v2672_v6  ;;  %v1019_v23 = vpop.f32.mrb[39].mxu0  ;;  %1300 = vmatmul.mubr.bf16.vlgmr.msra.gmra.mrb[32].mxu1 %v1114_v31  ;;  %v1086_v9 = vmax.f32 %v1014_v16, 0.0 }
 0x38d   :  { %v1020_v8 = vadd.f32 %v1019_v23, %v2676_v18  ;;  %v1087_v62 = vmax.f32 %v1016_v37, 0.0 }
 0x38e   :  { %v1088_v19 = vmax.f32 %v1018_v48, 0.0 }
 0x38f   :  { %v1089_v41 = vmax.f32 %v1020_v8, 0.0 }
 0x390   :  { %v1116_v12 = vpack.c.bf16 %v1088_v19, %v1086_v9 }
 0x391   :  { %v1117_v13 = vpack.c.bf16 %v1089_v41, %v1087_v62  ;;  %v1023_v24 = vpop.f32.mrb[40].mxu0 }
 0x392   :  { %v1024_v38 = vadd.f32 %v1023_v24, %v2672_v6  ;;  %v1025_v60 = vpop.f32.mrb[41].mxu0 }
 0x393   :  { %v1026_v33 = vadd.f32 %v1025_v60, %v2676_v18  ;;  %v1027_v2 = vpop.f32.mrb[42].mxu0  ;;  %1307 = vmatprep.mubr.bf16.mxu1 %v1117_v13 }
 0x394   :  { %v1028_v14 = vadd.f32 %v1027_v2, %v2672_v6  ;;  %v1029_v10 = vpop.f32.mrb[43].mxu0  ;;  %1308 = vmatmul.mubr.bf16.gmra.mrb[36].mxu1 %v1116_v12  ;;  %v1090_v21 = vmax.f32 %v1024_v38, 0.0 }
 0x395   :  { %v1030_v20 = vadd.f32 %v1029_v10, %v2676_v18  ;;  %v1091_v28 = vmax.f32 %v1026_v33, 0.0 }
 0x396   :  { %v1092_v22 = vmax.f32 %v1028_v14, 0.0 }
 0x397   :  { %v1093_v1 = vmax.f32 %v1030_v20, 0.0 }
 0x398   :  { %v1118_v27 = vpack.c.bf16 %v1092_v22, %v1090_v21 }
 0x399   :  { %v1119_v47 = vpack.c.bf16 %v1093_v1, %v1091_v28  ;;  %v1033_v55 = vpop.f32.mrb[44].mxu0 }
 0x39a   :  { %v1034_v5 = vadd.f32 %v1033_v55, %v2672_v6  ;;  %v1035_v50 = vpop.f32.mrb[45].mxu0 }
 0x39b   :  { %v1036_v0 = vadd.f32 %v1035_v50, %v2676_v18  ;;  %v1037_v44 = vpop.f32.mrb[46].mxu0  ;;  %1315 = vmatprep.mubr.bf16.mxu1 %v1119_v47 }
 0x39c   :  { %v1038_v34 = vadd.f32 %v1037_v44, %v2672_v6  ;;  %v1039_v42 = vpop.f32.mrb[47].mxu0  ;;  %1316 = vmatmul.mubr.bf16.gmra.mrb[40].mxu1 %v1118_v27  ;;  %v1094_v25 = vmax.f32 %v1034_v5, 0.0 }
 0x39d   :  { %v1040_v45 = vadd.f32 %v1039_v42, %v2676_v18  ;;  %v1095_v46 = vmax.f32 %v1036_v0, 0.0 }
 0x39e   :  { %v1096_v52 = vmax.f32 %v1038_v34, 0.0 }
 0x39f   :  { %v1097_v53 = vmax.f32 %v1040_v45, 0.0 }
 0x3a0   :  { %v1120_v57 = vpack.c.bf16 %v1096_v52, %v1094_v25 }
 0x3a1   :  { %v1121_v54 = vpack.c.bf16 %v1097_v53, %v1095_v46  ;;  %v1043_v59 = vpop.f32.mrb[48].mxu0 }
 0x3a2   :  { %v1044_v17 = vadd.f32 %v1043_v59, %v2672_v6  ;;  %v1045_v31 = vpop.f32.mrb[49].mxu0 }
 0x3a3   :  { %v1046_v58 = vadd.f32 %v1045_v31, %v2676_v18  ;;  %v1047_v61 = vpop.f32.mrb[50].mxu0  ;;  %1323 = vmatprep.mubr.bf16.mxu1 %v1121_v54 }
 0x3a4   :  { %v1048_v16 = vadd.f32 %v1047_v61, %v2672_v6  ;;  %v1049_v30 = vpop.f32.mrb[51].mxu0  ;;  %1324 = vmatmul.mubr.bf16.gmra.mrb[44].mxu1 %v1120_v57  ;;  %v1098_v49 = vmax.f32 %v1044_v17, 0.0 }
 0x3a5   :  { %v1050_v37 = vadd.f32 %v1049_v30, %v2676_v18  ;;  %v1099_v23 = vmax.f32 %v1046_v58, 0.0 }
 0x3a6   :  { %v1100_v48 = vmax.f32 %v1048_v16, 0.0 }
 0x3a7   :  { %v1101_v8 = vmax.f32 %v1050_v37, 0.0 }
 0x3a8   :  { %v1122_v9 = vpack.c.bf16 %v1100_v48, %v1098_v49 }
 0x3a9   :  { %v1123_v19 = vpack.c.bf16 %v1101_v8, %v1099_v23  ;;  %v1053_v62 = vpop.f32.mrb[52].mxu0  ;;  %v2713_v8 = vld [vmem:[%s2949_s4 + $0x1] ss:$0 sm:$0xff] }
 0x3aa   :  { %v1054_v41 = vadd.f32 %v1053_v62, %v2672_v6  ;;  %v1055_v12 = vpop.f32.mrb[53].mxu0 }
 0x3ab   :  { %v1056_v13 = vadd.f32 %v1055_v12, %v2676_v18  ;;  %v1057_v24 = vpop.f32.mrb[54].mxu0  ;;  %1331 = vmatprep.mubr.bf16.mxu1 %v1123_v19 }
 0x3ac   :  { %v1058_v38 = vadd.f32 %v1057_v24, %v2672_v6  ;;  %v1059_v60 = vpop.f32.mrb[55].mxu0  ;;  %1332 = vmatmul.mubr.bf16.gmra.mrb[48].mxu1 %v1122_v9  ;;  %v1102_v2 = vmax.f32 %v1054_v41, 0.0 }
 0x3ad   :  { %v1060_v33 = vadd.f32 %v1059_v60, %v2676_v18  ;;  %v1103_v10 = vmax.f32 %v1056_v13, 0.0 }
 0x3ae   :  { %v1104_v14 = vmax.f32 %v1058_v38, 0.0 }
 0x3af   :  { %v1105_v20 = vmax.f32 %v1060_v33, 0.0 }
 0x3b0   :  { %v1124_v21 = vpack.c.bf16 %v1104_v14, %v1102_v2 }
 0x3b1   :  { %v1125_v22 = vpack.c.bf16 %v1105_v20, %v1103_v10  ;;  %v1063_v28 = vpop.f32.mrb[56].mxu0 }
 0x3b2   :  { %v1064_v1 = vadd.f32 %v1063_v28, %v2672_v6  ;;  %v1065_v27 = vpop.f32.mrb[57].mxu0 }
 0x3b3   :  { %v1066_v47 = vadd.f32 %v1065_v27, %v2676_v18  ;;  %v1067_v55 = vpop.f32.mrb[58].mxu0  ;;  %1339 = vmatprep.mubr.bf16.mxu1 %v1125_v22 }
 0x3b4   :  { %v1068_v5 = vadd.f32 %v1067_v55, %v2672_v6  ;;  %v1069_v50 = vpop.f32.mrb[59].mxu0  ;;  %1340 = vmatmul.mubr.bf16.gmra.mrb[52].mxu1 %v1124_v21  ;;  %v1106_v44 = vmax.f32 %v1064_v1, 0.0 }
 0x3b5   :  { %v1070_v0 = vadd.f32 %v1069_v50, %v2676_v18  ;;  %v1107_v42 = vmax.f32 %v1066_v47, 0.0 }
 0x3b6   :  { %v1108_v34 = vmax.f32 %v1068_v5, 0.0 }
 0x3b7   :  { %v1109_v45 = vmax.f32 %v1070_v0, 0.0 }
 0x3b8   :  { %v1126_v25 = vpack.c.bf16 %v1108_v34, %v1106_v44 }
 0x3b9   :  { %v1127_v52 = vpack.c.bf16 %v1109_v45, %v1107_v42  ;;  %v1073_v46 = vpop.f32.mrb[60].mxu0 }
 0x3ba   :  { %v1074_v53 = vadd.f32 %v1073_v46, %v2672_v6  ;;  %v1075_v57 = vpop.f32.mrb[61].mxu0 }
 0x3bb   :  { %v1076_v54 = vadd.f32 %v1075_v57, %v2676_v18  ;;  %v1077_v59 = vpop.f32.mrb[62].mxu0  ;;  %1347 = vmatprep.mubr.bf16.mxu1 %v1127_v52 }
 0x3bc   :  { %v1078_v17 = vadd.f32 %v1077_v59, %v2672_v6  ;;  %v1079_v31 = vpop.f32.mrb[63].mxu0  ;;  %1348 = vmatmul.mubr.bf16.gmra.mrb[56].mxu1 %v1126_v25  ;;  %v1110_v61 = vmax.f32 %v1074_v53, 0.0 }
 0x3bd   :  { %v1080_v58 = vadd.f32 %v1079_v31, %v2676_v18  ;;  %v1111_v30 = vmax.f32 %v1076_v54, 0.0 }
 0x3be   :  { %v1112_v16 = vmax.f32 %v1078_v17, 0.0 }
 0x3bf   :  { %v1113_v37 = vmax.f32 %v1080_v58, 0.0 }
 0x3c0   :  { %v1128_v49 = vpack.c.bf16 %v1112_v16, %v1110_v61 }
 0x3c1   :  { %v1129_v48 = vpack.c.bf16 %v1113_v37, %v1111_v30 }
 0x3c3   :  { %1355 = vmatprep.mubr.bf16.mxu1 %v1129_v48 }
 0x3c4   :  { %1356 = vmatmul.mubr.bf16.gmra.mrb[60].mxu1 %v1128_v49 }
 0x45f   :  { %v1840_v23 = vpop.f32.mrb[32].mxu1 }
 0x460   :  { %v1841_v9 = vpop.f32.mrb[33].mxu1 }
 0x461   :  { %v1842_v6 = vadd.f32 %v1841_v9, %v1840_v23  ;;  %v1843_v19 = vpop.f32.mrb[34].mxu1 }
 0x462   :  { %v1844_v62 = vpop.f32.mrb[35].mxu1 }
 0x463   :  { %v1302_v18 = vadd.f32 %v1842_v6, %v2713_v8  ;;  %v1845_v41 = vadd.f32 %v1844_v62, %v1843_v19 }
 0x465   :  { %v1305_v12 = vadd.f32 %v1845_v41, %v2713_v8  ;;  %v2718_v13 = vadd.f32 %v1302_v18, %v2532_v43 }
 0x467   :  { %1380 = vadd.xlane.f32.xlu0 %v2718_v13  ;;  %v1846_v24 = vpop.f32.mrb[36].mxu1  ;;  %v2722_v38 = vadd.f32 %v1305_v12, %v2535_v26  ;;  %v1428_v14 = vmul.f32 %v2718_v13, %v2718_v13 }
 0x468   :  { %v1847_v60 = vpop.f32.mrb[37].mxu1 }
 0x469   :  { %v1848_v33 = vadd.f32 %v1847_v60, %v1846_v24  ;;  %1382 = vadd.xlane.f32.xlu1 %v2722_v38  ;;  %v1849_v2 = vpop.f32.mrb[38].mxu1  ;;  %v1429_v43 = vmul.f32 %v2722_v38, %v2722_v38 }
 0x46a   :  { %v1850_v10 = vpop.f32.mrb[39].mxu1 }
 0x46b   :  { %v1310_v20 = vadd.f32 %v1848_v33, %v2713_v8  ;;  %v1851_v21 = vadd.f32 %v1850_v10, %v1849_v2  ;;  %1444 = vadd.xlane.f32.xlu0 %v1428_v14 }
 0x46d   :  { %v1313_v22 = vadd.f32 %v1851_v21, %v2713_v8  ;;  %1446 = vadd.xlane.f32.xlu1 %v1429_v43  ;;  %v2732_v26 = vadd.f32 %v1310_v20, %v2554_v3 }
 0x46f   :  { %1384 = vadd.xlane.f32.xlu0 %v2732_v26  ;;  %v1852_v28 = vpop.f32.mrb[40].mxu1  ;;  %v2736_v1 = vadd.f32 %v1313_v22, %v2557_v4  ;;  %v1430_v5 = vmul.f32 %v2732_v26, %v2732_v26 }
 0x470   :  { %v1853_v27 = vpop.f32.mrb[41].mxu1 }
 0x471   :  { %v1854_v47 = vadd.f32 %v1853_v27, %v1852_v28  ;;  %1386 = vadd.xlane.f32.xlu1 %v2736_v1  ;;  %v1855_v55 = vpop.f32.mrb[42].mxu1  ;;  %v1431_v3 = vmul.f32 %v2736_v1, %v2736_v1 }
 0x472   :  { %v1856_v50 = vpop.f32.mrb[43].mxu1 }
 0x473   :  { %v1318_v0 = vadd.f32 %v1854_v47, %v2713_v8  ;;  %v1857_v44 = vadd.f32 %v1856_v50, %v1855_v55  ;;  %1448 = vadd.xlane.f32.xlu0 %v1430_v5 }
 0x475   :  { %v1321_v34 = vadd.f32 %v1857_v44, %v2713_v8  ;;  %1450 = vadd.xlane.f32.xlu1 %v1431_v3  ;;  %v2746_v4 = vadd.f32 %v1318_v0, %v2577_v39 }
 0x477   :  { %1388 = vadd.xlane.f32.xlu0 %v2746_v4  ;;  %v1858_v42 = vpop.f32.mrb[44].mxu1  ;;  %v2750_v45 = vadd.f32 %v1321_v34, %v2580_v15  ;;  %v1432_v53 = vmul.f32 %v2746_v4, %v2746_v4 }
 0x478   :  { %v1859_v25 = vpop.f32.mrb[45].mxu1 }
 0x479   :  { %v1860_v52 = vadd.f32 %v1859_v25, %v1858_v42  ;;  %1390 = vadd.xlane.f32.xlu1 %v2750_v45  ;;  %v1861_v46 = vpop.f32.mrb[46].mxu1  ;;  %v1433_v39 = vmul.f32 %v2750_v45, %v2750_v45 }
 0x47a   :  { %v1862_v57 = vpop.f32.mrb[47].mxu1 }
 0x47b   :  { %v1326_v54 = vadd.f32 %v1860_v52, %v2713_v8  ;;  %v1863_v59 = vadd.f32 %v1862_v57, %v1861_v46  ;;  %1452 = vadd.xlane.f32.xlu0 %v1432_v53 }
 0x47d   :  { %v1329_v17 = vadd.f32 %v1863_v59, %v2713_v8  ;;  %1454 = vadd.xlane.f32.xlu1 %v1433_v39  ;;  %v2760_v15 = vadd.f32 %v1326_v54, %v2600_v11 }
 0x47f   :  { %1392 = vadd.xlane.f32.xlu0 %v2760_v15  ;;  %v1864_v31 = vpop.f32.mrb[48].mxu1  ;;  %v2764_v58 = vadd.f32 %v1329_v17, %v2603_v32  ;;  %v1434_v37 = vmul.f32 %v2760_v15, %v2760_v15 }
 0x480   :  { %v1865_v61 = vpop.f32.mrb[49].mxu1 }
 0x481   :  { %v1866_v16 = vadd.f32 %v1865_v61, %v1864_v31  ;;  %1394 = vadd.xlane.f32.xlu1 %v2764_v58  ;;  %v1867_v30 = vpop.f32.mrb[50].mxu1  ;;  %v1435_v11 = vmul.f32 %v2764_v58, %v2764_v58 }
 0x482   :  { %v1868_v49 = vpop.f32.mrb[51].mxu1 }
 0x483   :  { %v1334_v48 = vadd.f32 %v1866_v16, %v2713_v8  ;;  %v1869_v23 = vadd.f32 %v1868_v49, %v1867_v30  ;;  %1456 = vadd.xlane.f32.xlu0 %v1434_v37 }
 0x485   :  { %v1337_v9 = vadd.f32 %v1869_v23, %v2713_v8  ;;  %1458 = vadd.xlane.f32.xlu1 %v1435_v11  ;;  %v2774_v32 = vadd.f32 %v1334_v48, %v2619_v51 }
 0x487   :  { %1396 = vadd.xlane.f32.xlu0 %v2774_v32  ;;  %v1870_v6 = vpop.f32.mrb[52].mxu1  ;;  %v2778_v19 = vadd.f32 %v1337_v9, %v2622_v35  ;;  %v1436_v12 = vmul.f32 %v2774_v32, %v2774_v32 }
 0x488   :  { %v1871_v62 = vpop.f32.mrb[53].mxu1 }
 0x489   :  { %v1872_v18 = vadd.f32 %v1871_v62, %v1870_v6  ;;  %1398 = vadd.xlane.f32.xlu1 %v2778_v19  ;;  %v1873_v41 = vpop.f32.mrb[54].mxu1  ;;  %v1437_v51 = vmul.f32 %v2778_v19, %v2778_v19 }
 0x48a   :  { %v1874_v24 = vpop.f32.mrb[55].mxu1 }
 0x48b   :  { %v1342_v60 = vadd.f32 %v1872_v18, %v2713_v8  ;;  %v1875_v33 = vadd.f32 %v1874_v24, %v1873_v41  ;;  %1460 = vadd.xlane.f32.xlu0 %v1436_v12 }
 0x48d   :  { %v1345_v2 = vadd.f32 %v1875_v33, %v2713_v8  ;;  %1462 = vadd.xlane.f32.xlu1 %v1437_v51  ;;  %v2788_v35 = vadd.f32 %v1342_v60, %v2634_v40 }
 0x48f   :  { %1400 = vadd.xlane.f32.xlu0 %v2788_v35  ;;  %v1876_v14 = vpop.f32.mrb[56].mxu1  ;;  %v2792_v10 = vadd.f32 %v1345_v2, %v2637_v56  ;;  %v1438_v22 = vmul.f32 %v2788_v35, %v2788_v35 }
 0x490   :  { %v1877_v20 = vpop.f32.mrb[57].mxu1 }
 0x491   :  { %v1878_v21 = vadd.f32 %v1877_v20, %v1876_v14  ;;  %1402 = vadd.xlane.f32.xlu1 %v2792_v10  ;;  %v1879_v43 = vpop.f32.mrb[58].mxu1  ;;  %v1439_v40 = vmul.f32 %v2792_v10, %v2792_v10 }
 0x492   :  { %v1880_v28 = vpop.f32.mrb[59].mxu1 }
 0x493   :  { %v1350_v27 = vadd.f32 %v1878_v21, %v2713_v8  ;;  %v1881_v47 = vadd.f32 %v1880_v28, %v1879_v43  ;;  %1464 = vadd.xlane.f32.xlu0 %v1438_v22 }
 0x495   :  { %v1353_v55 = vadd.f32 %v1881_v47, %v2713_v8  ;;  %1466 = vadd.xlane.f32.xlu1 %v1439_v40  ;;  %v2802_v56 = vadd.f32 %v1350_v27, %v2648_v7 }
 0x497   :  { %1404 = vadd.xlane.f32.xlu0 %v2802_v56  ;;  %v1882_v5 = vpop.f32.mrb[60].mxu1  ;;  %v2806_v50 = vadd.f32 %v1353_v55, %v2651_v63  ;;  %v1440_v34 = vmul.f32 %v2802_v56, %v2802_v56  ;;  %v2835_v55 = vld [vmem:[%s2950_s5 + $0x1] ss:$0 sm:$0xff]  ;;  %s2119_s5 = smov [#allocation7]  }
 0x498   :  { %v1883_v0 = vpop.f32.mrb[61].mxu1 }
 0x499   :  { %v1884_v44 = vadd.f32 %v1883_v0, %v1882_v5  ;;  %1406 = vadd.xlane.f32.xlu1 %v2806_v50  ;;  %v1885_v3 = vpop.f32.mrb[62].mxu1  ;;  %v1441_v7 = vmul.f32 %v2806_v50, %v2806_v50 }
 0x49a   :  { %v1886_v42 = vpop.f32.mrb[63].mxu1 }
 0x49b   :  { %v1358_v25 = vadd.f32 %v1884_v44, %v2713_v8  ;;  %v1887_v52 = vadd.f32 %v1886_v42, %v1885_v3  ;;  %1468 = vadd.xlane.f32.xlu0 %v1440_v34 }
 0x49d   :  { %v1361_v46 = vadd.f32 %v1887_v52, %v2713_v8  ;;  %1470 = vadd.xlane.f32.xlu1 %v1441_v7  ;;  %v2816_v63 = vadd.f32 %v1358_v25, %v2660_v29 }
 0x49f   :  { %1408 = vadd.xlane.f32.xlu0 %v2816_v63  ;;  %v2820_v53 = vadd.f32 %v1361_v46, %v2663_v36  ;;  %v1442_v57 = vmul.f32 %v2816_v63, %v2816_v63 }
 0x4a1   :  { %1410 = vadd.xlane.f32.xlu1 %v2820_v53  ;;  %v1443_v54 = vmul.f32 %v2820_v53, %v2820_v53 }
 0x4a3   :  { %1472 = vadd.xlane.f32.xlu0 %v1442_v57 }
 0x4a5   :  { %1474 = vadd.xlane.f32.xlu1 %v1443_v54 }
 0x4f4   :  { %v1381_v8 = vpop.xlane.xlu0 %1380 }
 0x4f5   :  { %v1412_v59 = vmul.f32 0.0078125, %v1381_v8 }
 0x4f6   :  { %v1383_v39 = vpop.xlane.xlu1 %1382 }
 0x4f7   :  { %v1413_v29 = vmul.f32 0.0078125, %v1383_v39  ;;  %v1492_v31 = vmul.f32 %v1412_v59, %v1412_v59  ;;  %v1524_v28 = vsub.f32 %v2718_v13, %v1412_v59  ;;  %v2843_v13 = vld [vmem:[%s2951_s6 + $0x1] ss:$0 sm:$0xff]  ;;  %s1657_s6 = sshll.u32 %s2119_s5, 4  ;;  %s1658_s6 = int_to_ptr.vmem [resolvable:$true] %s1657_s6 }
 0x4f8   :  { %v1445_v17 = vpop.xlane.xlu0 %1444  ;;  %s2084_s14 = scalar_lea.vmem %s1658_s6, 2048  ;;  %p2089_p3 = scmp.lt.s32.totalorder %s1658_s6, %s1658_s6 }
 0x4f9   :  { %v1476_v61 = vmul.f32 0.0078125, %v1445_v17  ;;  %v1493_v36 = vmul.f32 %v1413_v29, %v1413_v29  ;;  %v1525_v44 = vsub.f32 %v2722_v38, %v1413_v29  ;;  %p2085_p2 = scmp.ne.s32.totalorder %s1658_s6, %s2084_s14  ;;  %p2090_p4 = scmp.lt.s32.totalorder %s2084_s14, %s2084_s14 }
 0x4fa   :  { %v1447_v16 = vpop.xlane.xlu1 %1446 }
 0x4fb   :  { %v1508_v30 = vsub.f32 %v1476_v61, %v1492_v31  ;;  %v1477_v37 = vmul.f32 0.0078125, %v1447_v16  ;;  %p2091_p5 = por %p2090_p4, %p2089_p3 }
 0x4fc   :  { %v1385_v49 = vpop.xlane.xlu0 %1384 }
 0x4fd   :  { %v1540_v48 = vadd.f32 1e-05, %v1508_v30  ;;  %v1509_v23 = vsub.f32 %v1477_v37, %v1493_v36  ;;  %v1414_v11 = vmul.f32 0.0078125, %v1385_v49  ;;  %p2092_p6 = pnand %p2091_p5, %p2085_p2 }
 0x4fe   :  { %v1387_v9 = vpop.xlane.xlu1 %1386 }
 0x4ff   :  { %2008 = vrsqrt.f32 %v1540_v48  ;;  %v1541_v6 = vadd.f32 1e-05, %v1509_v23  ;;  %v1415_v62 = vmul.f32 0.0078125, %v1387_v9  ;;  %v1494_v41 = vmul.f32 %v1414_v11, %v1414_v11 }
 0x500   :  { %v1449_v18 = vpop.xlane.xlu0 %1448  ;;  %v1526_v16 = vsub.f32 %v2732_v26, %v1414_v11 }
 0x501   :  { %2010 = vrsqrt.f32 %v1541_v6  ;;  %v1478_v12 = vmul.f32 0.0078125, %v1449_v18  ;;  %v1495_v60 = vmul.f32 %v1415_v62, %v1415_v62  ;;  %v1527_v23 = vsub.f32 %v2736_v1, %v1415_v62 }
 0x502   :  { %v1451_v24 = vpop.xlane.xlu1 %1450 }
 0x503   :  { %v1510_v33 = vsub.f32 %v1478_v12, %v1494_v41  ;;  %v1479_v51 = vmul.f32 0.0078125, %v1451_v24 }
 0x504   :  { %v1389_v2 = vpop.xlane.xlu0 %1388 }
 0x505   :  { %v1542_v14 = vadd.f32 1e-05, %v1510_v33  ;;  %v1511_v20 = vsub.f32 %v1479_v51, %v1495_v60  ;;  %v2827_v21 = vmul.f32 0.0078125, %v1389_v2 }
 0x506   :  { %v1391_v43 = vpop.xlane.xlu1 %1390 }
 0x507   :  { %2012 = vrsqrt.f32 %v1542_v14  ;;  %v1543_v22 = vadd.f32 1e-05, %v1511_v20  ;;  %v2830_v27 = vmul.f32 0.0078125, %v1391_v43  ;;  %v1496_v5 = vmul.f32 %v2827_v21, %v2827_v21 }
 0x508   :  { %v1453_v47 = vpop.xlane.xlu0 %1452 }
 0x509   :  { %v2009_v40 = vpop.eup %2008  ;;  %2014 = vrsqrt.f32 %v1543_v22  ;;  %v1480_v0 = vmul.f32 0.0078125, %v1453_v47  ;;  %v1497_v25 = vmul.f32 %v2830_v27, %v2830_v27  ;;  %v1528_v22 = vsub.f32 %v2746_v4, %v2827_v21 }
 0x50a   :  { %v1572_v3 = vmul.f32 %v2009_v40, %v1524_v28  ;;  %v1455_v34 = vpop.xlane.xlu1 %1454 }
 0x50b   :  { %v2011_v42 = vpop.eup %2010  ;;  %v1512_v52 = vsub.f32 %v1480_v0, %v1496_v5  ;;  %v1481_v7 = vmul.f32 0.0078125, %v1455_v34 }
 0x50c   :  { %v1596_v46 = vmul.f32 %v2835_v55, %v1572_v3  ;;  %v1573_v57 = vmul.f32 %v2011_v42, %v1525_v44  ;;  %v1393_v54 = vpop.xlane.xlu0 %1392  ;;  %v1529_v44 = vsub.f32 %v2750_v45, %v2830_v27 }
 0x50d   :  { %v1544_v8 = vadd.f32 1e-05, %v1512_v52  ;;  %v1513_v59 = vsub.f32 %v1481_v7, %v1497_v25  ;;  %v2848_v38 = vmul.f32 0.0078125, %v1393_v54 }
 0x50e   :  { %v1620_v39 = vadd.f32 %v2843_v13, %v1596_v46  ;;  %v1597_v29 = vmul.f32 %v2835_v55, %v1573_v57  ;;  %v1395_v17 = vpop.xlane.xlu1 %1394 }
 0x50f   :  { %2016 = vrsqrt.f32 %v1544_v8  ;;  %v1545_v31 = vadd.f32 1e-05, %v1513_v59  ;;  %v2854_v36 = vmul.f32 0.0078125, %v1395_v17  ;;  %v1498_v49 = vmul.f32 %v2848_v38, %v2848_v38 }
 0x510   :  { %1636 = vst [vmem:[#allocation7] sm:$0xff] %v1620_v39  ;;  %v1621_v61 = vadd.f32 %v2843_v13, %v1597_v29  ;;  %v1457_v30 = vpop.xlane.xlu0 %1456  ;;  %v1530_v17 = vsub.f32 %v2760_v15, %v2848_v38 }
 0x511   :  { %v2013_v37 = vpop.eup %2012  ;;  %2018 = vrsqrt.f32 %v1545_v31  ;;  %v1482_v48 = vmul.f32 0.0078125, %v1457_v30  ;;  %v1499_v41 = vmul.f32 %v2854_v36, %v2854_v36 }
 0x512   :  { %1637 = vst [vmem:[#allocation7 + $0x8] sm:$0xff] %v1621_v61  ;;  %v1574_v9 = vmul.f32 %v2013_v37, %v1526_v16  ;;  %v1459_v6 = vpop.xlane.xlu1 %1458 }
 0x513   :  { %v2015_v18 = vpop.eup %2014  ;;  %v1514_v12 = vsub.f32 %v1482_v48, %v1498_v49  ;;  %v1483_v26 = vmul.f32 0.0078125, %v1459_v6  ;;  %v1531_v49 = vsub.f32 %v2764_v58, %v2854_v36 }
 0x514   :  { %v1598_v11 = vmul.f32 %v2835_v55, %v1574_v9  ;;  %v1575_v24 = vmul.f32 %v2015_v18, %v1527_v23  ;;  %v1397_v60 = vpop.xlane.xlu0 %1396 }
 0x515   :  { %v1546_v33 = vadd.f32 1e-05, %v1514_v12  ;;  %v1515_v51 = vsub.f32 %v1483_v26, %v1499_v41  ;;  %v2862_v2 = vmul.f32 0.0078125, %v1397_v60 }
 0x516   :  { %v1622_v14 = vadd.f32 %v2843_v13, %v1598_v11  ;;  %v1599_v1 = vmul.f32 %v2835_v55, %v1575_v24  ;;  %v1399_v62 = vpop.xlane.xlu1 %1398 }
 0x517   :  { %2020 = vrsqrt.f32 %v1546_v33  ;;  %v1547_v20 = vadd.f32 1e-05, %v1515_v51  ;;  %v2869_v28 = vmul.f32 0.0078125, %v1399_v62  ;;  %v1500_v5 = vmul.f32 %v2862_v2, %v2862_v2 }
 0x518   :  { %1638 = vst [vmem:[#allocation7 + $0x10] sm:$0xff] %v1622_v14  ;;  %v1623_v43 = vadd.f32 %v2843_v13, %v1599_v1  ;;  %v1461_v47 = vpop.xlane.xlu0 %1460  ;;  %v1532_v14 = vsub.f32 %v2774_v32, %v2862_v2 }
 0x519   :  { %v2017_v40 = vpop.eup %2016  ;;  %2022 = vrsqrt.f32 %v1547_v20  ;;  %v1484_v0 = vmul.f32 0.0078125, %v1461_v47  ;;  %v1501_v25 = vmul.f32 %v2869_v28, %v2869_v28  ;;  %v1533_v47 = vsub.f32 %v2778_v19, %v2869_v28 }
 0x51a   :  { %1639 = vst [vmem:[#allocation7 + $0x18] sm:$0xff] %v1623_v43  ;;  %v1576_v3 = vmul.f32 %v2017_v40, %v1528_v22  ;;  %v1463_v34 = vpop.xlane.xlu1 %1462 }
 0x51b   :  { %v2019_v42 = vpop.eup %2018  ;;  %v1516_v4 = vsub.f32 %v1484_v0, %v1500_v5  ;;  %v1485_v21 = vmul.f32 0.0078125, %v1463_v34 }
 0x51c   :  { %v1600_v52 = vmul.f32 %v2835_v55, %v1576_v3  ;;  %v1577_v7 = vmul.f32 %v2019_v42, %v1529_v44  ;;  %v1401_v46 = vpop.xlane.xlu0 %1400 }
 0x51d   :  { %v1548_v57 = vadd.f32 1e-05, %v1516_v4  ;;  %v1517_v54 = vsub.f32 %v1485_v21, %v1501_v25  ;;  %v2878_v8 = vmul.f32 0.0078125, %v1401_v46 }
 0x51e   :  { %v1624_v59 = vadd.f32 %v2843_v13, %v1600_v52  ;;  %v1601_v45 = vmul.f32 %v2835_v55, %v1577_v7  ;;  %v1403_v27 = vpop.xlane.xlu1 %1402 }
 0x51f   :  { %2024 = vrsqrt.f32 %v1548_v57  ;;  %v1549_v39 = vadd.f32 1e-05, %v1517_v54  ;;  %v2885_v31 = vmul.f32 0.0078125, %v1403_v27  ;;  %v1502_v30 = vmul.f32 %v2878_v8, %v2878_v8 }
 0x520   :  { %1640 = vst [vmem:[#allocation7 + $0x20] sm:$0xff] %v1624_v59  ;;  %v1625_v29 = vadd.f32 %v2843_v13, %v1601_v45  ;;  %v1465_v61 = vpop.xlane.xlu0 %1464  ;;  %v1534_v57 = vsub.f32 %v2788_v35, %v2878_v8 }
 0x521   :  { %v2021_v16 = vpop.eup %2020  ;;  %2026 = vrsqrt.f32 %v1549_v39  ;;  %v1486_v37 = vmul.f32 0.0078125, %v1465_v61  ;;  %v1503_v6 = vmul.f32 %v2885_v31, %v2885_v31 }
 0x522   :  { %1641 = vst [vmem:[#allocation7 + $0x28] sm:$0xff] %v1625_v29  ;;  %v1578_v48 = vmul.f32 %v2021_v16, %v1530_v17  ;;  %v1467_v23 = vpop.xlane.xlu1 %1466  ;;  %v1535_v29 = vsub.f32 %v2792_v10, %v2885_v31 }
 0x523   :  { %v2023_v9 = vpop.eup %2022  ;;  %v1518_v15 = vsub.f32 %v1486_v37, %v1502_v30  ;;  %v1487_v38 = vmul.f32 0.0078125, %v1467_v23 }
 0x524   :  { %v1602_v18 = vmul.f32 %v2835_v55, %v1578_v48  ;;  %v1579_v41 = vmul.f32 %v2023_v9, %v1531_v49  ;;  %v1405_v12 = vpop.xlane.xlu0 %1404 }
 0x525   :  { %v1550_v26 = vadd.f32 1e-05, %v1518_v15  ;;  %v1519_v11 = vsub.f32 %v1487_v38, %v1503_v6  ;;  %v2894_v24 = vmul.f32 0.0078125, %v1405_v12 }
 0x526   :  { %v1626_v60 = vadd.f32 %v2843_v13, %v1602_v18  ;;  %v1603_v58 = vmul.f32 %v2835_v55, %v1579_v41  ;;  %v1407_v36 = vpop.xlane.xlu1 %1406 }
 0x527   :  { %2028 = vrsqrt.f32 %v1550_v26  ;;  %v1551_v33 = vadd.f32 1e-05, %v1519_v11  ;;  %v1425_v1 = vmul.f32 0.0078125, %v1407_v36  ;;  %v1504_v43 = vmul.f32 %v2894_v24, %v2894_v24 }
 0x528   :  { %1642 = vst [vmem:[#allocation7 + $0x30] sm:$0xff] %v1626_v60  ;;  %v1627_v51 = vadd.f32 %v2843_v13, %v1603_v58  ;;  %v1469_v62 = vpop.xlane.xlu0 %1468  ;;  %v1536_v31 = vsub.f32 %v2802_v56, %v2894_v24 }
 0x529   :  { %v2025_v20 = vpop.eup %2024  ;;  %2030 = vrsqrt.f32 %v1551_v33  ;;  %v1488_v22 = vmul.f32 0.0078125, %v1469_v62  ;;  %v1505_v44 = vmul.f32 %v1425_v1, %v1425_v1  ;;  %v1537_v18 = vsub.f32 %v2806_v50, %v1425_v1 }
 0x52a   :  { %1643 = vst [vmem:[#allocation7 + $0x38] sm:$0xff] %v1627_v51  ;;  %v1580_v40 = vmul.f32 %v2025_v20, %v1532_v14  ;;  %v1471_v5 = vpop.xlane.xlu1 %1470 }
 0x52b   :  { %v2027_v0 = vpop.eup %2026  ;;  %v1520_v3 = vsub.f32 %v1488_v22, %v1504_v43  ;;  %v1489_v34 = vmul.f32 0.0078125, %v1471_v5 }
 0x52c   :  { %v1604_v32 = vmul.f32 %v2835_v55, %v1580_v40  ;;  %v1581_v2 = vmul.f32 %v2027_v0, %v1533_v47  ;;  %v1409_v42 = vpop.xlane.xlu0 %1408 }
 0x52d   :  { %v1552_v25 = vadd.f32 1e-05, %v1520_v3  ;;  %v1521_v4 = vsub.f32 %v1489_v34, %v1505_v44  ;;  %v1426_v21 = vmul.f32 0.0078125, %v1409_v42 }
 0x52e   :  { %v1628_v52 = vadd.f32 %v2843_v13, %v1604_v32  ;;  %v1605_v7 = vmul.f32 %v2835_v55, %v1581_v2  ;;  %v1411_v46 = vpop.xlane.xlu1 %1410 }
 0x52f   :  { %2032 = vrsqrt.f32 %v1552_v25  ;;  %v1553_v19 = vadd.f32 1e-05, %v1521_v4  ;;  %v1427_v54 = vmul.f32 0.0078125, %v1411_v46  ;;  %v1506_v27 = vmul.f32 %v1426_v21, %v1426_v21 }
 0x530   :  { %1644 = vst [vmem:[#allocation7 + $0x40] sm:$0xff] %v1628_v52  ;;  %v1629_v28 = vadd.f32 %v2843_v13, %v1605_v7  ;;  %v1473_v59 = vpop.xlane.xlu0 %1472  ;;  %v1538_v33 = vsub.f32 %v2816_v63, %v1426_v21 }
 0x531   :  { %v2029_v45 = vpop.eup %2028  ;;  %2034 = vrsqrt.f32 %v1553_v19  ;;  %v1490_v39 = vmul.f32 0.0078125, %v1473_v59  ;;  %v1507_v30 = vmul.f32 %v1427_v54, %v1427_v54  ;;  %v1539_v24 = vsub.f32 %v2820_v53, %v1427_v54 }
 0x532   :  { %1645 = vst [vmem:[#allocation7 + $0x48] sm:$0xff] %v1629_v28  ;;  %v1582_v17 = vmul.f32 %v2029_v45, %v1534_v57  ;;  %v1475_v61 = vpop.xlane.xlu1 %1474 }
 0x533   :  { %v2031_v16 = vpop.eup %2030  ;;  %v1522_v37 = vsub.f32 %v1490_v39, %v1506_v27  ;;  %v1491_v49 = vmul.f32 0.0078125, %v1475_v61 }
 0x534   :  { %v1606_v48 = vmul.f32 %v2835_v55, %v1582_v17  ;;  %v1583_v23 = vmul.f32 %v2031_v16, %v1535_v29 }
 0x535   :  { %v1554_v35 = vadd.f32 1e-05, %v1522_v37  ;;  %v1523_v8 = vsub.f32 %v1491_v49, %v1507_v30 }
 0x536   :  { %v1630_v9 = vadd.f32 %v2843_v13, %v1606_v48  ;;  %v1607_v6 = vmul.f32 %v2835_v55, %v1583_v23 }
 0x537   :  { %2036 = vrsqrt.f32 %v1554_v35  ;;  %v1555_v15 = vadd.f32 1e-05, %v1523_v8 }
 0x538   :  { %1646 = vst [vmem:[#allocation7 + $0x50] sm:$0xff] %v1630_v9  ;;  %v1631_v10 = vadd.f32 %v2843_v13, %v1607_v6 }
 0x539   :  { %v2033_v38 = vpop.eup %2032  ;;  %2038 = vrsqrt.f32 %v1555_v15 }
 0x53a   :  { %1647 = vst [vmem:[#allocation7 + $0x58] sm:$0xff] %v1631_v10  ;;  %v1584_v41 = vmul.f32 %v2033_v38, %v1536_v31 }
 0x53b   :  { %v2035_v12 = vpop.eup %2034 }
 0x53c   :  { %v1608_v26 = vmul.f32 %v2835_v55, %v1584_v41  ;;  %v1585_v11 = vmul.f32 %v2035_v12, %v1537_v18 }
 0x53e   :  { %v1632_v60 = vadd.f32 %v2843_v13, %v1608_v26  ;;  %v1609_v58 = vmul.f32 %v2835_v55, %v1585_v11 }
 0x540   :  { %1648 = vst [vmem:[#allocation7 + $0x60] sm:$0xff] %v1632_v60  ;;  %v1633_v36 = vadd.f32 %v2843_v13, %v1609_v58 }
 0x541   :  { %v2037_v56 = vpop.eup %2036 }
 0x542   :  { %1649 = vst [vmem:[#allocation7 + $0x68] sm:$0xff] %v1633_v36  ;;  %v1586_v51 = vmul.f32 %v2037_v56, %v1538_v33 }
 0x543   :  { %v2039_v50 = vpop.eup %2038 }
 0x544   :  { %v1610_v14 = vmul.f32 %v2835_v55, %v1586_v51  ;;  %v1587_v1 = vmul.f32 %v2039_v50, %v1539_v24 }
 0x546   :  { %v1634_v62 = vadd.f32 %v2843_v13, %v1610_v14  ;;  %v1611_v20 = vmul.f32 %v2835_v55, %v1587_v1 }
 0x548   :  { %1650 = vst [vmem:[#allocation7 + $0x70] sm:$0xff] %v1634_v62  ;;  %v1635_v43 = vadd.f32 %v2843_v13, %v1611_v20 }
 0x54a   :  { %1651 = vst [vmem:[#allocation7 + $0x78] sm:$0xff] %v1635_v43 }
 0x54b   :  { %2095 = shalt.err (!%p2092_p6)
}
 0x54c   :  { %s2096_s17 = scalar_lea.hbm %s2952_s7, 2048 }
 0x54d   :  { %p2097_p7 = scmp.ne.s32.totalorder %s2952_s7, %s2096_s17  ;;  %p2100_p8 = scmp.lt.u32.totalorder %s2096_s17, %s2952_s7 }
 0x54f   :  { %p2102_p9 = pnand %p2100_p8, %p2097_p7 }
 0x551   :  { %2105 = shalt.err (!%p2102_p9)
}
 0x552   :  { %1663 = dma.vmem_to_hbm [thread:$0]  %s1658_s6, 2048, %s2952_s7, [#allocation4], %s2113_s11, %s2113_s11, %s2114_s12  }
 0x553   :  { %2110 = dma.done.wait [#allocation4], 2048  }
 0x554   :  { %2111 = vsyncadd [#allocation4], 4294965248 }
 0x555   :  { %1667 = vsyncpa [#allocation3], 1 }
 0x556   :  { %1668 = vsyncpa [#allocation6], 1 }
 0x557   :  { %1669 = vsyncpa [#allocation4], 1 }

// kernel: tpu_custom_call.1
= control target key start
LH: loop header
LB: loop body
LE: loop exit
PB: predicated region body
PF: predicated region fallthrough
CT: control target
= control target key end

     0   :  { %12 = vsyncpa [#allocation3], 0  ;;  %s2945_s0 = inlined_call_operand.hbm [shape: f32[128,128], index: 0, kind: input, shape index: {}, may-alias: {0,7}]   ;;  %s2946_s1 = inlined_call_operand.vmem [shape: bf16[2,128,256], index: 1, kind: input, shape index: {}]   ;;  %s2947_s2 = inlined_call_operand.vmem [shape: f32[2,1,256], index: 2, kind: input, shape index: {}]   ;;  %s2948_s3 = inlined_call_operand.hbm [shape: bf16[2,256,128], index: 3, kind: input, shape index: {}]   ;;  %s2949_s4 = inlined_call_operand.vmem [shape: f32[2,1,128], index: 4, kind: input, shape index: {}]   ;;  %s2950_s5 = inlined_call_operand.vmem [shape: f32[2,1,128], index: 5, kind: input, shape index: {}]   ;;  %s2951_s6 = inlined_call_operand.vmem [shape: f32[2,1,128], index: 6, kind: input, shape index: {}]   ;;  %s2952_s7 = inlined_call_operand.hbm [shape: f32[128,128], index: 7, kind: output, shape index: {}, may-alias: {0,7}]  }
   0x1   :  { %13 = vsyncpa [#allocation6], 0 }
   0x2   :  { %14 = vsyncpa [#allocation4], 0  ;;  %s2112_s24 = smov [#allocation2]   ;;  %s2040_s28 = scalar_lea.hbm %s2945_s0, 2048 }
   0x3   :  { %s20_s25 = sshll.u32 %s2112_s24, 4  ;;  %p2041_p0 = scmp.ne.s32.totalorder %s2945_s0, %s2040_s28  ;;  %s21_s25 = int_to_ptr.vmem [resolvable:$true] %s20_s25 }
   0x4   :  { %p2044_p1 = scmp.lt.u32.totalorder %s2040_s28, %s2945_s0 }
   0x6   :  { %p2046_p2 = pnand %p2044_p1, %p2041_p0 }
   0x8   :  { %2049 = shalt.err (!%p2046_p2)
}
   0x9   :  { %s2050_s10 = scalar_lea.vmem %s21_s25, 2048  ;;  %p2055_p4 = scmp.lt.s32.totalorder %s21_s25, %s21_s25 }
   0xa   :  { %p2051_p3 = scmp.ne.s32.totalorder %s21_s25, %s2050_s10  ;;  %p2056_p5 = scmp.lt.s32.totalorder %s2050_s10, %s2050_s10 }
   0xc   :  { %p2057_p6 = por %p2056_p5, %p2055_p4 }
   0xe   :  { %p2058_p7 = pnand %p2057_p6, %p2051_p3 }
  0x10   :  { %2061 = shalt.err (!%p2058_p7)
}
  0x11   :  { %s2113_s11 = smov 128   ;;  %s2114_s12 = smov 8  }
  0x12   :  { %26 = dma.hbm_to_vmem [thread:$0]  %s2945_s0, 2048, %s21_s25, [#allocation3], %s2113_s11, %s2113_s11, %s2114_s12  }
  0x13   :  { %s2115_s15 = smov [#allocation5]   ;;  %s2062_s19 = scalar_lea.hbm %s2948_s3, 4096 }
  0x14   :  { %s36_s16 = sshll.u32 %s2115_s15, 4  ;;  %p2063_p8 = scmp.ne.s32.totalorder %s2948_s3, %s2062_s19  ;;  %s37_s16 = int_to_ptr.vmem [resolvable:$true] %s36_s16 }
  0x15   :  { %p2066_p9 = scmp.lt.u32.totalorder %s2062_s19, %s2948_s3 }
  0x17   :  { %p2068_p10 = pnand %p2066_p9, %p2063_p8 }
  0x19   :  { %2071 = shalt.err (!%p2068_p10)
}
  0x1a   :  { %s2072_s24 = scalar_lea.vmem %s37_s16, 4096  ;;  %p2077_p12 = scmp.lt.s32.totalorder %s37_s16, %s37_s16 }
  0x1b   :  { %p2073_p11 = scmp.ne.s32.totalorder %s37_s16, %s2072_s24  ;;  %p2078_p13 = scmp.lt.s32.totalorder %s2072_s24, %s2072_s24 }
  0x1d   :  { %p2079_p0 = por %p2078_p13, %p2077_p12 }
  0x1f   :  { %p2080_p1 = pnand %p2079_p0, %p2073_p11 }
  0x21   :  { %2083 = shalt.err (!%p2080_p1)
}
  0x22   :  { %s2116_s0 = smov 64   ;;  %s2117_s25 = smov 4  }
  0x23   :  { %42 = dma.hbm_to_vmem [thread:$0]  %s2948_s3, 4096, %s37_s16, [#allocation6], %s2116_s0, %s2116_s0, %s2117_s25  }
  0x24   :  { %2106 = dma.done.wait [#allocation3], 2048  }
  0x25   :  { %2107 = vsyncadd [#allocation3], 4294965248 }
  0x26   :  { %2108 = dma.done.wait [#allocation6], 4096  }
  0x27   :  { %2109 = vsyncadd [#allocation6], 4294963200  ;;  %v2118_v0 = vmov 0   ;;  %v1896_v1 = vld [vmem:[%s2946_s1 + $0x4] ss:$8 sps:$4 sm:$0xff]   ;;  %v1924_v18 = vld [vmem:[#allocation5 + $0x50] sm:$0xff]   ;;  %v98_v57 = vlaneseq }
  0x28   :  { %220 = vmatprep.mubr.bf16.mxu0 %v2118_v0  ;;  %v1898_v2 = vld [vmem:[%s2946_s1] ss:$8 sps:$4 sm:$0xff]   ;;  %188 = vmatprep.subr.bf16.mxu0 %v1896_v1  ;;  %v1899_v3 = vld [vmem:[%s2946_s1 + $0x14] ss:$8 sps:$4 sm:$0xff]   ;;  %v1901_v4 = vld [vmem:[%s2946_s1 + $0x10] ss:$8 sps:$4 sm:$0xff]  }
  0x29   :  { %189 = vmatpush1.bf16.msra.mxu0 %v1898_v2  ;;  %v1902_v5 = vld [vmem:[%s2946_s1 + $0x24] ss:$8 sps:$4 sm:$0xff]   ;;  %v1904_v6 = vld [vmem:[%s2946_s1 + $0x20] ss:$8 sps:$4 sm:$0xff]   ;;  %v1905_v7 = vld [vmem:[%s2946_s1 + $0x34] ss:$8 sps:$4 sm:$0xff]  }
  0x2a   :  { %190 = vmatprep.subr.bf16.mxu0 %v1899_v3  ;;  %v1907_v8 = vld [vmem:[%s2946_s1 + $0x30] ss:$8 sps:$4 sm:$0xff]   ;;  %v1908_v9 = vld [vmem:[%s2946_s1 + $0x44] ss:$8 sps:$4 sm:$0xff]   ;;  %v1910_v10 = vld [vmem:[%s2946_s1 + $0x40] ss:$8 sps:$4 sm:$0xff]  }
  0x2b   :  { %v1911_v11 = vld [vmem:[%s2946_s1 + $0x54] ss:$8 sps:$4 sm:$0xff]   ;;  %v1920_v12 = vld [vmem:[#allocation5 + $0x40] sm:$0xff]   ;;  %v1913_v13 = vld [vmem:[%s2946_s1 + $0x50] ss:$8 sps:$4 sm:$0xff]   ;;  %v2292_v58 = vshrl.u32 %v98_v57, 7 }
  0x2c   :  { %v1921_v14 = vld [vmem:[#allocation5] sm:$0xff]   ;;  %1760 = vmatprep.subr.bf16.mxu1 %v1920_v12  ;;  %v1922_v16 = vld [vmem:[#allocation5 + $0x48] sm:$0xff]   ;;  %v1917_v20 = vld [vmem:[%s2946_s1 + $0x74] ss:$8 sps:$4 sm:$0xff]  }
  0x2d   :  { %191 = vmatpush1.bf16.msra.mxu0 %v1901_v4  ;;  %v1914_v15 = vld [vmem:[%s2946_s1 + $0x64] ss:$8 sps:$4 sm:$0xff]   ;;  %1761 = vmatpush3.bf16.msra.mxu1 %v1921_v14  ;;  %v1916_v19 = vld [vmem:[%s2946_s1 + $0x60] ss:$8 sps:$4 sm:$0xff]   ;;  %v1925_v21 = vld [vmem:[#allocation5 + $0x10] sm:$0xff]   ;;  %v100_v59 = vsub.s32 0, %v2292_v58 }
  0x2e   :  { %192 = vmatprep.subr.bf16.mxu0 %v1902_v5  ;;  %v1923_v17 = vld [vmem:[#allocation5 + $0x8] sm:$0xff]   ;;  %1762 = vmatprep.subr.bf16.mxu1 %v1922_v16  ;;  %v1926_v22 = vld [vmem:[#allocation5 + $0x58] sm:$0xff]   ;;  %v2236_v24 = vld [vmem:[#allocation2] sm:$0xff]  ;;  %v104_v61 = vsub.s32 1, %v2292_v58 }
  0x2f   :  { %v1919_v23 = vld [vmem:[%s2946_s1 + $0x70] ss:$8 sps:$4 sm:$0xff]   ;;  %v2238_v25 = vld [vmem:[#allocation2 + $0x8] sm:$0xff]  ;;  %v1928_v27 = vld [vmem:[#allocation5 + $0x60] sm:$0xff]  }
  0x30   :  { %v1927_v26 = vld [vmem:[#allocation5 + $0x18] sm:$0xff]   ;;  %v1929_v28 = vld [vmem:[#allocation5 + $0x20] sm:$0xff]   ;;  %v72_v29 = vpack.c.bf16 %v2238_v25, %v2236_v24  ;;  %v1930_v30 = vld [vmem:[#allocation5 + $0x68] sm:$0xff]  }
  0x31   :  { %193 = vmatpush1.bf16.msra.mxu0 %v1904_v6  ;;  %1763 = vmatpush3.bf16.msra.mxu1 %v1923_v17  ;;  %v2242_v31 = vld [vmem:[#allocation2 + $0x10] sm:$0xff]  ;;  %v2244_v32 = vld [vmem:[#allocation2 + $0x18] sm:$0xff]  ;;  %v2249_v34 = vld [vmem:[#allocation2 + $0x20] sm:$0xff] }
  0x32   :  { %194 = vmatprep.subr.bf16.mxu0 %v1905_v7  ;;  %1764 = vmatprep.subr.bf16.mxu1 %v1924_v18  ;;  %v73_v33 = vpack.c.bf16 %v2244_v32, %v2242_v31  ;;  %v2251_v35 = vld [vmem:[#allocation2 + $0x28] sm:$0xff]  ;;  %v2257_v37 = vld [vmem:[#allocation2 + $0x30] sm:$0xff]  ;;  %v2259_v38 = vld [vmem:[#allocation2 + $0x38] sm:$0xff] }
  0x33   :  { %v74_v36 = vpack.c.bf16 %v2251_v35, %v2249_v34  ;;  %v75_v39 = vpack.c.bf16 %v2259_v38, %v2257_v37  ;;  %v2264_v40 = vld [vmem:[#allocation2 + $0x40] sm:$0xff]  ;;  %v2266_v41 = vld [vmem:[#allocation2 + $0x48] sm:$0xff]  ;;  %v2271_v43 = vld [vmem:[#allocation2 + $0x50] sm:$0xff] }
  0x34   :  { %v76_v42 = vpack.c.bf16 %v2266_v41, %v2264_v40  ;;  %v2273_v44 = vld [vmem:[#allocation2 + $0x58] sm:$0xff]  ;;  %v2278_v46 = vld [vmem:[#allocation2 + $0x60] sm:$0xff]  ;;  %v2280_v47 = vld [vmem:[#allocation2 + $0x68] sm:$0xff] }
  0x35   :  { %195 = vmatpush1.bf16.msra.mxu0 %v1907_v8  ;;  %1765 = vmatpush3.bf16.msra.mxu1 %v1925_v21  ;;  %v77_v45 = vpack.c.bf16 %v2273_v44, %v2271_v43  ;;  %v78_v48 = vpack.c.bf16 %v2280_v47, %v2278_v46  ;;  %v2285_v49 = vld [vmem:[#allocation2 + $0x70] sm:$0xff]  ;;  %v2287_v50 = vld [vmem:[#allocation2 + $0x78] sm:$0xff]  ;;  %v1931_v52 = vld [vmem:[#allocation5 + $0x28] sm:$0xff]  }
  0x36   :  { %196 = vmatprep.subr.bf16.mxu0 %v1908_v9  ;;  %1766 = vmatprep.subr.bf16.mxu1 %v1926_v22  ;;  %v79_v51 = vpack.c.bf16 %v2287_v50, %v2285_v49  ;;  %v1932_v53 = vld [vmem:[#allocation5 + $0x70] sm:$0xff]   ;;  %v1934_v55 = vld [vmem:[#allocation5 + $0x78] sm:$0xff]   ;;  %v96_v60 = vld [vmem:[%s2947_s2] sm:$0x3] }
  0x37   :  { %v1933_v54 = vld [vmem:[#allocation5 + $0x30] sm:$0xff]   ;;  %v1935_v56 = vld [vmem:[#allocation5 + $0x38] sm:$0xff]   ;;  %v2301_v62 = vrot.slane %v96_v60, %v100_v59  ;;  %v2305_v63 = vrot.slane %v96_v60, %v104_v61 }
  0x39   :  { %197 = vmatpush1.bf16.msra.mxu0 %v1910_v10  ;;  %1767 = vmatpush3.bf16.msra.mxu1 %v1927_v26 }
  0x3a   :  { %198 = vmatprep.subr.bf16.mxu0 %v1911_v11  ;;  %1768 = vmatprep.subr.bf16.mxu1 %v1928_v27 }
  0x3d   :  { %199 = vmatpush1.bf16.msra.mxu0 %v1913_v13  ;;  %1769 = vmatpush3.bf16.msra.mxu1 %v1929_v28 }
  0x3e   :  { %200 = vmatprep.subr.bf16.mxu0 %v1914_v15  ;;  %1770 = vmatprep.subr.bf16.mxu1 %v1930_v30 }
  0x41   :  { %201 = vmatpush1.bf16.msra.mxu0 %v1916_v19  ;;  %1771 = vmatpush3.bf16.msra.mxu1 %v1931_v52 }
  0x42   :  { %202 = vmatprep.subr.bf16.mxu0 %v1917_v20  ;;  %1772 = vmatprep.subr.bf16.mxu1 %v1932_v53 }
  0x45   :  { %203 = vmatpush1.bf16.msra.mxu0 %v1919_v23  ;;  %1773 = vmatpush3.bf16.msra.mxu1 %v1933_v54 }
  0x46   :  { %1774 = vmatprep.subr.bf16.mxu1 %v1934_v55 }
  0x48   :  { %221 = vmatmul.mubr.bf16.vlgmr.msra.gmra.mrb[0].mxu0 %v72_v29 }
  0x49   :  { %230 = vmatprep.mubr.bf16.mxu0 %v2118_v0  ;;  %1775 = vmatpush3.bf16.msra.mxu1 %v1935_v56 }
  0x50   :  { %231 = vmatmul.mubr.bf16.gmra.mrb[4].mxu0 %v73_v33 }
  0x51   :  { %240 = vmatprep.mubr.bf16.mxu0 %v2118_v0 }
  0x58   :  { %241 = vmatmul.mubr.bf16.gmra.mrb[8].mxu0 %v74_v36 }
  0x59   :  { %250 = vmatprep.mubr.bf16.mxu0 %v2118_v0 }
  0x60   :  { %251 = vmatmul.mubr.bf16.gmra.mrb[12].mxu0 %v75_v39 }
  0x61   :  { %260 = vmatprep.mubr.bf16.mxu0 %v2118_v0 }
  0x68   :  { %261 = vmatmul.mubr.bf16.gmra.mrb[16].mxu0 %v76_v42 }
  0x69   :  { %270 = vmatprep.mubr.bf16.mxu0 %v2118_v0 }
  0x70   :  { %271 = vmatmul.mubr.bf16.gmra.mrb[20].mxu0 %v77_v45 }
  0x71   :  { %280 = vmatprep.mubr.bf16.mxu0 %v2118_v0 }
  0x78   :  { %281 = vmatmul.mubr.bf16.gmra.mrb[24].mxu0 %v78_v48 }
  0x79   :  { %290 = vmatprep.mubr.bf16.mxu0 %v2118_v0 }
  0x80   :  { %291 = vmatmul.mubr.bf16.gmra.mrb[28].mxu0 %v79_v51 }
  0x81   :  { %1001 = vmatprep.mubr.bf16.mxu0 %v2118_v0 }
 0x11b   :  { %v222_v1 = vpop.f32.mrb[0].mxu0 }
 0x11c   :  { %v223_v2 = vadd.f32 %v222_v1, %v2301_v62  ;;  %v224_v3 = vpop.f32.mrb[1].mxu0 }
 0x11d   :  { %v225_v4 = vadd.f32 %v224_v3, %v2305_v63  ;;  %v226_v5 = vpop.f32.mrb[2].mxu0 }
 0x11e   :  { %v227_v6 = vadd.f32 %v226_v5, %v2301_v62  ;;  %v228_v7 = vpop.f32.mrb[3].mxu0  ;;  %v301_v9 = vmax.f32 %v223_v2, 0.0 }
 0x11f   :  { %v229_v8 = vadd.f32 %v228_v7, %v2305_v63  ;;  %v302_v11 = vmax.f32 %v225_v4, 0.0 }
 0x120   :  { %v303_v10 = vmax.f32 %v227_v6, 0.0 }
 0x121   :  { %v304_v12 = vmax.f32 %v229_v8, 0.0 }
 0x122   :  { %v333_v13 = vpack.c.bf16 %v303_v10, %v301_v9 }
 0x123   :  { %v232_v14 = vpop.f32.mrb[4].mxu0  ;;  %v334_v15 = vpack.c.bf16 %v304_v12, %v302_v11 }
 0x124   :  { %v233_v16 = vadd.f32 %v232_v14, %v2301_v62  ;;  %v234_v17 = vpop.f32.mrb[5].mxu0 }
 0x125   :  { %v235_v18 = vadd.f32 %v234_v17, %v2305_v63  ;;  %v236_v19 = vpop.f32.mrb[6].mxu0  ;;  %516 = vmatprep.mubr.bf16.mxu1 %v334_v15 }
 0x126   :  { %v237_v20 = vadd.f32 %v236_v19, %v2301_v62  ;;  %v238_v21 = vpop.f32.mrb[7].mxu0  ;;  %517 = vmatmul.mubr.bf16.vlgmr.msra.gmra.mrb[0].mxu1 %v333_v13  ;;  %v305_v23 = vmax.f32 %v233_v16, 0.0 }
 0x127   :  { %v239_v22 = vadd.f32 %v238_v21, %v2305_v63  ;;  %v306_v27 = vmax.f32 %v235_v18, 0.0 }
 0x128   :  { %v307_v26 = vmax.f32 %v237_v20, 0.0 }
 0x129   :  { %v308_v28 = vmax.f32 %v239_v22, 0.0 }
 0x12a   :  { %v335_v29 = vpack.c.bf16 %v307_v26, %v305_v23 }
 0x12b   :  { %v336_v30 = vpack.c.bf16 %v308_v28, %v306_v27  ;;  %v242_v33 = vpop.f32.mrb[8].mxu0 }
 0x12c   :  { %v243_v36 = vadd.f32 %v242_v33, %v2301_v62  ;;  %v244_v39 = vpop.f32.mrb[9].mxu0 }
 0x12d   :  { %v245_v42 = vadd.f32 %v244_v39, %v2305_v63  ;;  %v246_v45 = vpop.f32.mrb[10].mxu0  ;;  %524 = vmatprep.mubr.bf16.mxu1 %v336_v30 }
 0x12e   :  { %v247_v48 = vadd.f32 %v246_v45, %v2301_v62  ;;  %v248_v51 = vpop.f32.mrb[11].mxu0  ;;  %525 = vmatmul.mubr.bf16.gmra.mrb[4].mxu1 %v335_v29  ;;  %v309_v53 = vmax.f32 %v243_v36, 0.0 }
 0x12f   :  { %v249_v52 = vadd.f32 %v248_v51, %v2305_v63  ;;  %v310_v55 = vmax.f32 %v245_v42, 0.0 }
 0x130   :  { %v311_v54 = vmax.f32 %v247_v48, 0.0 }
 0x131   :  { %v312_v56 = vmax.f32 %v249_v52, 0.0 }
 0x132   :  { %v337_v57 = vpack.c.bf16 %v311_v54, %v309_v53 }
 0x133   :  { %v338_v60 = vpack.c.bf16 %v312_v56, %v310_v55  ;;  %v252_v1 = vpop.f32.mrb[12].mxu0 }
 0x134   :  { %v253_v2 = vadd.f32 %v252_v1, %v2301_v62  ;;  %v254_v3 = vpop.f32.mrb[13].mxu0 }
 0x135   :  { %v255_v4 = vadd.f32 %v254_v3, %v2305_v63  ;;  %v256_v5 = vpop.f32.mrb[14].mxu0  ;;  %532 = vmatprep.mubr.bf16.mxu1 %v338_v60 }
 0x136   :  { %v257_v6 = vadd.f32 %v256_v5, %v2301_v62  ;;  %v258_v7 = vpop.f32.mrb[15].mxu0  ;;  %533 = vmatmul.mubr.bf16.gmra.mrb[8].mxu1 %v337_v57  ;;  %v313_v9 = vmax.f32 %v253_v2, 0.0 }
 0x137   :  { %v259_v8 = vadd.f32 %v258_v7, %v2305_v63  ;;  %v314_v11 = vmax.f32 %v255_v4, 0.0 }
 0x138   :  { %v315_v10 = vmax.f32 %v257_v6, 0.0 }
 0x139   :  { %v316_v12 = vmax.f32 %v259_v8, 0.0 }
 0x13a   :  { %v339_v13 = vpack.c.bf16 %v315_v10, %v313_v9 }
 0x13b   :  { %v340_v14 = vpack.c.bf16 %v316_v12, %v314_v11  ;;  %v262_v15 = vpop.f32.mrb[16].mxu0 }
 0x13c   :  { %v263_v16 = vadd.f32 %v262_v15, %v2301_v62  ;;  %v264_v17 = vpop.f32.mrb[17].mxu0 }
 0x13d   :  { %v265_v18 = vadd.f32 %v264_v17, %v2305_v63  ;;  %v266_v19 = vpop.f32.mrb[18].mxu0  ;;  %540 = vmatprep.mubr.bf16.mxu1 %v340_v14 }
 0x13e   :  { %v267_v20 = vadd.f32 %v266_v19, %v2301_v62  ;;  %v268_v21 = vpop.f32.mrb[19].mxu0  ;;  %541 = vmatmul.mubr.bf16.gmra.mrb[12].mxu1 %v339_v13  ;;  %v317_v23 = vmax.f32 %v263_v16, 0.0 }
 0x13f   :  { %v269_v22 = vadd.f32 %v268_v21, %v2305_v63  ;;  %v318_v27 = vmax.f32 %v265_v18, 0.0 }
 0x140   :  { %v319_v26 = vmax.f32 %v267_v20, 0.0 }
 0x141   :  { %v320_v28 = vmax.f32 %v269_v22, 0.0 }
 0x142   :  { %v341_v29 = vpack.c.bf16 %v319_v26, %v317_v23 }
 0x143   :  { %v342_v30 = vpack.c.bf16 %v320_v28, %v318_v27  ;;  %v272_v33 = vpop.f32.mrb[20].mxu0 }
 0x144   :  { %v273_v36 = vadd.f32 %v272_v33, %v2301_v62  ;;  %v274_v39 = vpop.f32.mrb[21].mxu0  ;;  %v1936_v33 = vld [vmem:[%s2946_s1 + $0x80] ss:$8 sps:$4 sm:$0xff]  }
 0x145   :  { %v275_v42 = vadd.f32 %v274_v39, %v2305_v63  ;;  %v276_v45 = vpop.f32.mrb[22].mxu0  ;;  %548 = vmatprep.mubr.bf16.mxu1 %v342_v30  ;;  %v1944_v39 = vld [vmem:[%s2946_s1 + $0xa4] ss:$8 sps:$4 sm:$0xff]  }
 0x146   :  { %v277_v48 = vadd.f32 %v276_v45, %v2301_v62  ;;  %v278_v51 = vpop.f32.mrb[23].mxu0  ;;  %549 = vmatmul.mubr.bf16.gmra.mrb[16].mxu1 %v341_v29  ;;  %v321_v53 = vmax.f32 %v273_v36, 0.0  ;;  %v1939_v36 = vld [vmem:[%s2946_s1 + $0x90] ss:$8 sps:$4 sm:$0xff]   ;;  %v1947_v45 = vld [vmem:[%s2946_s1 + $0xb4] ss:$8 sps:$4 sm:$0xff]  }
 0x147   :  { %v279_v52 = vadd.f32 %v278_v51, %v2305_v63  ;;  %v322_v55 = vmax.f32 %v275_v42, 0.0  ;;  %v1942_v42 = vld [vmem:[%s2946_s1 + $0xa0] ss:$8 sps:$4 sm:$0xff]   ;;  %v1950_v51 = vld [vmem:[%s2946_s1 + $0xc4] ss:$8 sps:$4 sm:$0xff]  }
 0x148   :  { %v323_v54 = vmax.f32 %v277_v48, 0.0  ;;  %v1945_v48 = vld [vmem:[%s2946_s1 + $0xb0] ss:$8 sps:$4 sm:$0xff]  }
 0x149   :  { %v324_v56 = vmax.f32 %v279_v52, 0.0  ;;  %v1948_v52 = vld [vmem:[%s2946_s1 + $0xc0] ss:$8 sps:$4 sm:$0xff]  }
 0x14a   :  { %v343_v57 = vpack.c.bf16 %v323_v54, %v321_v53  ;;  %v2372_v54 = vld [vmem:[%s2949_s4] ss:$0 sm:$0xff] }
 0x14b   :  { %v344_v60 = vpack.c.bf16 %v324_v56, %v322_v55  ;;  %v282_v1 = vpop.f32.mrb[24].mxu0 }
 0x14c   :  { %v283_v2 = vadd.f32 %v282_v1, %v2301_v62  ;;  %v284_v3 = vpop.f32.mrb[25].mxu0 }
 0x14d   :  { %v285_v4 = vadd.f32 %v284_v3, %v2305_v63  ;;  %v286_v5 = vpop.f32.mrb[26].mxu0  ;;  %556 = vmatprep.mubr.bf16.mxu1 %v344_v60 }
 0x14e   :  { %v287_v6 = vadd.f32 %v286_v5, %v2301_v62  ;;  %v288_v7 = vpop.f32.mrb[27].mxu0  ;;  %557 = vmatmul.mubr.bf16.gmra.mrb[20].mxu1 %v343_v57  ;;  %v325_v9 = vmax.f32 %v283_v2, 0.0 }
 0x14f   :  { %v289_v8 = vadd.f32 %v288_v7, %v2305_v63  ;;  %v326_v11 = vmax.f32 %v285_v4, 0.0 }
 0x150   :  { %v327_v10 = vmax.f32 %v287_v6, 0.0 }
 0x151   :  { %v328_v12 = vmax.f32 %v289_v8, 0.0 }
 0x152   :  { %v345_v13 = vpack.c.bf16 %v327_v10, %v325_v9 }
 0x153   :  { %v346_v14 = vpack.c.bf16 %v328_v12, %v326_v11  ;;  %v292_v15 = vpop.f32.mrb[28].mxu0 }
 0x154   :  { %v293_v16 = vadd.f32 %v292_v15, %v2301_v62  ;;  %v294_v17 = vpop.f32.mrb[29].mxu0 }
 0x155   :  { %v295_v18 = vadd.f32 %v294_v17, %v2305_v63  ;;  %v296_v19 = vpop.f32.mrb[30].mxu0  ;;  %564 = vmatprep.mubr.bf16.mxu1 %v346_v14 }
 0x156   :  { %v297_v20 = vadd.f32 %v296_v19, %v2301_v62  ;;  %v298_v21 = vpop.f32.mrb[31].mxu0  ;;  %565 = vmatmul.mubr.bf16.gmra.mrb[24].mxu1 %v345_v13  ;;  %v329_v23 = vmax.f32 %v293_v16, 0.0  ;;  %v1938_v62 = vld [vmem:[%s2946_s1 + $0x84] ss:$8 sps:$4 sm:$0xff]  }
 0x157   :  { %v299_v22 = vadd.f32 %v298_v21, %v2305_v63  ;;  %v330_v27 = vmax.f32 %v295_v18, 0.0  ;;  %v1941_v63 = vld [vmem:[%s2946_s1 + $0x94] ss:$8 sps:$4 sm:$0xff]   ;;  %969 = vmatprep.subr.bf16.mxu0 %v1938_v62 }
 0x158   :  { %v331_v26 = vmax.f32 %v297_v20, 0.0  ;;  %970 = vmatpush1.bf16.msra.mxu0 %v1936_v33 }
 0x159   :  { %v332_v28 = vmax.f32 %v299_v22, 0.0  ;;  %971 = vmatprep.subr.bf16.mxu0 %v1941_v63 }
 0x15a   :  { %v347_v29 = vpack.c.bf16 %v331_v26, %v329_v23 }
 0x15b   :  { %v348_v30 = vpack.c.bf16 %v332_v28, %v330_v27 }
 0x15c   :  { %972 = vmatpush1.bf16.msra.mxu0 %v1939_v36 }
 0x15d   :  { %572 = vmatprep.mubr.bf16.mxu1 %v348_v30  ;;  %973 = vmatprep.subr.bf16.mxu0 %v1944_v39 }
 0x15e   :  { %573 = vmatmul.mubr.bf16.gmra.mrb[28].mxu1 %v347_v29 }
 0x160   :  { %974 = vmatpush1.bf16.msra.mxu0 %v1942_v42 }
 0x161   :  { %975 = vmatprep.subr.bf16.mxu0 %v1947_v45 }
 0x164   :  { %976 = vmatpush1.bf16.msra.mxu0 %v1945_v48 }
 0x165   :  { %977 = vmatprep.subr.bf16.mxu0 %v1950_v51 }
 0x168   :  { %978 = vmatpush1.bf16.msra.mxu0 %v1948_v52 }
 0x1f9   :  { %v1776_v53 = vpop.f32.mrb[0].mxu1 }
 0x1fa   :  { %v1777_v55 = vpop.f32.mrb[1].mxu1 }
 0x1fb   :  { %v1778_v56 = vadd.f32 %v1777_v55, %v1776_v53  ;;  %v1779_v57 = vpop.f32.mrb[2].mxu1 }
 0x1fc   :  { %v1780_v60 = vpop.f32.mrb[3].mxu1 }
 0x1fd   :  { %v519_v1 = vadd.f32 %v1778_v56, %v2372_v54  ;;  %v1781_v2 = vadd.f32 %v1780_v60, %v1779_v57 }
 0x1ff   :  { %v522_v3 = vadd.f32 %v1781_v2, %v2372_v54  ;;  %v2377_v4 = vadd.f32 %v519_v1, %v2236_v24  ;;  %v1953_v2 = vld [vmem:[%s2946_s1 + $0xd4] ss:$8 sps:$4 sm:$0xff]  }
 0x200   :  { %979 = vmatprep.subr.bf16.mxu0 %v1953_v2  ;;  %v1966_v2 = vld [vmem:[#allocation5 + $0xd8] sm:$0xff]  }
 0x201   :  { %v1782_v5 = vpop.f32.mrb[4].mxu1  ;;  %597 = vadd.xlane.f32.xlu0 %v2377_v4  ;;  %v645_v6 = vmul.f32 %v2377_v4, %v2377_v4  ;;  %v2383_v7 = vadd.f32 %v522_v3, %v2238_v25 }
 0x202   :  { %v1783_v8 = vpop.f32.mrb[5].mxu1 }
 0x203   :  { %v1784_v9 = vadd.f32 %v1783_v8, %v1782_v5  ;;  %v1785_v10 = vpop.f32.mrb[6].mxu1  ;;  %661 = vadd.xlane.f32.xlu1 %v645_v6  ;;  %v646_v24 = vmul.f32 %v2383_v7, %v2383_v7  ;;  %v1951_v6 = vld [vmem:[%s2946_s1 + $0xd0] ss:$8 sps:$4 sm:$0xff]  }
 0x204   :  { %v1786_v11 = vpop.f32.mrb[7].mxu1  ;;  %980 = vmatpush1.bf16.msra.mxu0 %v1951_v6  ;;  %v1968_v6 = vld [vmem:[#allocation5 + $0xe0] sm:$0xff]  }
 0x205   :  { %v527_v12 = vadd.f32 %v1784_v9, %v2372_v54  ;;  %v1787_v13 = vadd.f32 %v1786_v11, %v1785_v10  ;;  %599 = vadd.xlane.f32.xlu0 %v2383_v7 }
 0x207   :  { %v530_v14 = vadd.f32 %v1787_v13, %v2372_v54  ;;  %663 = vadd.xlane.f32.xlu1 %v646_v24  ;;  %v2391_v15 = vadd.f32 %v527_v12, %v2242_v31 }
 0x209   :  { %v1788_v25 = vpop.f32.mrb[8].mxu1  ;;  %601 = vadd.xlane.f32.xlu0 %v2391_v15  ;;  %v2395_v16 = vadd.f32 %v530_v14, %v2244_v32  ;;  %v647_v20 = vmul.f32 %v2391_v15, %v2391_v15  ;;  %v1954_v14 = vld [vmem:[%s2946_s1 + $0xe0] ss:$8 sps:$4 sm:$0xff]  }
 0x20a   :  { %v1789_v17 = vpop.f32.mrb[9].mxu1 }
 0x20b   :  { %v1790_v18 = vadd.f32 %v1789_v17, %v1788_v25  ;;  %v1791_v19 = vpop.f32.mrb[10].mxu1  ;;  %603 = vadd.xlane.f32.xlu1 %v2395_v16  ;;  %v648_v31 = vmul.f32 %v2395_v16, %v2395_v16 }
 0x20c   :  { %v1792_v21 = vpop.f32.mrb[11].mxu1 }
 0x20d   :  { %v535_v22 = vadd.f32 %v1790_v18, %v2372_v54  ;;  %v1793_v23 = vadd.f32 %v1792_v21, %v1791_v19  ;;  %665 = vadd.xlane.f32.xlu0 %v647_v20  ;;  %v1959_v20 = vld [vmem:[%s2946_s1 + $0xf4] ss:$8 sps:$4 sm:$0xff]  }
 0x20f   :  { %v538_v26 = vadd.f32 %v1793_v23, %v2372_v54  ;;  %667 = vadd.xlane.f32.xlu1 %v648_v31  ;;  %v2405_v32 = vadd.f32 %v535_v22, %v2249_v34  ;;  %v1957_v22 = vld [vmem:[%s2946_s1 + $0xf0] ss:$8 sps:$4 sm:$0xff]  }
 0x211   :  { %v1794_v27 = vpop.f32.mrb[12].mxu1  ;;  %605 = vadd.xlane.f32.xlu0 %v2405_v32  ;;  %v2409_v28 = vadd.f32 %v538_v26, %v2251_v35  ;;  %v649_v62 = vmul.f32 %v2405_v32, %v2405_v32 }
 0x212   :  { %v1795_v29 = vpop.f32.mrb[13].mxu1 }
 0x213   :  { %v1796_v30 = vadd.f32 %v1795_v29, %v1794_v27  ;;  %v1797_v33 = vpop.f32.mrb[14].mxu1  ;;  %607 = vadd.xlane.f32.xlu1 %v2409_v28  ;;  %v650_v34 = vmul.f32 %v2409_v28, %v2409_v28 }
 0x214   :  { %v1798_v63 = vpop.f32.mrb[15].mxu1 }
 0x215   :  { %v543_v36 = vadd.f32 %v1796_v30, %v2372_v54  ;;  %v1799_v39 = vadd.f32 %v1798_v63, %v1797_v33  ;;  %669 = vadd.xlane.f32.xlu0 %v649_v62 }
 0x217   :  { %v546_v42 = vadd.f32 %v1799_v39, %v2372_v54  ;;  %671 = vadd.xlane.f32.xlu1 %v650_v34  ;;  %v2419_v35 = vadd.f32 %v543_v36, %v2257_v37 }
 0x219   :  { %v1800_v45 = vpop.f32.mrb[16].mxu1  ;;  %609 = vadd.xlane.f32.xlu0 %v2419_v35  ;;  %v2423_v48 = vadd.f32 %v546_v42, %v2259_v38  ;;  %v651_v55 = vmul.f32 %v2419_v35, %v2419_v35 }
 0x21a   :  { %v1801_v51 = vpop.f32.mrb[17].mxu1 }
 0x21b   :  { %v1802_v52 = vadd.f32 %v1801_v51, %v1800_v45  ;;  %v1803_v53 = vpop.f32.mrb[18].mxu1  ;;  %611 = vadd.xlane.f32.xlu1 %v2423_v48  ;;  %v652_v37 = vmul.f32 %v2423_v48, %v2423_v48 }
 0x21c   :  { %v1804_v56 = vpop.f32.mrb[19].mxu1 }
 0x21d   :  { %v551_v57 = vadd.f32 %v1802_v52, %v2372_v54  ;;  %v1805_v60 = vadd.f32 %v1804_v56, %v1803_v53  ;;  %673 = vadd.xlane.f32.xlu0 %v651_v55 }
 0x21f   :  { %v554_v1 = vadd.f32 %v1805_v60, %v2372_v54  ;;  %675 = vadd.xlane.f32.xlu1 %v652_v37  ;;  %v2433_v38 = vadd.f32 %v551_v57, %v2264_v40  ;;  %v1961_v60 = vld [vmem:[#allocation5 + $0x80] sm:$0xff]   ;;  %v1962_v37 = vld [vmem:[#allocation5 + $0xc8] sm:$0xff]  }
 0x221   :  { %v1806_v3 = vpop.f32.mrb[20].mxu1  ;;  %613 = vadd.xlane.f32.xlu0 %v2433_v38  ;;  %v2440_v5 = vadd.f32 %v554_v1, %v2266_v41  ;;  %v653_v40 = vmul.f32 %v2433_v38, %v2433_v38  ;;  %v1956_v41 = vld [vmem:[%s2946_s1 + $0xe4] ss:$8 sps:$4 sm:$0xff]   ;;  %v1964_v1 = vld [vmem:[#allocation5 + $0xd0] sm:$0xff]  }
 0x222   :  { %v1807_v8 = vpop.f32.mrb[21].mxu1  ;;  %981 = vmatprep.subr.bf16.mxu0 %v1956_v41 }
 0x223   :  { %v1808_v9 = vadd.f32 %v1807_v8, %v1806_v3  ;;  %v1809_v10 = vpop.f32.mrb[22].mxu1  ;;  %615 = vadd.xlane.f32.xlu1 %v2440_v5  ;;  %v654_v24 = vmul.f32 %v2440_v5, %v2440_v5  ;;  %982 = vmatpush1.bf16.msra.mxu0 %v1954_v14  ;;  %v1967_v3 = vld [vmem:[#allocation5 + $0x98] sm:$0xff]   ;;  %v1969_v8 = vld [vmem:[#allocation5 + $0xa0] sm:$0xff]  }
 0x224   :  { %v1810_v11 = vpop.f32.mrb[23].mxu1  ;;  %983 = vmatprep.subr.bf16.mxu0 %v1959_v20 }
 0x225   :  { %v559_v12 = vadd.f32 %v1808_v9, %v2372_v54  ;;  %v1811_v13 = vadd.f32 %v1810_v11, %v1809_v10  ;;  %677 = vadd.xlane.f32.xlu0 %v653_v40  ;;  %v1970_v9 = vld [vmem:[#allocation5 + $0xe8] sm:$0xff]   ;;  %v1972_v40 = vld [vmem:[#allocation5 + $0xf0] sm:$0xff]  }
 0x226   :  { %v1971_v10 = vld [vmem:[#allocation5 + $0xa8] sm:$0xff]   ;;  %v1973_v11 = vld [vmem:[#allocation5 + $0xb0] sm:$0xff]  }
 0x227   :  { %v562_v25 = vadd.f32 %v1811_v13, %v2372_v54  ;;  %679 = vadd.xlane.f32.xlu1 %v654_v24  ;;  %v2459_v17 = vadd.f32 %v559_v12, %v2271_v43  ;;  %984 = vmatpush1.bf16.msra.mxu0 %v1957_v22 }
 0x229   :  { %v1812_v18 = vpop.f32.mrb[24].mxu1  ;;  %617 = vadd.xlane.f32.xlu0 %v2459_v17  ;;  %v2463_v19 = vadd.f32 %v562_v25, %v2273_v44  ;;  %v655_v43 = vmul.f32 %v2459_v17, %v2459_v17 }
 0x22a   :  { %v1813_v21 = vpop.f32.mrb[25].mxu1 }
 0x22b   :  { %v1814_v23 = vadd.f32 %v1813_v21, %v1812_v18  ;;  %v1815_v31 = vpop.f32.mrb[26].mxu1  ;;  %619 = vadd.xlane.f32.xlu1 %v2463_v19  ;;  %v656_v29 = vmul.f32 %v2463_v19, %v2463_v19 }
 0x22c   :  { %v1816_v26 = vpop.f32.mrb[27].mxu1 }
 0x22d   :  { %v567_v44 = vadd.f32 %v1814_v23, %v2372_v54  ;;  %v1817_v27 = vadd.f32 %v1816_v26, %v1815_v31  ;;  %681 = vadd.xlane.f32.xlu0 %v655_v43 }
 0x22f   :  { %v570_v30 = vadd.f32 %v1817_v27, %v2372_v54  ;;  %683 = vadd.xlane.f32.xlu1 %v656_v29  ;;  %v2479_v33 = vadd.f32 %v567_v44, %v2278_v46 }
 0x231   :  { %v1818_v62 = vpop.f32.mrb[28].mxu1  ;;  %621 = vadd.xlane.f32.xlu0 %v2479_v33  ;;  %v2483_v63 = vadd.f32 %v570_v30, %v2280_v47  ;;  %v657_v42 = vmul.f32 %v2479_v33, %v2479_v33 }
 0x232   :  { %v1819_v36 = vpop.f32.mrb[29].mxu1 }
 0x233   :  { %v1820_v39 = vadd.f32 %v1819_v36, %v1818_v62  ;;  %v1821_v34 = vpop.f32.mrb[30].mxu1  ;;  %623 = vadd.xlane.f32.xlu1 %v2483_v63  ;;  %v658_v46 = vmul.f32 %v2483_v63, %v2483_v63 }
 0x234   :  { %v1822_v45 = vpop.f32.mrb[31].mxu1 }
 0x235   :  { %v575_v51 = vadd.f32 %v1820_v39, %v2372_v54  ;;  %v1823_v52 = vadd.f32 %v1822_v45, %v1821_v34  ;;  %685 = vadd.xlane.f32.xlu0 %v657_v42 }
 0x237   :  { %v578_v53 = vadd.f32 %v1823_v52, %v2372_v54  ;;  %687 = vadd.xlane.f32.xlu1 %v658_v46  ;;  %v2493_v47 = vadd.f32 %v575_v51, %v2285_v49  ;;  %v1960_v54 = vld [vmem:[#allocation5 + $0xc0] sm:$0xff]   ;;  %v1963_v49 = vld [vmem:[#allocation5 + $0x88] sm:$0xff]  }
 0x238   :  { %1824 = vmatprep.subr.bf16.mxu1 %v1960_v54 }
 0x239   :  { %625 = vadd.xlane.f32.xlu0 %v2493_v47  ;;  %v2497_v55 = vadd.f32 %v578_v53, %v2287_v50  ;;  %v659_v56 = vmul.f32 %v2493_v47, %v2493_v47  ;;  %1825 = vmatpush3.bf16.msra.mxu1 %v1961_v60  ;;  %v1965_v50 = vld [vmem:[#allocation5 + $0x90] sm:$0xff]  }
 0x23a   :  { %1826 = vmatprep.subr.bf16.mxu1 %v1962_v37 }
 0x23b   :  { %627 = vadd.xlane.f32.xlu1 %v2497_v55  ;;  %v660_v57 = vmul.f32 %v2497_v55, %v2497_v55 }
 0x23d   :  { %689 = vadd.xlane.f32.xlu0 %v659_v56  ;;  %1827 = vmatpush3.bf16.msra.mxu1 %v1963_v49 }
 0x23e   :  { %1828 = vmatprep.subr.bf16.mxu1 %v1964_v1 }
 0x23f   :  { %691 = vadd.xlane.f32.xlu1 %v660_v57 }
 0x241   :  { %1829 = vmatpush3.bf16.msra.mxu1 %v1965_v50 }
 0x242   :  { %1830 = vmatprep.subr.bf16.mxu1 %v1966_v2 }
 0x245   :  { %1831 = vmatpush3.bf16.msra.mxu1 %v1967_v3 }
 0x246   :  { %1832 = vmatprep.subr.bf16.mxu1 %v1968_v6  ;;  %v2514_v6 = vld [vmem:[%s2950_s5] ss:$0 sm:$0xff] }
 0x249   :  { %1833 = vmatpush3.bf16.msra.mxu1 %v1969_v8 }
 0x24a   :  { %1834 = vmatprep.subr.bf16.mxu1 %v1970_v9 }
 0x24d   :  { %1835 = vmatpush3.bf16.msra.mxu1 %v1971_v10 }
 0x24e   :  { %1836 = vmatprep.subr.bf16.mxu1 %v1972_v40 }
 0x251   :  { %1837 = vmatpush3.bf16.msra.mxu1 %v1973_v11 }
 0x28e   :  { %v598_v41 = vpop.xlane.xlu0 %597 }
 0x28f   :  { %v629_v12 = vmul.f32 0.0078125, %v598_v41 }
 0x290   :  { %v662_v13 = vpop.xlane.xlu1 %661 }
 0x291   :  { %v709_v24 = vmul.f32 %v629_v12, %v629_v12  ;;  %v693_v14 = vmul.f32 0.0078125, %v662_v13  ;;  %v741_v57 = vsub.f32 %v2377_v4, %v629_v12 }
 0x292   :  { %v600_v25 = vpop.xlane.xlu0 %599 }
 0x293   :  { %v725_v18 = vsub.f32 %v693_v14, %v709_v24  ;;  %v630_v20 = vmul.f32 0.0078125, %v600_v25 }
 0x294   :  { %v664_v21 = vpop.xlane.xlu1 %663 }
 0x295   :  { %v757_v22 = vadd.f32 1e-05, %v725_v18  ;;  %v710_v23 = vmul.f32 %v630_v20, %v630_v20  ;;  %v694_v31 = vmul.f32 0.0078125, %v664_v21  ;;  %v742_v4 = vsub.f32 %v2383_v7, %v630_v20  ;;  %v2525_v18 = vld [vmem:[%s2951_s6] ss:$0 sm:$0xff] }
 0x296   :  { %v602_v43 = vpop.xlane.xlu0 %601 }
 0x297   :  { %1976 = vrsqrt.f32 %v757_v22  ;;  %v726_v26 = vsub.f32 %v694_v31, %v710_v23  ;;  %v631_v44 = vmul.f32 0.0078125, %v602_v43 }
 0x298   :  { %v604_v27 = vpop.xlane.xlu1 %603 }
 0x299   :  { %v758_v29 = vadd.f32 1e-05, %v726_v26  ;;  %v632_v30 = vmul.f32 0.0078125, %v604_v27  ;;  %v711_v36 = vmul.f32 %v631_v44, %v631_v44  ;;  %v743_v22 = vsub.f32 %v2391_v15, %v631_v44 }
 0x29a   :  { %v666_v62 = vpop.xlane.xlu0 %665 }
 0x29b   :  { %1978 = vrsqrt.f32 %v758_v29  ;;  %v695_v39 = vmul.f32 0.0078125, %v666_v62  ;;  %v712_v42 = vmul.f32 %v632_v30, %v632_v30 }
 0x29c   :  { %v668_v34 = vpop.xlane.xlu1 %667 }
 0x29d   :  { %v727_v45 = vsub.f32 %v695_v39, %v711_v36  ;;  %v696_v51 = vmul.f32 0.0078125, %v668_v34  ;;  %v744_v36 = vsub.f32 %v2395_v16, %v632_v30 }
 0x29e   :  { %v606_v52 = vpop.xlane.xlu0 %605 }
 0x29f   :  { %v759_v46 = vadd.f32 1e-05, %v727_v45  ;;  %v728_v53 = vsub.f32 %v696_v51, %v712_v42  ;;  %v2504_v56 = vmul.f32 0.0078125, %v606_v52 }
 0x2a0   :  { %v608_v54 = vpop.xlane.xlu1 %607 }
 0x2a1   :  { %v1977_v60 = vpop.eup %1976  ;;  %1980 = vrsqrt.f32 %v759_v46  ;;  %v760_v37 = vadd.f32 1e-05, %v728_v53  ;;  %v2507_v1 = vmul.f32 0.0078125, %v608_v54  ;;  %v713_v2 = vmul.f32 %v2504_v56, %v2504_v56 }
 0x2a2   :  { %v789_v49 = vmul.f32 %v1977_v60, %v741_v57  ;;  %v670_v50 = vpop.xlane.xlu0 %669 }
 0x2a3   :  { %1982 = vrsqrt.f32 %v760_v37  ;;  %v697_v3 = vmul.f32 0.0078125, %v670_v50  ;;  %v714_v10 = vmul.f32 %v2507_v1, %v2507_v1 }
 0x2a4   :  { %v672_v8 = vpop.xlane.xlu1 %671  ;;  %v812_v13 = vmul.f32 %v2514_v6, %v789_v49  ;;  %v745_v49 = vsub.f32 %v2405_v32, %v2504_v56 }
 0x2a5   :  { %v1979_v9 = vpop.eup %1978  ;;  %v729_v40 = vsub.f32 %v697_v3, %v713_v2  ;;  %v698_v11 = vmul.f32 0.0078125, %v672_v8 }
 0x2a6   :  { %v790_v41 = vmul.f32 %v1979_v9, %v742_v4  ;;  %v610_v12 = vpop.xlane.xlu0 %609  ;;  %v2532_v43 = vadd.f32 %v2525_v18, %v812_v13 }
 0x2a7   :  { %v761_v24 = vadd.f32 1e-05, %v729_v40  ;;  %v730_v14 = vsub.f32 %v698_v11, %v714_v10  ;;  %v2520_v25 = vmul.f32 0.0078125, %v610_v12  ;;  %v746_v40 = vsub.f32 %v2409_v28, %v2507_v1 }
 0x2a8   :  { %v612_v7 = vpop.xlane.xlu1 %611  ;;  %v813_v20 = vmul.f32 %v2514_v6, %v790_v41 }
 0x2a9   :  { %1984 = vrsqrt.f32 %v761_v24  ;;  %v762_v21 = vadd.f32 1e-05, %v730_v14  ;;  %v2529_v23 = vmul.f32 0.0078125, %v612_v7  ;;  %v715_v29 = vmul.f32 %v2520_v25, %v2520_v25 }
 0x2aa   :  { %v674_v31 = vpop.xlane.xlu0 %673  ;;  %v2535_v26 = vadd.f32 %v2525_v18, %v813_v20 }
 0x2ab   :  { %v1981_v27 = vpop.eup %1980  ;;  %1986 = vrsqrt.f32 %v762_v21  ;;  %v699_v62 = vmul.f32 0.0078125, %v674_v31  ;;  %v716_v42 = vmul.f32 %v2529_v23, %v2529_v23 }
 0x2ac   :  { %v676_v39 = vpop.xlane.xlu1 %675  ;;  %v851_v15 = vpack.c.bf16 %v2535_v26, %v2532_v43  ;;  %v791_v44 = vmul.f32 %v1981_v27, %v743_v22 }
 0x2ad   :  { %v1983_v34 = vpop.eup %1982  ;;  %v731_v45 = vsub.f32 %v699_v62, %v715_v29  ;;  %v700_v51 = vmul.f32 0.0078125, %v676_v39  ;;  %v747_v29 = vsub.f32 %v2419_v35, %v2520_v25 }
 0x2ae   :  { %v614_v52 = vpop.xlane.xlu0 %613  ;;  %1002 = vmatmul.mubr.bf16.vlgmr.msra.gmra.mrb[32].mxu0 %v851_v15  ;;  %v792_v46 = vmul.f32 %v1983_v34, %v744_v36  ;;  %v814_v53 = vmul.f32 %v2514_v6, %v791_v44 }
 0x2af   :  { %v763_v57 = vadd.f32 1e-05, %v731_v45  ;;  %v732_v54 = vsub.f32 %v700_v51, %v716_v42  ;;  %v2545_v60 = vmul.f32 0.0078125, %v614_v52  ;;  %1011 = vmatprep.mubr.bf16.mxu0 %v2118_v0  ;;  %v748_v45 = vsub.f32 %v2423_v48, %v2529_v23 }
 0x2b0   :  { %v616_v16 = vpop.xlane.xlu1 %615  ;;  %v815_v30 = vmul.f32 %v2514_v6, %v792_v46  ;;  %v2554_v3 = vadd.f32 %v2525_v18, %v814_v53 }
 0x2b1   :  { %1988 = vrsqrt.f32 %v763_v57  ;;  %v764_v37 = vadd.f32 1e-05, %v732_v54  ;;  %v2551_v50 = vmul.f32 0.0078125, %v616_v16  ;;  %v717_v9 = vmul.f32 %v2545_v60, %v2545_v60 }
 0x2b2   :  { %v678_v2 = vpop.xlane.xlu0 %677  ;;  %v2557_v4 = vadd.f32 %v2525_v18, %v815_v30 }
 0x2b3   :  { %v1985_v8 = vpop.eup %1984  ;;  %1990 = vrsqrt.f32 %v764_v37  ;;  %v701_v10 = vmul.f32 0.0078125, %v678_v2  ;;  %v718_v12 = vmul.f32 %v2551_v50, %v2551_v50 }
 0x2b4   :  { %v680_v11 = vpop.xlane.xlu1 %679  ;;  %v852_v32 = vpack.c.bf16 %v2557_v4, %v2554_v3  ;;  %v793_v56 = vmul.f32 %v1985_v8, %v745_v49 }
 0x2b5   :  { %v1987_v41 = vpop.eup %1986  ;;  %v733_v13 = vsub.f32 %v701_v10, %v717_v9  ;;  %v702_v24 = vmul.f32 0.0078125, %v680_v11  ;;  %v749_v9 = vsub.f32 %v2433_v38, %v2545_v60 }
 0x2b6   :  { %v618_v14 = vpop.xlane.xlu0 %617  ;;  %1012 = vmatmul.mubr.bf16.gmra.mrb[36].mxu0 %v852_v32  ;;  %v794_v7 = vmul.f32 %v1987_v41, %v746_v40  ;;  %v816_v20 = vmul.f32 %v2514_v6, %v793_v56 }
 0x2b7   :  { %v765_v21 = vadd.f32 1e-05, %v733_v13  ;;  %v734_v22 = vsub.f32 %v702_v24, %v718_v12  ;;  %v2568_v31 = vmul.f32 0.0078125, %v618_v14  ;;  %1021 = vmatprep.mubr.bf16.mxu0 %v2118_v0  ;;  %v750_v13 = vsub.f32 %v2440_v5, %v2551_v50 }
 0x2b8   :  { %v620_v28 = vpop.xlane.xlu1 %619  ;;  %v817_v1 = vmul.f32 %v2514_v6, %v794_v7  ;;  %v2577_v39 = vadd.f32 %v2525_v18, %v816_v20 }
 0x2b9   :  { %1992 = vrsqrt.f32 %v765_v21  ;;  %v766_v27 = vadd.f32 1e-05, %v734_v22  ;;  %v2574_v62 = vmul.f32 0.0078125, %v620_v28  ;;  %v719_v34 = vmul.f32 %v2568_v31, %v2568_v31 }
 0x2ba   :  { %v682_v36 = vpop.xlane.xlu0 %681  ;;  %v2580_v15 = vadd.f32 %v2525_v18, %v817_v1 }
 0x2bb   :  { %v1989_v44 = vpop.eup %1988  ;;  %1994 = vrsqrt.f32 %v766_v27  ;;  %v703_v42 = vmul.f32 0.0078125, %v682_v36  ;;  %v720_v46 = vmul.f32 %v2574_v62, %v2574_v62 }
 0x2bc   :  { %v684_v51 = vpop.xlane.xlu1 %683  ;;  %v853_v35 = vpack.c.bf16 %v2580_v15, %v2577_v39  ;;  %v795_v25 = vmul.f32 %v1989_v44, %v747_v29 }
 0x2bd   :  { %v1991_v52 = vpop.eup %1990  ;;  %v735_v53 = vsub.f32 %v703_v42, %v719_v34  ;;  %v704_v57 = vmul.f32 0.0078125, %v684_v51  ;;  %v751_v34 = vsub.f32 %v2459_v17, %v2568_v31 }
 0x2be   :  { %v622_v54 = vpop.xlane.xlu0 %621  ;;  %1022 = vmatmul.mubr.bf16.gmra.mrb[40].mxu0 %v853_v35  ;;  %v796_v16 = vmul.f32 %v1991_v52, %v748_v45  ;;  %v818_v30 = vmul.f32 %v2514_v6, %v795_v25 }
 0x2bf   :  { %v767_v37 = vadd.f32 1e-05, %v735_v53  ;;  %v736_v49 = vsub.f32 %v704_v57, %v720_v46  ;;  %v2591_v2 = vmul.f32 0.0078125, %v622_v54  ;;  %1031 = vmatprep.mubr.bf16.mxu0 %v2118_v0  ;;  %v752_v53 = vsub.f32 %v2463_v19, %v2574_v62 }
 0x2c0   :  { %v624_v48 = vpop.xlane.xlu1 %623  ;;  %v819_v23 = vmul.f32 %v2514_v6, %v796_v16  ;;  %v2600_v11 = vadd.f32 %v2525_v18, %v818_v30 }
 0x2c1   :  { %1996 = vrsqrt.f32 %v767_v37  ;;  %v768_v8 = vadd.f32 1e-05, %v736_v49  ;;  %v2597_v10 = vmul.f32 0.0078125, %v624_v48  ;;  %v721_v41 = vmul.f32 %v2591_v2, %v2591_v2 }
 0x2c2   :  { %v686_v40 = vpop.xlane.xlu0 %685  ;;  %v2603_v32 = vadd.f32 %v2525_v18, %v819_v23  ;;  %v753_v62 = vsub.f32 %v2479_v33, %v2591_v2 }
 0x2c3   :  { %v1993_v56 = vpop.eup %1992  ;;  %1998 = vrsqrt.f32 %v768_v8  ;;  %v705_v12 = vmul.f32 0.0078125, %v686_v40  ;;  %v722_v7 = vmul.f32 %v2597_v10, %v2597_v10 }
 0x2c4   :  { %v688_v24 = vpop.xlane.xlu1 %687  ;;  %v854_v38 = vpack.c.bf16 %v2603_v32, %v2600_v11  ;;  %v797_v60 = vmul.f32 %v1993_v56, %v749_v9 }
 0x2c5   :  { %v1995_v14 = vpop.eup %1994  ;;  %v737_v20 = vsub.f32 %v705_v12, %v721_v41  ;;  %v706_v21 = vmul.f32 0.0078125, %v688_v24  ;;  %v754_v12 = vsub.f32 %v2483_v63, %v2597_v10 }
 0x2c6   :  { %v626_v22 = vpop.xlane.xlu0 %625  ;;  %1032 = vmatmul.mubr.bf16.gmra.mrb[44].mxu0 %v854_v38  ;;  %v798_v28 = vmul.f32 %v1995_v14, %v750_v13  ;;  %v820_v1 = vmul.f32 %v2514_v6, %v797_v60 }
 0x2c7   :  { %v769_v27 = vadd.f32 1e-05, %v737_v20  ;;  %v738_v29 = vsub.f32 %v706_v21, %v722_v7  ;;  %v643_v36 = vmul.f32 0.0078125, %v626_v22  ;;  %1041 = vmatprep.mubr.bf16.mxu0 %v2118_v0 }
 0x2c8   :  { %v628_v5 = vpop.xlane.xlu1 %627  ;;  %v821_v50 = vmul.f32 %v2514_v6, %v798_v28  ;;  %v2619_v51 = vadd.f32 %v2525_v18, %v820_v1 }
 0x2c9   :  { %2000 = vrsqrt.f32 %v769_v27  ;;  %v770_v44 = vadd.f32 1e-05, %v738_v29  ;;  %v644_v42 = vmul.f32 0.0078125, %v628_v5  ;;  %v723_v52 = vmul.f32 %v643_v36, %v643_v36  ;;  %v1974_v5 = vld [vmem:[#allocation5 + $0xf8] sm:$0xff]  }
 0x2ca   :  { %v690_v45 = vpop.xlane.xlu0 %689  ;;  %v2622_v35 = vadd.f32 %v2525_v18, %v821_v50  ;;  %v755_v14 = vsub.f32 %v2493_v47, %v643_v36  ;;  %v1975_v50 = vld [vmem:[#allocation5 + $0xb8] sm:$0xff]   ;;  %1838 = vmatprep.subr.bf16.mxu1 %v1974_v5 }
 0x2cb   :  { %v1997_v25 = vpop.eup %1996  ;;  %2002 = vrsqrt.f32 %v770_v44  ;;  %v707_v46 = vmul.f32 0.0078125, %v690_v45  ;;  %v724_v16 = vmul.f32 %v644_v42, %v644_v42  ;;  %v756_v20 = vsub.f32 %v2497_v55, %v644_v42  ;;  %1839 = vmatpush3.bf16.msra.mxu1 %v1975_v50 }
 0x2cc   :  { %v692_v57 = vpop.xlane.xlu1 %691  ;;  %v855_v54 = vpack.c.bf16 %v2622_v35, %v2619_v51  ;;  %v799_v17 = vmul.f32 %v1997_v25, %v751_v34 }
 0x2cd   :  { %v1999_v31 = vpop.eup %1998  ;;  %v739_v30 = vsub.f32 %v707_v46, %v723_v52  ;;  %v708_v37 = vmul.f32 0.0078125, %v692_v57 }
 0x2ce   :  { %1042 = vmatmul.mubr.bf16.gmra.mrb[48].mxu0 %v855_v54  ;;  %v800_v49 = vmul.f32 %v1999_v31, %v752_v53  ;;  %v822_v48 = vmul.f32 %v2514_v6, %v799_v17 }
 0x2cf   :  { %v771_v23 = vadd.f32 1e-05, %v739_v30  ;;  %v740_v8 = vsub.f32 %v708_v37, %v724_v16  ;;  %1051 = vmatprep.mubr.bf16.mxu0 %v2118_v0 }
 0x2d0   :  { %v823_v9 = vmul.f32 %v2514_v6, %v800_v49  ;;  %v2634_v40 = vadd.f32 %v2525_v18, %v822_v48 }
 0x2d1   :  { %2004 = vrsqrt.f32 %v771_v23  ;;  %v772_v19 = vadd.f32 1e-05, %v740_v8 }
 0x2d2   :  { %v2637_v56 = vadd.f32 %v2525_v18, %v823_v9 }
 0x2d3   :  { %v2001_v41 = vpop.eup %2000  ;;  %2006 = vrsqrt.f32 %v772_v19 }
 0x2d4   :  { %v856_v13 = vpack.c.bf16 %v2637_v56, %v2634_v40  ;;  %v801_v24 = vmul.f32 %v2001_v41, %v753_v62 }
 0x2d5   :  { %v2003_v38 = vpop.eup %2002 }
 0x2d6   :  { %1052 = vmatmul.mubr.bf16.gmra.mrb[52].mxu0 %v856_v13  ;;  %v802_v60 = vmul.f32 %v2003_v38, %v754_v12  ;;  %v824_v33 = vmul.f32 %v2514_v6, %v801_v24 }
 0x2d7   :  { %1061 = vmatprep.mubr.bf16.mxu0 %v2118_v0 }
 0x2d8   :  { %v825_v2 = vmul.f32 %v2514_v6, %v802_v60  ;;  %v2648_v7 = vadd.f32 %v2525_v18, %v824_v33 }
 0x2da   :  { %v2651_v63 = vadd.f32 %v2525_v18, %v825_v2 }
 0x2db   :  { %v2005_v10 = vpop.eup %2004 }
 0x2dc   :  { %v857_v21 = vpack.c.bf16 %v2651_v63, %v2648_v7  ;;  %v803_v22 = vmul.f32 %v2005_v10, %v755_v14 }
 0x2dd   :  { %v2007_v28 = vpop.eup %2006 }
 0x2de   :  { %1062 = vmatmul.mubr.bf16.gmra.mrb[56].mxu0 %v857_v21  ;;  %v804_v1 = vmul.f32 %v2007_v28, %v756_v20  ;;  %v826_v27 = vmul.f32 %v2514_v6, %v803_v22 }
 0x2df   :  { %1071 = vmatprep.mubr.bf16.mxu0 %v2118_v0  ;;  %v1721_v0 = vld [vmem:[%s2947_s2 + $0x2] sm:$0x3] }
 0x2e0   :  { %v827_v47 = vmul.f32 %v2514_v6, %v804_v1  ;;  %v2660_v29 = vadd.f32 %v2525_v18, %v826_v27  ;;  %v2672_v6 = vrot.slane %v1721_v0, %v100_v59 }
 0x2e2   :  { %v2663_v36 = vadd.f32 %v2525_v18, %v827_v47  ;;  %v2676_v18 = vrot.slane %v1721_v0, %v104_v61 }
 0x2e4   :  { %v858_v55 = vpack.c.bf16 %v2663_v36, %v2660_v29 }
 0x2e6   :  { %1072 = vmatmul.mubr.bf16.gmra.mrb[60].mxu0 %v858_v55 }
 0x381   :  { %v1003_v44 = vpop.f32.mrb[32].mxu0 }
 0x382   :  { %v1004_v34 = vadd.f32 %v1003_v44, %v2672_v6  ;;  %v1005_v42 = vpop.f32.mrb[33].mxu0 }
 0x383   :  { %v1006_v45 = vadd.f32 %v1005_v42, %v2676_v18  ;;  %v1007_v25 = vpop.f32.mrb[34].mxu0 }
 0x384   :  { %v1008_v52 = vadd.f32 %v1007_v25, %v2672_v6  ;;  %v1009_v46 = vpop.f32.mrb[35].mxu0  ;;  %v1082_v57 = vmax.f32 %v1004_v34, 0.0 }
 0x385   :  { %v1010_v53 = vadd.f32 %v1009_v46, %v2676_v18  ;;  %v1083_v59 = vmax.f32 %v1006_v45, 0.0 }
 0x386   :  { %v1084_v54 = vmax.f32 %v1008_v52, 0.0 }
 0x387   :  { %v1085_v17 = vmax.f32 %v1010_v53, 0.0 }
 0x388   :  { %v1114_v31 = vpack.c.bf16 %v1084_v54, %v1082_v57 }
 0x389   :  { %v1115_v58 = vpack.c.bf16 %v1085_v17, %v1083_v59  ;;  %v1013_v61 = vpop.f32.mrb[36].mxu0 }
 0x38a   :  { %v1014_v16 = vadd.f32 %v1013_v61, %v2672_v6  ;;  %v1015_v30 = vpop.f32.mrb[37].mxu0 }
 0x38b   :  { %v1016_v37 = vadd.f32 %v1015_v30, %v2676_v18  ;;  %v1017_v49 = vpop.f32.mrb[38].mxu0  ;;  %1299 = vmatprep.mubr.bf16.mxu1 %v1115_v58 }
 0x38c   :  { %v1018_v48 = vadd.f32 %v1017_v49, %v2672_v6  ;;  %v1019_v23 = vpop.f32.mrb[39].mxu0  ;;  %1300 = vmatmul.mubr.bf16.vlgmr.msra.gmra.mrb[32].mxu1 %v1114_v31  ;;  %v1086_v9 = vmax.f32 %v1014_v16, 0.0 }
 0x38d   :  { %v1020_v8 = vadd.f32 %v1019_v23, %v2676_v18  ;;  %v1087_v62 = vmax.f32 %v1016_v37, 0.0 }
 0x38e   :  { %v1088_v19 = vmax.f32 %v1018_v48, 0.0 }
 0x38f   :  { %v1089_v41 = vmax.f32 %v1020_v8, 0.0 }
 0x390   :  { %v1116_v12 = vpack.c.bf16 %v1088_v19, %v1086_v9 }
 0x391   :  { %v1117_v13 = vpack.c.bf16 %v1089_v41, %v1087_v62  ;;  %v1023_v24 = vpop.f32.mrb[40].mxu0 }
 0x392   :  { %v1024_v38 = vadd.f32 %v1023_v24, %v2672_v6  ;;  %v1025_v60 = vpop.f32.mrb[41].mxu0 }
 0x393   :  { %v1026_v33 = vadd.f32 %v1025_v60, %v2676_v18  ;;  %v1027_v2 = vpop.f32.mrb[42].mxu0  ;;  %1307 = vmatprep.mubr.bf16.mxu1 %v1117_v13 }
 0x394   :  { %v1028_v14 = vadd.f32 %v1027_v2, %v2672_v6  ;;  %v1029_v10 = vpop.f32.mrb[43].mxu0  ;;  %1308 = vmatmul.mubr.bf16.gmra.mrb[36].mxu1 %v1116_v12  ;;  %v1090_v21 = vmax.f32 %v1024_v38, 0.0 }
 0x395   :  { %v1030_v20 = vadd.f32 %v1029_v10, %v2676_v18  ;;  %v1091_v28 = vmax.f32 %v1026_v33, 0.0 }
 0x396   :  { %v1092_v22 = vmax.f32 %v1028_v14, 0.0 }
 0x397   :  { %v1093_v1 = vmax.f32 %v1030_v20, 0.0 }
 0x398   :  { %v1118_v27 = vpack.c.bf16 %v1092_v22, %v1090_v21 }
 0x399   :  { %v1119_v47 = vpack.c.bf16 %v1093_v1, %v1091_v28  ;;  %v1033_v55 = vpop.f32.mrb[44].mxu0 }
 0x39a   :  { %v1034_v5 = vadd.f32 %v1033_v55, %v2672_v6  ;;  %v1035_v50 = vpop.f32.mrb[45].mxu0 }
 0x39b   :  { %v1036_v0 = vadd.f32 %v1035_v50, %v2676_v18  ;;  %v1037_v44 = vpop.f32.mrb[46].mxu0  ;;  %1315 = vmatprep.mubr.bf16.mxu1 %v1119_v47 }
 0x39c   :  { %v1038_v34 = vadd.f32 %v1037_v44, %v2672_v6  ;;  %v1039_v42 = vpop.f32.mrb[47].mxu0  ;;  %1316 = vmatmul.mubr.bf16.gmra.mrb[40].mxu1 %v1118_v27  ;;  %v1094_v25 = vmax.f32 %v1034_v5, 0.0 }
 0x39d   :  { %v1040_v45 = vadd.f32 %v1039_v42, %v2676_v18  ;;  %v1095_v46 = vmax.f32 %v1036_v0, 0.0 }
 0x39e   :  { %v1096_v52 = vmax.f32 %v1038_v34, 0.0 }
 0x39f   :  { %v1097_v53 = vmax.f32 %v1040_v45, 0.0 }
 0x3a0   :  { %v1120_v57 = vpack.c.bf16 %v1096_v52, %v1094_v25 }
 0x3a1   :  { %v1121_v54 = vpack.c.bf16 %v1097_v53, %v1095_v46  ;;  %v1043_v59 = vpop.f32.mrb[48].mxu0 }
 0x3a2   :  { %v1044_v17 = vadd.f32 %v1043_v59, %v2672_v6  ;;  %v1045_v31 = vpop.f32.mrb[49].mxu0 }
 0x3a3   :  { %v1046_v58 = vadd.f32 %v1045_v31, %v2676_v18  ;;  %v1047_v61 = vpop.f32.mrb[50].mxu0  ;;  %1323 = vmatprep.mubr.bf16.mxu1 %v1121_v54 }
 0x3a4   :  { %v1048_v16 = vadd.f32 %v1047_v61, %v2672_v6  ;;  %v1049_v30 = vpop.f32.mrb[51].mxu0  ;;  %1324 = vmatmul.mubr.bf16.gmra.mrb[44].mxu1 %v1120_v57  ;;  %v1098_v49 = vmax.f32 %v1044_v17, 0.0 }
 0x3a5   :  { %v1050_v37 = vadd.f32 %v1049_v30, %v2676_v18  ;;  %v1099_v23 = vmax.f32 %v1046_v58, 0.0 }
 0x3a6   :  { %v1100_v48 = vmax.f32 %v1048_v16, 0.0 }
 0x3a7   :  { %v1101_v8 = vmax.f32 %v1050_v37, 0.0 }
 0x3a8   :  { %v1122_v9 = vpack.c.bf16 %v1100_v48, %v1098_v49 }
 0x3a9   :  { %v1123_v19 = vpack.c.bf16 %v1101_v8, %v1099_v23  ;;  %v1053_v62 = vpop.f32.mrb[52].mxu0  ;;  %v2713_v8 = vld [vmem:[%s2949_s4 + $0x1] ss:$0 sm:$0xff] }
 0x3aa   :  { %v1054_v41 = vadd.f32 %v1053_v62, %v2672_v6  ;;  %v1055_v12 = vpop.f32.mrb[53].mxu0 }
 0x3ab   :  { %v1056_v13 = vadd.f32 %v1055_v12, %v2676_v18  ;;  %v1057_v24 = vpop.f32.mrb[54].mxu0  ;;  %1331 = vmatprep.mubr.bf16.mxu1 %v1123_v19 }
 0x3ac   :  { %v1058_v38 = vadd.f32 %v1057_v24, %v2672_v6  ;;  %v1059_v60 = vpop.f32.mrb[55].mxu0  ;;  %1332 = vmatmul.mubr.bf16.gmra.mrb[48].mxu1 %v1122_v9  ;;  %v1102_v2 = vmax.f32 %v1054_v41, 0.0 }
 0x3ad   :  { %v1060_v33 = vadd.f32 %v1059_v60, %v2676_v18  ;;  %v1103_v10 = vmax.f32 %v1056_v13, 0.0 }
 0x3ae   :  { %v1104_v14 = vmax.f32 %v1058_v38, 0.0 }
 0x3af   :  { %v1105_v20 = vmax.f32 %v1060_v33, 0.0 }
 0x3b0   :  { %v1124_v21 = vpack.c.bf16 %v1104_v14, %v1102_v2 }
 0x3b1   :  { %v1125_v22 = vpack.c.bf16 %v1105_v20, %v1103_v10  ;;  %v1063_v28 = vpop.f32.mrb[56].mxu0 }
 0x3b2   :  { %v1064_v1 = vadd.f32 %v1063_v28, %v2672_v6  ;;  %v1065_v27 = vpop.f32.mrb[57].mxu0 }
 0x3b3   :  { %v1066_v47 = vadd.f32 %v1065_v27, %v2676_v18  ;;  %v1067_v55 = vpop.f32.mrb[58].mxu0  ;;  %1339 = vmatprep.mubr.bf16.mxu1 %v1125_v22 }
 0x3b4   :  { %v1068_v5 = vadd.f32 %v1067_v55, %v2672_v6  ;;  %v1069_v50 = vpop.f32.mrb[59].mxu0  ;;  %1340 = vmatmul.mubr.bf16.gmra.mrb[52].mxu1 %v1124_v21  ;;  %v1106_v44 = vmax.f32 %v1064_v1, 0.0 }
 0x3b5   :  { %v1070_v0 = vadd.f32 %v1069_v50, %v2676_v18  ;;  %v1107_v42 = vmax.f32 %v1066_v47, 0.0 }
 0x3b6   :  { %v1108_v34 = vmax.f32 %v1068_v5, 0.0 }
 0x3b7   :  { %v1109_v45 = vmax.f32 %v1070_v0, 0.0 }
 0x3b8   :  { %v1126_v25 = vpack.c.bf16 %v1108_v34, %v1106_v44 }
 0x3b9   :  { %v1127_v52 = vpack.c.bf16 %v1109_v45, %v1107_v42  ;;  %v1073_v46 = vpop.f32.mrb[60].mxu0 }
 0x3ba   :  { %v1074_v53 = vadd.f32 %v1073_v46, %v2672_v6  ;;  %v1075_v57 = vpop.f32.mrb[61].mxu0 }
 0x3bb   :  { %v1076_v54 = vadd.f32 %v1075_v57, %v2676_v18  ;;  %v1077_v59 = vpop.f32.mrb[62].mxu0  ;;  %1347 = vmatprep.mubr.bf16.mxu1 %v1127_v52 }
 0x3bc   :  { %v1078_v17 = vadd.f32 %v1077_v59, %v2672_v6  ;;  %v1079_v31 = vpop.f32.mrb[63].mxu0  ;;  %1348 = vmatmul.mubr.bf16.gmra.mrb[56].mxu1 %v1126_v25  ;;  %v1110_v61 = vmax.f32 %v1074_v53, 0.0 }
 0x3bd   :  { %v1080_v58 = vadd.f32 %v1079_v31, %v2676_v18  ;;  %v1111_v30 = vmax.f32 %v1076_v54, 0.0 }
 0x3be   :  { %v1112_v16 = vmax.f32 %v1078_v17, 0.0 }
 0x3bf   :  { %v1113_v37 = vmax.f32 %v1080_v58, 0.0 }
 0x3c0   :  { %v1128_v49 = vpack.c.bf16 %v1112_v16, %v1110_v61 }
 0x3c1   :  { %v1129_v48 = vpack.c.bf16 %v1113_v37, %v1111_v30 }
 0x3c3   :  { %1355 = vmatprep.mubr.bf16.mxu1 %v1129_v48 }
 0x3c4   :  { %1356 = vmatmul.mubr.bf16.gmra.mrb[60].mxu1 %v1128_v49 }
 0x45f   :  { %v1840_v23 = vpop.f32.mrb[32].mxu1 }
 0x460   :  { %v1841_v9 = vpop.f32.mrb[33].mxu1 }
 0x461   :  { %v1842_v6 = vadd.f32 %v1841_v9, %v1840_v23  ;;  %v1843_v19 = vpop.f32.mrb[34].mxu1 }
 0x462   :  { %v1844_v62 = vpop.f32.mrb[35].mxu1 }
 0x463   :  { %v1302_v18 = vadd.f32 %v1842_v6, %v2713_v8  ;;  %v1845_v41 = vadd.f32 %v1844_v62, %v1843_v19 }
 0x465   :  { %v1305_v12 = vadd.f32 %v1845_v41, %v2713_v8  ;;  %v2718_v13 = vadd.f32 %v1302_v18, %v2532_v43 }
 0x467   :  { %1380 = vadd.xlane.f32.xlu0 %v2718_v13  ;;  %v1846_v24 = vpop.f32.mrb[36].mxu1  ;;  %v2722_v38 = vadd.f32 %v1305_v12, %v2535_v26  ;;  %v1428_v14 = vmul.f32 %v2718_v13, %v2718_v13 }
 0x468   :  { %v1847_v60 = vpop.f32.mrb[37].mxu1 }
 0x469   :  { %v1848_v33 = vadd.f32 %v1847_v60, %v1846_v24  ;;  %1382 = vadd.xlane.f32.xlu1 %v2722_v38  ;;  %v1849_v2 = vpop.f32.mrb[38].mxu1  ;;  %v1429_v43 = vmul.f32 %v2722_v38, %v2722_v38 }
 0x46a   :  { %v1850_v10 = vpop.f32.mrb[39].mxu1 }
 0x46b   :  { %v1310_v20 = vadd.f32 %v1848_v33, %v2713_v8  ;;  %v1851_v21 = vadd.f32 %v1850_v10, %v1849_v2  ;;  %1444 = vadd.xlane.f32.xlu0 %v1428_v14 }
 0x46d   :  { %v1313_v22 = vadd.f32 %v1851_v21, %v2713_v8  ;;  %1446 = vadd.xlane.f32.xlu1 %v1429_v43  ;;  %v2732_v26 = vadd.f32 %v1310_v20, %v2554_v3 }
 0x46f   :  { %1384 = vadd.xlane.f32.xlu0 %v2732_v26  ;;  %v1852_v28 = vpop.f32.mrb[40].mxu1  ;;  %v2736_v1 = vadd.f32 %v1313_v22, %v2557_v4  ;;  %v1430_v5 = vmul.f32 %v2732_v26, %v2732_v26 }
 0x470   :  { %v1853_v27 = vpop.f32.mrb[41].mxu1 }
 0x471   :  { %v1854_v47 = vadd.f32 %v1853_v27, %v1852_v28  ;;  %1386 = vadd.xlane.f32.xlu1 %v2736_v1  ;;  %v1855_v55 = vpop.f32.mrb[42].mxu1  ;;  %v1431_v3 = vmul.f32 %v2736_v1, %v2736_v1 }
 0x472   :  { %v1856_v50 = vpop.f32.mrb[43].mxu1 }
 0x473   :  { %v1318_v0 = vadd.f32 %v1854_v47, %v2713_v8  ;;  %v1857_v44 = vadd.f32 %v1856_v50, %v1855_v55  ;;  %1448 = vadd.xlane.f32.xlu0 %v1430_v5 }
 0x475   :  { %v1321_v34 = vadd.f32 %v1857_v44, %v2713_v8  ;;  %1450 = vadd.xlane.f32.xlu1 %v1431_v3  ;;  %v2746_v4 = vadd.f32 %v1318_v0, %v2577_v39 }
 0x477   :  { %1388 = vadd.xlane.f32.xlu0 %v2746_v4  ;;  %v1858_v42 = vpop.f32.mrb[44].mxu1  ;;  %v2750_v45 = vadd.f32 %v1321_v34, %v2580_v15  ;;  %v1432_v53 = vmul.f32 %v2746_v4, %v2746_v4 }
 0x478   :  { %v1859_v25 = vpop.f32.mrb[45].mxu1 }
 0x479   :  { %v1860_v52 = vadd.f32 %v1859_v25, %v1858_v42  ;;  %1390 = vadd.xlane.f32.xlu1 %v2750_v45  ;;  %v1861_v46 = vpop.f32.mrb[46].mxu1  ;;  %v1433_v39 = vmul.f32 %v2750_v45, %v2750_v45 }
 0x47a   :  { %v1862_v57 = vpop.f32.mrb[47].mxu1 }
 0x47b   :  { %v1326_v54 = vadd.f32 %v1860_v52, %v2713_v8  ;;  %v1863_v59 = vadd.f32 %v1862_v57, %v1861_v46  ;;  %1452 = vadd.xlane.f32.xlu0 %v1432_v53 }
 0x47d   :  { %v1329_v17 = vadd.f32 %v1863_v59, %v2713_v8  ;;  %1454 = vadd.xlane.f32.xlu1 %v1433_v39  ;;  %v2760_v15 = vadd.f32 %v1326_v54, %v2600_v11 }
 0x47f   :  { %1392 = vadd.xlane.f32.xlu0 %v2760_v15  ;;  %v1864_v31 = vpop.f32.mrb[48].mxu1  ;;  %v2764_v58 = vadd.f32 %v1329_v17, %v2603_v32  ;;  %v1434_v37 = vmul.f32 %v2760_v15, %v2760_v15 }
 0x480   :  { %v1865_v61 = vpop.f32.mrb[49].mxu1 }
 0x481   :  { %v1866_v16 = vadd.f32 %v1865_v61, %v1864_v31  ;;  %1394 = vadd.xlane.f32.xlu1 %v2764_v58  ;;  %v1867_v30 = vpop.f32.mrb[50].mxu1  ;;  %v1435_v11 = vmul.f32 %v2764_v58, %v2764_v58 }
 0x482   :  { %v1868_v49 = vpop.f32.mrb[51].mxu1 }
 0x483   :  { %v1334_v48 = vadd.f32 %v1866_v16, %v2713_v8  ;;  %v1869_v23 = vadd.f32 %v1868_v49, %v1867_v30  ;;  %1456 = vadd.xlane.f32.xlu0 %v1434_v37 }
 0x485   :  { %v1337_v9 = vadd.f32 %v1869_v23, %v2713_v8  ;;  %1458 = vadd.xlane.f32.xlu1 %v1435_v11  ;;  %v2774_v32 = vadd.f32 %v1334_v48, %v2619_v51 }
 0x487   :  { %1396 = vadd.xlane.f32.xlu0 %v2774_v32  ;;  %v1870_v6 = vpop.f32.mrb[52].mxu1  ;;  %v2778_v19 = vadd.f32 %v1337_v9, %v2622_v35  ;;  %v1436_v12 = vmul.f32 %v2774_v32, %v2774_v32 }
 0x488   :  { %v1871_v62 = vpop.f32.mrb[53].mxu1 }
 0x489   :  { %v1872_v18 = vadd.f32 %v1871_v62, %v1870_v6  ;;  %1398 = vadd.xlane.f32.xlu1 %v2778_v19  ;;  %v1873_v41 = vpop.f32.mrb[54].mxu1  ;;  %v1437_v51 = vmul.f32 %v2778_v19, %v2778_v19 }
 0x48a   :  { %v1874_v24 = vpop.f32.mrb[55].mxu1 }
 0x48b   :  { %v1342_v60 = vadd.f32 %v1872_v18, %v2713_v8  ;;  %v1875_v33 = vadd.f32 %v1874_v24, %v1873_v41  ;;  %1460 = vadd.xlane.f32.xlu0 %v1436_v12 }
 0x48d   :  { %v1345_v2 = vadd.f32 %v1875_v33, %v2713_v8  ;;  %1462 = vadd.xlane.f32.xlu1 %v1437_v51  ;;  %v2788_v35 = vadd.f32 %v1342_v60, %v2634_v40 }
 0x48f   :  { %1400 = vadd.xlane.f32.xlu0 %v2788_v35  ;;  %v1876_v14 = vpop.f32.mrb[56].mxu1  ;;  %v2792_v10 = vadd.f32 %v1345_v2, %v2637_v56  ;;  %v1438_v22 = vmul.f32 %v2788_v35, %v2788_v35 }
 0x490   :  { %v1877_v20 = vpop.f32.mrb[57].mxu1 }
 0x491   :  { %v1878_v21 = vadd.f32 %v1877_v20, %v1876_v14  ;;  %1402 = vadd.xlane.f32.xlu1 %v2792_v10  ;;  %v1879_v43 = vpop.f32.mrb[58].mxu1  ;;  %v1439_v40 = vmul.f32 %v2792_v10, %v2792_v10 }
 0x492   :  { %v1880_v28 = vpop.f32.mrb[59].mxu1 }
 0x493   :  { %v1350_v27 = vadd.f32 %v1878_v21, %v2713_v8  ;;  %v1881_v47 = vadd.f32 %v1880_v28, %v1879_v43  ;;  %1464 = vadd.xlane.f32.xlu0 %v1438_v22 }
 0x495   :  { %v1353_v55 = vadd.f32 %v1881_v47, %v2713_v8  ;;  %1466 = vadd.xlane.f32.xlu1 %v1439_v40  ;;  %v2802_v56 = vadd.f32 %v1350_v27, %v2648_v7 }
 0x497   :  { %1404 = vadd.xlane.f32.xlu0 %v2802_v56  ;;  %v1882_v5 = vpop.f32.mrb[60].mxu1  ;;  %v2806_v50 = vadd.f32 %v1353_v55, %v2651_v63  ;;  %v1440_v34 = vmul.f32 %v2802_v56, %v2802_v56  ;;  %v2835_v55 = vld [vmem:[%s2950_s5 + $0x1] ss:$0 sm:$0xff]  ;;  %s2119_s5 = smov [#allocation7]  }
 0x498   :  { %v1883_v0 = vpop.f32.mrb[61].mxu1 }
 0x499   :  { %v1884_v44 = vadd.f32 %v1883_v0, %v1882_v5  ;;  %1406 = vadd.xlane.f32.xlu1 %v2806_v50  ;;  %v1885_v3 = vpop.f32.mrb[62].mxu1  ;;  %v1441_v7 = vmul.f32 %v2806_v50, %v2806_v50 }
 0x49a   :  { %v1886_v42 = vpop.f32.mrb[63].mxu1 }
 0x49b   :  { %v1358_v25 = vadd.f32 %v1884_v44, %v2713_v8  ;;  %v1887_v52 = vadd.f32 %v1886_v42, %v1885_v3  ;;  %1468 = vadd.xlane.f32.xlu0 %v1440_v34 }
 0x49d   :  { %v1361_v46 = vadd.f32 %v1887_v52, %v2713_v8  ;;  %1470 = vadd.xlane.f32.xlu1 %v1441_v7  ;;  %v2816_v63 = vadd.f32 %v1358_v25, %v2660_v29 }
 0x49f   :  { %1408 = vadd.xlane.f32.xlu0 %v2816_v63  ;;  %v2820_v53 = vadd.f32 %v1361_v46, %v2663_v36  ;;  %v1442_v57 = vmul.f32 %v2816_v63, %v2816_v63 }
 0x4a1   :  { %1410 = vadd.xlane.f32.xlu1 %v2820_v53  ;;  %v1443_v54 = vmul.f32 %v2820_v53, %v2820_v53 }
 0x4a3   :  { %1472 = vadd.xlane.f32.xlu0 %v1442_v57 }
 0x4a5   :  { %1474 = vadd.xlane.f32.xlu1 %v1443_v54 }
 0x4f4   :  { %v1381_v8 = vpop.xlane.xlu0 %1380 }
 0x4f5   :  { %v1412_v59 = vmul.f32 0.0078125, %v1381_v8 }
 0x4f6   :  { %v1383_v39 = vpop.xlane.xlu1 %1382 }
 0x4f7   :  { %v1413_v29 = vmul.f32 0.0078125, %v1383_v39  ;;  %v1492_v31 = vmul.f32 %v1412_v59, %v1412_v59  ;;  %v1524_v28 = vsub.f32 %v2718_v13, %v1412_v59  ;;  %v2843_v13 = vld [vmem:[%s2951_s6 + $0x1] ss:$0 sm:$0xff]  ;;  %s1657_s6 = sshll.u32 %s2119_s5, 4  ;;  %s1658_s6 = int_to_ptr.vmem [resolvable:$true] %s1657_s6 }
 0x4f8   :  { %v1445_v17 = vpop.xlane.xlu0 %1444  ;;  %s2084_s14 = scalar_lea.vmem %s1658_s6, 2048  ;;  %p2089_p3 = scmp.lt.s32.totalorder %s1658_s6, %s1658_s6 }
 0x4f9   :  { %v1476_v61 = vmul.f32 0.0078125, %v1445_v17  ;;  %v1493_v36 = vmul.f32 %v1413_v29, %v1413_v29  ;;  %v1525_v44 = vsub.f32 %v2722_v38, %v1413_v29  ;;  %p2085_p2 = scmp.ne.s32.totalorder %s1658_s6, %s2084_s14  ;;  %p2090_p4 = scmp.lt.s32.totalorder %s2084_s14, %s2084_s14 }
 0x4fa   :  { %v1447_v16 = vpop.xlane.xlu1 %1446 }
 0x4fb   :  { %v1508_v30 = vsub.f32 %v1476_v61, %v1492_v31  ;;  %v1477_v37 = vmul.f32 0.0078125, %v1447_v16  ;;  %p2091_p5 = por %p2090_p4, %p2089_p3 }
 0x4fc   :  { %v1385_v49 = vpop.xlane.xlu0 %1384 }
 0x4fd   :  { %v1540_v48 = vadd.f32 1e-05, %v1508_v30  ;;  %v1509_v23 = vsub.f32 %v1477_v37, %v1493_v36  ;;  %v1414_v11 = vmul.f32 0.0078125, %v1385_v49  ;;  %p2092_p6 = pnand %p2091_p5, %p2085_p2 }
 0x4fe   :  { %v1387_v9 = vpop.xlane.xlu1 %1386 }
 0x4ff   :  { %2008 = vrsqrt.f32 %v1540_v48  ;;  %v1541_v6 = vadd.f32 1e-05, %v1509_v23  ;;  %v1415_v62 = vmul.f32 0.0078125, %v1387_v9  ;;  %v1494_v41 = vmul.f32 %v1414_v11, %v1414_v11 }
 0x500   :  { %v1449_v18 = vpop.xlane.xlu0 %1448  ;;  %v1526_v16 = vsub.f32 %v2732_v26, %v1414_v11 }
 0x501   :  { %2010 = vrsqrt.f32 %v1541_v6  ;;  %v1478_v12 = vmul.f32 0.0078125, %v1449_v18  ;;  %v1495_v60 = vmul.f32 %v1415_v62, %v1415_v62  ;;  %v1527_v23 = vsub.f32 %v2736_v1, %v1415_v62 }
 0x502   :  { %v1451_v24 = vpop.xlane.xlu1 %1450 }
 0x503   :  { %v1510_v33 = vsub.f32 %v1478_v12, %v1494_v41  ;;  %v1479_v51 = vmul.f32 0.0078125, %v1451_v24 }
 0x504   :  { %v1389_v2 = vpop.xlane.xlu0 %1388 }
 0x505   :  { %v1542_v14 = vadd.f32 1e-05, %v1510_v33  ;;  %v1511_v20 = vsub.f32 %v1479_v51, %v1495_v60  ;;  %v2827_v21 = vmul.f32 0.0078125, %v1389_v2 }
 0x506   :  { %v1391_v43 = vpop.xlane.xlu1 %1390 }
 0x507   :  { %2012 = vrsqrt.f32 %v1542_v14  ;;  %v1543_v22 = vadd.f32 1e-05, %v1511_v20  ;;  %v2830_v27 = vmul.f32 0.0078125, %v1391_v43  ;;  %v1496_v5 = vmul.f32 %v2827_v21, %v2827_v21 }
 0x508   :  { %v1453_v47 = vpop.xlane.xlu0 %1452 }
 0x509   :  { %v2009_v40 = vpop.eup %2008  ;;  %2014 = vrsqrt.f32 %v1543_v22  ;;  %v1480_v0 = vmul.f32 0.0078125, %v1453_v47  ;;  %v1497_v25 = vmul.f32 %v2830_v27, %v2830_v27  ;;  %v1528_v22 = vsub.f32 %v2746_v4, %v2827_v21 }
 0x50a   :  { %v1572_v3 = vmul.f32 %v2009_v40, %v1524_v28  ;;  %v1455_v34 = vpop.xlane.xlu1 %1454 }
 0x50b   :  { %v2011_v42 = vpop.eup %2010  ;;  %v1512_v52 = vsub.f32 %v1480_v0, %v1496_v5  ;;  %v1481_v7 = vmul.f32 0.0078125, %v1455_v34 }
 0x50c   :  { %v1596_v46 = vmul.f32 %v2835_v55, %v1572_v3  ;;  %v1573_v57 = vmul.f32 %v2011_v42, %v1525_v44  ;;  %v1393_v54 = vpop.xlane.xlu0 %1392  ;;  %v1529_v44 = vsub.f32 %v2750_v45, %v2830_v27 }
 0x50d   :  { %v1544_v8 = vadd.f32 1e-05, %v1512_v52  ;;  %v1513_v59 = vsub.f32 %v1481_v7, %v1497_v25  ;;  %v2848_v38 = vmul.f32 0.0078125, %v1393_v54 }
 0x50e   :  { %v1620_v39 = vadd.f32 %v2843_v13, %v1596_v46  ;;  %v1597_v29 = vmul.f32 %v2835_v55, %v1573_v57  ;;  %v1395_v17 = vpop.xlane.xlu1 %1394 }
 0x50f   :  { %2016 = vrsqrt.f32 %v1544_v8  ;;  %v1545_v31 = vadd.f32 1e-05, %v1513_v59  ;;  %v2854_v36 = vmul.f32 0.0078125, %v1395_v17  ;;  %v1498_v49 = vmul.f32 %v2848_v38, %v2848_v38 }
 0x510   :  { %1636 = vst [vmem:[#allocation7] sm:$0xff] %v1620_v39  ;;  %v1621_v61 = vadd.f32 %v2843_v13, %v1597_v29  ;;  %v1457_v30 = vpop.xlane.xlu0 %1456  ;;  %v1530_v17 = vsub.f32 %v2760_v15, %v2848_v38 }
 0x511   :  { %v2013_v37 = vpop.eup %2012  ;;  %2018 = vrsqrt.f32 %v1545_v31  ;;  %v1482_v48 = vmul.f32 0.0078125, %v1457_v30  ;;  %v1499_v41 = vmul.f32 %v2854_v36, %v2854_v36 }
 0x512   :  { %1637 = vst [vmem:[#allocation7 + $0x8] sm:$0xff] %v1621_v61  ;;  %v1574_v9 = vmul.f32 %v2013_v37, %v1526_v16  ;;  %v1459_v6 = vpop.xlane.xlu1 %1458 }
 0x513   :  { %v2015_v18 = vpop.eup %2014  ;;  %v1514_v12 = vsub.f32 %v1482_v48, %v1498_v49  ;;  %v1483_v26 = vmul.f32 0.0078125, %v1459_v6  ;;  %v1531_v49 = vsub.f32 %v2764_v58, %v2854_v36 }
 0x514   :  { %v1598_v11 = vmul.f32 %v2835_v55, %v1574_v9  ;;  %v1575_v24 = vmul.f32 %v2015_v18, %v1527_v23  ;;  %v1397_v60 = vpop.xlane.xlu0 %1396 }
 0x515   :  { %v1546_v33 = vadd.f32 1e-05, %v1514_v12  ;;  %v1515_v51 = vsub.f32 %v1483_v26, %v1499_v41  ;;  %v2862_v2 = vmul.f32 0.0078125, %v1397_v60 }
 0x516   :  { %v1622_v14 = vadd.f32 %v2843_v13, %v1598_v11  ;;  %v1599_v1 = vmul.f32 %v2835_v55, %v1575_v24  ;;  %v1399_v62 = vpop.xlane.xlu1 %1398 }
 0x517   :  { %2020 = vrsqrt.f32 %v1546_v33  ;;  %v1547_v20 = vadd.f32 1e-05, %v1515_v51  ;;  %v2869_v28 = vmul.f32 0.0078125, %v1399_v62  ;;  %v1500_v5 = vmul.f32 %v2862_v2, %v2862_v2 }
 0x518   :  { %1638 = vst [vmem:[#allocation7 + $0x10] sm:$0xff] %v1622_v14  ;;  %v1623_v43 = vadd.f32 %v2843_v13, %v1599_v1  ;;  %v1461_v47 = vpop.xlane.xlu0 %1460  ;;  %v1532_v14 = vsub.f32 %v2774_v32, %v2862_v2 }
 0x519   :  { %v2017_v40 = vpop.eup %2016  ;;  %2022 = vrsqrt.f32 %v1547_v20  ;;  %v1484_v0 = vmul.f32 0.0078125, %v1461_v47  ;;  %v1501_v25 = vmul.f32 %v2869_v28, %v2869_v28  ;;  %v1533_v47 = vsub.f32 %v2778_v19, %v2869_v28 }
 0x51a   :  { %1639 = vst [vmem:[#allocation7 + $0x18] sm:$0xff] %v1623_v43  ;;  %v1576_v3 = vmul.f32 %v2017_v40, %v1528_v22  ;;  %v1463_v34 = vpop.xlane.xlu1 %1462 }
 0x51b   :  { %v2019_v42 = vpop.eup %2018  ;;  %v1516_v4 = vsub.f32 %v1484_v0, %v1500_v5  ;;  %v1485_v21 = vmul.f32 0.0078125, %v1463_v34 }
 0x51c   :  { %v1600_v52 = vmul.f32 %v2835_v55, %v1576_v3  ;;  %v1577_v7 = vmul.f32 %v2019_v42, %v1529_v44  ;;  %v1401_v46 = vpop.xlane.xlu0 %1400 }
 0x51d   :  { %v1548_v57 = vadd.f32 1e-05, %v1516_v4  ;;  %v1517_v54 = vsub.f32 %v1485_v21, %v1501_v25  ;;  %v2878_v8 = vmul.f32 0.0078125, %v1401_v46 }
 0x51e   :  { %v1624_v59 = vadd.f32 %v2843_v13, %v1600_v52  ;;  %v1601_v45 = vmul.f32 %v2835_v55, %v1577_v7  ;;  %v1403_v27 = vpop.xlane.xlu1 %1402 }
 0x51f   :  { %2024 = vrsqrt.f32 %v1548_v57  ;;  %v1549_v39 = vadd.f32 1e-05, %v1517_v54  ;;  %v2885_v31 = vmul.f32 0.0078125, %v1403_v27  ;;  %v1502_v30 = vmul.f32 %v2878_v8, %v2878_v8 }
 0x520   :  { %1640 = vst [vmem:[#allocation7 + $0x20] sm:$0xff] %v1624_v59  ;;  %v1625_v29 = vadd.f32 %v2843_v13, %v1601_v45  ;;  %v1465_v61 = vpop.xlane.xlu0 %1464  ;;  %v1534_v57 = vsub.f32 %v2788_v35, %v2878_v8 }
 0x521   :  { %v2021_v16 = vpop.eup %2020  ;;  %2026 = vrsqrt.f32 %v1549_v39  ;;  %v1486_v37 = vmul.f32 0.0078125, %v1465_v61  ;;  %v1503_v6 = vmul.f32 %v2885_v31, %v2885_v31 }
 0x522   :  { %1641 = vst [vmem:[#allocation7 + $0x28] sm:$0xff] %v1625_v29  ;;  %v1578_v48 = vmul.f32 %v2021_v16, %v1530_v17  ;;  %v1467_v23 = vpop.xlane.xlu1 %1466  ;;  %v1535_v29 = vsub.f32 %v2792_v10, %v2885_v31 }
 0x523   :  { %v2023_v9 = vpop.eup %2022  ;;  %v1518_v15 = vsub.f32 %v1486_v37, %v1502_v30  ;;  %v1487_v38 = vmul.f32 0.0078125, %v1467_v23 }
 0x524   :  { %v1602_v18 = vmul.f32 %v2835_v55, %v1578_v48  ;;  %v1579_v41 = vmul.f32 %v2023_v9, %v1531_v49  ;;  %v1405_v12 = vpop.xlane.xlu0 %1404 }
 0x525   :  { %v1550_v26 = vadd.f32 1e-05, %v1518_v15  ;;  %v1519_v11 = vsub.f32 %v1487_v38, %v1503_v6  ;;  %v2894_v24 = vmul.f32 0.0078125, %v1405_v12 }
 0x526   :  { %v1626_v60 = vadd.f32 %v2843_v13, %v1602_v18  ;;  %v1603_v58 = vmul.f32 %v2835_v55, %v1579_v41  ;;  %v1407_v36 = vpop.xlane.xlu1 %1406 }
 0x527   :  { %2028 = vrsqrt.f32 %v1550_v26  ;;  %v1551_v33 = vadd.f32 1e-05, %v1519_v11  ;;  %v1425_v1 = vmul.f32 0.0078125, %v1407_v36  ;;  %v1504_v43 = vmul.f32 %v2894_v24, %v2894_v24 }
 0x528   :  { %1642 = vst [vmem:[#allocation7 + $0x30] sm:$0xff] %v1626_v60  ;;  %v1627_v51 = vadd.f32 %v2843_v13, %v1603_v58  ;;  %v1469_v62 = vpop.xlane.xlu0 %1468  ;;  %v1536_v31 = vsub.f32 %v2802_v56, %v2894_v24 }
 0x529   :  { %v2025_v20 = vpop.eup %2024  ;;  %2030 = vrsqrt.f32 %v1551_v33  ;;  %v1488_v22 = vmul.f32 0.0078125, %v1469_v62  ;;  %v1505_v44 = vmul.f32 %v1425_v1, %v1425_v1  ;;  %v1537_v18 = vsub.f32 %v2806_v50, %v1425_v1 }
 0x52a   :  { %1643 = vst [vmem:[#allocation7 + $0x38] sm:$0xff] %v1627_v51  ;;  %v1580_v40 = vmul.f32 %v2025_v20, %v1532_v14  ;;  %v1471_v5 = vpop.xlane.xlu1 %1470 }
 0x52b   :  { %v2027_v0 = vpop.eup %2026  ;;  %v1520_v3 = vsub.f32 %v1488_v22, %v1504_v43  ;;  %v1489_v34 = vmul.f32 0.0078125, %v1471_v5 }
 0x52c   :  { %v1604_v32 = vmul.f32 %v2835_v55, %v1580_v40  ;;  %v1581_v2 = vmul.f32 %v2027_v0, %v1533_v47  ;;  %v1409_v42 = vpop.xlane.xlu0 %1408 }
 0x52d   :  { %v1552_v25 = vadd.f32 1e-05, %v1520_v3  ;;  %v1521_v4 = vsub.f32 %v1489_v34, %v1505_v44  ;;  %v1426_v21 = vmul.f32 0.0078125, %v1409_v42 }
 0x52e   :  { %v1628_v52 = vadd.f32 %v2843_v13, %v1604_v32  ;;  %v1605_v7 = vmul.f32 %v2835_v55, %v1581_v2  ;;  %v1411_v46 = vpop.xlane.xlu1 %1410 }
 0x52f   :  { %2032 = vrsqrt.f32 %v1552_v25  ;;  %v1553_v19 = vadd.f32 1e-05, %v1521_v4  ;;  %v1427_v54 = vmul.f32 0.0078125, %v1411_v46  ;;  %v1506_v27 = vmul.f32 %v1426_v21, %v1426_v21 }
 0x530   :  { %1644 = vst [vmem:[#allocation7 + $0x40] sm:$0xff] %v1628_v52  ;;  %v1629_v28 = vadd.f32 %v2843_v13, %v1605_v7  ;;  %v1473_v59 = vpop.xlane.xlu0 %1472  ;;  %v1538_v33 = vsub.f32 %v2816_v63, %v1426_v21 }
 0x531   :  { %v2029_v45 = vpop.eup %2028  ;;  %2034 = vrsqrt.f32 %v1553_v19  ;;  %v1490_v39 = vmul.f32 0.0078125, %v1473_v59  ;;  %v1507_v30 = vmul.f32 %v1427_v54, %v1427_v54  ;;  %v1539_v24 = vsub.f32 %v2820_v53, %v1427_v54 }
 0x532   :  { %1645 = vst [vmem:[#allocation7 + $0x48] sm:$0xff] %v1629_v28  ;;  %v1582_v17 = vmul.f32 %v2029_v45, %v1534_v57  ;;  %v1475_v61 = vpop.xlane.xlu1 %1474 }
 0x533   :  { %v2031_v16 = vpop.eup %2030  ;;  %v1522_v37 = vsub.f32 %v1490_v39, %v1506_v27  ;;  %v1491_v49 = vmul.f32 0.0078125, %v1475_v61 }
 0x534   :  { %v1606_v48 = vmul.f32 %v2835_v55, %v1582_v17  ;;  %v1583_v23 = vmul.f32 %v2031_v16, %v1535_v29 }
 0x535   :  { %v1554_v35 = vadd.f32 1e-05, %v1522_v37  ;;  %v1523_v8 = vsub.f32 %v1491_v49, %v1507_v30 }
 0x536   :  { %v1630_v9 = vadd.f32 %v2843_v13, %v1606_v48  ;;  %v1607_v6 = vmul.f32 %v2835_v55, %v1583_v23 }
 0x537   :  { %2036 = vrsqrt.f32 %v1554_v35  ;;  %v1555_v15 = vadd.f32 1e-05, %v1523_v8 }
 0x538   :  { %1646 = vst [vmem:[#allocation7 + $0x50] sm:$0xff] %v1630_v9  ;;  %v1631_v10 = vadd.f32 %v2843_v13, %v1607_v6 }
 0x539   :  { %v2033_v38 = vpop.eup %2032  ;;  %2038 = vrsqrt.f32 %v1555_v15 }
 0x53a   :  { %1647 = vst [vmem:[#allocation7 + $0x58] sm:$0xff] %v1631_v10  ;;  %v1584_v41 = vmul.f32 %v2033_v38, %v1536_v31 }
 0x53b   :  { %v2035_v12 = vpop.eup %2034 }
 0x53c   :  { %v1608_v26 = vmul.f32 %v2835_v55, %v1584_v41  ;;  %v1585_v11 = vmul.f32 %v2035_v12, %v1537_v18 }
 0x53e   :  { %v1632_v60 = vadd.f32 %v2843_v13, %v1608_v26  ;;  %v1609_v58 = vmul.f32 %v2835_v55, %v1585_v11 }
 0x540   :  { %1648 = vst [vmem:[#allocation7 + $0x60] sm:$0xff] %v1632_v60  ;;  %v1633_v36 = vadd.f32 %v2843_v13, %v1609_v58 }
 0x541   :  { %v2037_v56 = vpop.eup %2036 }
 0x542   :  { %1649 = vst [vmem:[#allocation7 + $0x68] sm:$0xff] %v1633_v36  ;;  %v1586_v51 = vmul.f32 %v2037_v56, %v1538_v33 }
 0x543   :  { %v2039_v50 = vpop.eup %2038 }
 0x544   :  { %v1610_v14 = vmul.f32 %v2835_v55, %v1586_v51  ;;  %v1587_v1 = vmul.f32 %v2039_v50, %v1539_v24 }
 0x546   :  { %v1634_v62 = vadd.f32 %v2843_v13, %v1610_v14  ;;  %v1611_v20 = vmul.f32 %v2835_v55, %v1587_v1 }
 0x548   :  { %1650 = vst [vmem:[#allocation7 + $0x70] sm:$0xff] %v1634_v62  ;;  %v1635_v43 = vadd.f32 %v2843_v13, %v1611_v20 }
 0x54a   :  { %1651 = vst [vmem:[#allocation7 + $0x78] sm:$0xff] %v1635_v43 }
 0x54b   :  { %2095 = shalt.err (!%p2092_p6)
}
 0x54c   :  { %s2096_s17 = scalar_lea.hbm %s2952_s7, 2048 }
 0x54d   :  { %p2097_p7 = scmp.ne.s32.totalorder %s2952_s7, %s2096_s17  ;;  %p2100_p8 = scmp.lt.u32.totalorder %s2096_s17, %s2952_s7 }
 0x54f   :  { %p2102_p9 = pnand %p2100_p8, %p2097_p7 }
 0x551   :  { %2105 = shalt.err (!%p2102_p9)
}
 0x552   :  { %1663 = dma.vmem_to_hbm [thread:$0]  %s1658_s6, 2048, %s2952_s7, [#allocation4], %s2113_s11, %s2113_s11, %s2114_s12  }
 0x553   :  { %2110 = dma.done.wait [#allocation4], 2048  }
 0x554   :  { %2111 = vsyncadd [#allocation4], 4294965248 }
 0x555   :  { %1667 = vsyncpa [#allocation3], 1 }
 0x556   :  { %1668 = vsyncpa [#allocation6], 1 }
 0x557   :  { %1669 = vsyncpa [#allocation4], 1 }

</bundles_post_ra>
